<compile_context>
chip_gen: v6e
topology: v6e:2x2x1
jax: 0.10.0
libtpu: 0.0.40
codegen_flags: <defaults>
</compile_context>

<pallas_src>
import jax
import jax.numpy as jnp
from jax.experimental import pallas as pl
from jax.experimental.pallas import tpu as pltpu

LN_EPS = 1e-5


def _layernorm(h, gamma, beta):
    # LayerNorm over the last (feature) axis, matching torch.nn.LayerNorm
    # (biased variance, eps inside the rsqrt).
    mean = jnp.mean(h, axis=-1, keepdims=True)
    var = jnp.mean((h - mean) ** 2, axis=-1, keepdims=True)
    inv = jax.lax.rsqrt(var + LN_EPS)
    return (h - mean) * inv * gamma + beta


def _encoder_mlp_kernel(x_ref, wstack_ref, vecs_ref, w3_ref, b3t_ref, out_ref):
    # x block: (tile_n, F) -- rows on sublanes, features on lanes.
    x = x_ref[...]

    w = wstack_ref[...]            # (2, H, H) bf16
    vecs = vecs_ref[...]           # (6, H)    f32
    b1, g1, be1 = vecs[0:1, :], vecs[1:2, :], vecs[2:3, :]
    b2, g2, be2 = vecs[3:4, :], vecs[4:5, :], vecs[5:6, :]

    # --- layer 1: Linear + LayerNorm + Tanh (bf16 MXU operands, f32 accum) ---
    h = jnp.dot(x.astype(jnp.bfloat16), w[0],
                preferred_element_type=jnp.float32) + b1
    h = _layernorm(h, g1, be1)
    h = jnp.tanh(h)

    # --- layer 2: Linear + LayerNorm + Tanh ---
    h = jnp.dot(h.astype(jnp.bfloat16), w[1],
                preferred_element_type=jnp.float32) + b2
    h = _layernorm(h, g2, be2)
    h = jnp.tanh(h)

    # --- output layer: Linear only, produced lane-dense as (Z, tile_n) ---
    # y_t[z, n] = sum_k w3[k, z] * h[n, k]
    y_t = jax.lax.dot_general(
        w3_ref[...], h.astype(jnp.bfloat16),
        dimension_numbers=(((0,), (1,)), ((), ())),
        preferred_element_type=jnp.float32,
    ) + b3t_ref[...]
    out_ref[...] = y_t.astype(out_ref.dtype)


def encoder_forward(x, params, *, tile_n=512):
    """Fused MLP-encoder forward (the 'abs' path of Encoder.forward).

    x: (N, F) float32 flattened node features.
    params: dict with w1,b1,g1,be1,w2,b2,g2,be2,w3,b3
            (weights as (in,out); biases/LN params as (1, dim)).
    Returns z: (N, Z) in x.dtype.
    """
    n, fin = x.shape
    hid = params["w1"].shape[1]
    out_dim = params["w3"].shape[1]

    # Row tile: multiple of 128 so the transposed output block is lane-dense
    # and (8,128)-aligned.  Pad ragged N instead of asserting; padded rows are
    # computed and discarded (LN of a constant row is finite -> no NaNs).
    tile_n = max(128, (int(tile_n) // 128) * 128)
    n_pad = int(pl.cdiv(n, tile_n)) * tile_n
    if n_pad != n:
        x = jnp.pad(x, ((0, n_pad - n), (0, 0)))
    grid = (n_pad // tile_n,)

    # Pack parameters: 4 grid-invariant inputs instead of 10.
    wstack = jnp.stack([params["w1"], params["w2"]]).astype(jnp.bfloat16)  # (2,H,H)
    vecs = jnp.concatenate(
        [params["b1"], params["g1"], params["be1"],
         params["b2"], params["g2"], params["be2"]], axis=0
    ).astype(jnp.float32)                                                  # (6,H)
    w3 = params["w3"].astype(jnp.bfloat16)                                 # (H,Z)
    b3t = params["b3"].astype(jnp.float32).T                               # (Z,1)

    in_specs = [
        pl.BlockSpec((tile_n, fin), lambda i: (i, 0)),       # x      (pipelined)
        pl.BlockSpec((2, hid, hid), lambda i: (0, 0, 0)),    # wstack (grid-invariant)
        pl.BlockSpec((6, hid), lambda i: (0, 0)),            # vecs   (grid-invariant)
        pl.BlockSpec((hid, out_dim), lambda i: (0, 0)),      # w3     (grid-invariant)
        pl.BlockSpec((out_dim, 1), lambda i: (0, 0)),        # b3^T   (grid-invariant)
    ]
    # Lane-dense output: (Z, N_pad) array, (Z, tile_n) blocks.
    out_specs = pl.BlockSpec((out_dim, tile_n), lambda i: (0, i))

    y_t = pl.pallas_call(
        _encoder_mlp_kernel,
        out_shape=jax.ShapeDtypeStruct((out_dim, n_pad), x.dtype),
        grid_spec=pltpu.PrefetchScalarGridSpec(
            num_scalar_prefetch=0,
            grid=grid,
            in_specs=in_specs,
            out_specs=out_specs,
        ),
        compiler_params=pltpu.CompilerParams(
            dimension_semantics=("parallel",),
            vmem_limit_bytes=32 * 1024 * 1024,
        ),
    )(x, wstack, vecs, w3, b3t)

    # Back to the module's (N, Z) layout; drop padded rows.
    return y_t.T[:n]


def init_params(key, input_dim, latent_dim=2):
    """Deterministic synthetic encoder parameters (build_mlp(2*input_dim, Z, 3, LN, Tanh))."""
    fin = 2 * input_dim
    hid = 2 * input_dim
    out = latent_dim
    ks = jax.random.split(key, 6)
    return {
        "w1": jax.random.normal(ks[0], (fin, hid), jnp.float32) * 0.1,
        "b1": jax.random.normal(ks[1], (1, hid), jnp.float32) * 0.01,
        "g1": jnp.ones((1, hid), jnp.float32),
        "be1": jnp.zeros((1, hid), jnp.float32),
        "w2": jax.random.normal(ks[2], (hid, hid), jnp.float32) * 0.1,
        "b2": jax.random.normal(ks[3], (1, hid), jnp.float32) * 0.01,
        "g2": jnp.ones((1, hid), jnp.float32),
        "be2": jnp.zeros((1, hid), jnp.float32),
        "w3": jax.random.normal(ks[4], (hid, out), jnp.float32) * 0.1,
        "b3": jax.random.normal(ks[5], (1, out), jnp.float32) * 0.01,
    }


def reference_forward(x, p):
    """Pure-JAX f32 reference for correctness checking."""
    h = x @ p["w1"] + p["b1"]
    h = _layernorm(h, p["g1"], p["be1"])
    h = jnp.tanh(h)
    h = h @ p["w2"] + p["b2"]
    h = _layernorm(h, p["g2"], p["be2"])
    h = jnp.tanh(h)
    return h @ p["w3"] + p["b3"]


if __name__ == "__main__":
    key = jax.random.PRNGKey(0)
    k_param, k_x = jax.random.split(key)

    input_dim = 16           # per-agent feature half-width -> MLP input dim = 32
    latent_dim = 2           # encoder latent width Z
    n_nodes = 2000           # ragged on purpose: exercises pad + multi-tile grid

    params = init_params(k_param, input_dim, latent_dim)
    x = jax.random.normal(k_x, (n_nodes, 2 * input_dim), jnp.float32)

    z = encoder_forward(x, params, tile_n=512)
    z = jax.block_until_ready(z)

    z_ref = reference_forward(x, params)
    assert z.shape == (n_nodes, latent_dim), z.shape
    # bf16 MXU operands -> allow ~1e-2-level deviation from the f32 reference.
    assert jnp.allclose(z, z_ref, atol=5e-2, rtol=5e-2), (
        "mismatch vs reference; max abs diff = "
        f"{float(jnp.max(jnp.abs(z - z_ref)))}"
    )

    print("KERNEL_OK")
</pallas_src>

<mosaic_0001>
module attributes {stable_mosaic.version = 11 : i64} {
  func.func @_encoder_mlp_kernel(%arg0: i32, %arg1: memref<512x32xf32, #tpu.memory_space<vmem>>, %arg2: memref<2x32x32xbf16, #tpu.memory_space<vmem>>, %arg3: memref<6x32xf32, #tpu.memory_space<vmem>>, %arg4: memref<32x2xbf16, #tpu.memory_space<vmem>>, %arg5: memref<2x1xf32, #tpu.memory_space<vmem>>, %arg6: memref<2x512xf32, #tpu.memory_space<vmem>>) attributes {dimension_semantics = [#tpu.dimension_semantics<parallel>], iteration_bounds = array<i64: 4>, scalar_prefetch = 0 : i64, scratch_operands = 0 : i64, tpu.core_type = #tpu.core_type<tc>, window_params = [{transform_indices = @transform_0, window_bounds = array<i64: 512, 32>}, {pipeline_mode = #tpu.pipeline_mode<synchronous>, transform_indices = @transform_1, window_bounds = array<i64: 2, 32, 32>}, {pipeline_mode = #tpu.pipeline_mode<synchronous>, transform_indices = @transform_2, window_bounds = array<i64: 6, 32>}, {pipeline_mode = #tpu.pipeline_mode<synchronous>, transform_indices = @transform_3, window_bounds = array<i64: 32, 2>}, {pipeline_mode = #tpu.pipeline_mode<synchronous>, transform_indices = @transform_4, window_bounds = array<i64: 2, 1>}, {transform_indices = @transform_5, window_bounds = array<i64: 2, 512>}]} {
    %c0 = arith.constant 0 : index
    %c0_0 = arith.constant 0 : index
    %0 = vector.load %arg1[%c0, %c0_0] : memref<512x32xf32, #tpu.memory_space<vmem>>, vector<512x32xf32>
    %c0_1 = arith.constant 0 : index
    %c0_2 = arith.constant 0 : index
    %c0_3 = arith.constant 0 : index
    %1 = vector.load %arg2[%c0_1, %c0_2, %c0_3] : memref<2x32x32xbf16, #tpu.memory_space<vmem>>, vector<2x32x32xbf16>
    %c0_4 = arith.constant 0 : index
    %c0_5 = arith.constant 0 : index
    %2 = vector.load %arg3[%c0_4, %c0_5] : memref<6x32xf32, #tpu.memory_space<vmem>>, vector<6x32xf32>
    %3 = vector.extract_strided_slice %2 {offsets = [0, 0], sizes = [1, 32], strides = [1, 1]} : vector<6x32xf32> to vector<1x32xf32>
    %4 = vector.extract_strided_slice %2 {offsets = [1, 0], sizes = [1, 32], strides = [1, 1]} : vector<6x32xf32> to vector<1x32xf32>
    %5 = vector.extract_strided_slice %2 {offsets = [2, 0], sizes = [1, 32], strides = [1, 1]} : vector<6x32xf32> to vector<1x32xf32>
    %6 = vector.extract_strided_slice %2 {offsets = [3, 0], sizes = [1, 32], strides = [1, 1]} : vector<6x32xf32> to vector<1x32xf32>
    %7 = vector.extract_strided_slice %2 {offsets = [4, 0], sizes = [1, 32], strides = [1, 1]} : vector<6x32xf32> to vector<1x32xf32>
    %8 = vector.extract_strided_slice %2 {offsets = [5, 0], sizes = [1, 32], strides = [1, 1]} : vector<6x32xf32> to vector<1x32xf32>
    %9 = arith.truncf %0 : vector<512x32xf32> to vector<512x32xbf16>
    %10 = vector.extract_strided_slice %1 {offsets = [0, 0, 0], sizes = [1, 32, 32], strides = [1, 1, 1]} : vector<2x32x32xbf16> to vector<1x32x32xbf16>
    %11 = vector.shape_cast %10 : vector<1x32x32xbf16> to vector<32x32xbf16>
    %cst = arith.constant dense<0.000000e+00> : vector<512x32xf32>
    %12 = tpu.matmul %9, %11, %cst {dimension_numbers = #tpu.dot_dimension_numbers<[1], [0], [0], [1], [0, 0, 1, 1], [], []>} : vector<512x32xbf16>, vector<32x32xbf16>, vector<512x32xf32> -> vector<512x32xf32>
    %13 = vector.broadcast %3 : vector<1x32xf32> to vector<512x32xf32>
    %14 = arith.addf %12, %13 : vector<512x32xf32>
    %cst_6 = arith.constant dense<0.000000e+00> : vector<512xf32>
    %15 = vector.multi_reduction <add>, %14, %cst_6 [1] : vector<512x32xf32> to vector<512xf32>
    %16 = vector.shape_cast %15 : vector<512xf32> to vector<512x1xf32>
    %cst_7 = arith.constant 3.200000e+01 : f32
    %17 = vector.broadcast %cst_7 : f32 to vector<512x1xf32>
    %18 = arith.divf %16, %17 : vector<512x1xf32>
    %19 = vector.broadcast %18 : vector<512x1xf32> to vector<512x32xf32>
    %20 = arith.subf %14, %19 : vector<512x32xf32>
    %21 = arith.mulf %20, %20 : vector<512x32xf32>
    %cst_8 = arith.constant dense<0.000000e+00> : vector<512xf32>
    %22 = vector.multi_reduction <add>, %21, %cst_8 [1] : vector<512x32xf32> to vector<512xf32>
    %23 = vector.shape_cast %22 : vector<512xf32> to vector<512x1xf32>
    %cst_9 = arith.constant 3.200000e+01 : f32
    %24 = vector.broadcast %cst_9 : f32 to vector<512x1xf32>
    %25 = arith.divf %23, %24 : vector<512x1xf32>
    %cst_10 = arith.constant 9.99999974E-6 : f32
    %26 = vector.broadcast %cst_10 : f32 to vector<512x1xf32>
    %27 = arith.addf %25, %26 : vector<512x1xf32>
    %28 = math.rsqrt %27 : vector<512x1xf32>
    %29 = vector.broadcast %18 : vector<512x1xf32> to vector<512x32xf32>
    %30 = arith.subf %14, %29 : vector<512x32xf32>
    %31 = vector.broadcast %28 : vector<512x1xf32> to vector<512x32xf32>
    %32 = arith.mulf %30, %31 : vector<512x32xf32>
    %33 = vector.broadcast %4 : vector<1x32xf32> to vector<512x32xf32>
    %34 = arith.mulf %32, %33 : vector<512x32xf32>
    %35 = vector.broadcast %5 : vector<1x32xf32> to vector<512x32xf32>
    %36 = arith.addf %34, %35 : vector<512x32xf32>
    %37 = math.tanh %36 : vector<512x32xf32>
    %38 = arith.truncf %37 : vector<512x32xf32> to vector<512x32xbf16>
    %39 = vector.extract_strided_slice %1 {offsets = [1, 0, 0], sizes = [1, 32, 32], strides = [1, 1, 1]} : vector<2x32x32xbf16> to vector<1x32x32xbf16>
    %40 = vector.shape_cast %39 : vector<1x32x32xbf16> to vector<32x32xbf16>
    %cst_11 = arith.constant dense<0.000000e+00> : vector<512x32xf32>
    %41 = tpu.matmul %38, %40, %cst_11 {dimension_numbers = #tpu.dot_dimension_numbers<[1], [0], [0], [1], [0, 0, 1, 1], [], []>} : vector<512x32xbf16>, vector<32x32xbf16>, vector<512x32xf32> -> vector<512x32xf32>
    %42 = vector.broadcast %6 : vector<1x32xf32> to vector<512x32xf32>
    %43 = arith.addf %41, %42 : vector<512x32xf32>
    %cst_12 = arith.constant dense<0.000000e+00> : vector<512xf32>
    %44 = vector.multi_reduction <add>, %43, %cst_12 [1] : vector<512x32xf32> to vector<512xf32>
    %45 = vector.shape_cast %44 : vector<512xf32> to vector<512x1xf32>
    %cst_13 = arith.constant 3.200000e+01 : f32
    %46 = vector.broadcast %cst_13 : f32 to vector<512x1xf32>
    %47 = arith.divf %45, %46 : vector<512x1xf32>
    %48 = vector.broadcast %47 : vector<512x1xf32> to vector<512x32xf32>
    %49 = arith.subf %43, %48 : vector<512x32xf32>
    %50 = arith.mulf %49, %49 : vector<512x32xf32>
    %cst_14 = arith.constant dense<0.000000e+00> : vector<512xf32>
    %51 = vector.multi_reduction <add>, %50, %cst_14 [1] : vector<512x32xf32> to vector<512xf32>
    %52 = vector.shape_cast %51 : vector<512xf32> to vector<512x1xf32>
    %cst_15 = arith.constant 3.200000e+01 : f32
    %53 = vector.broadcast %cst_15 : f32 to vector<512x1xf32>
    %54 = arith.divf %52, %53 : vector<512x1xf32>
    %cst_16 = arith.constant 9.99999974E-6 : f32
    %55 = vector.broadcast %cst_16 : f32 to vector<512x1xf32>
    %56 = arith.addf %54, %55 : vector<512x1xf32>
    %57 = math.rsqrt %56 : vector<512x1xf32>
    %58 = vector.broadcast %47 : vector<512x1xf32> to vector<512x32xf32>
    %59 = arith.subf %43, %58 : vector<512x32xf32>
    %60 = vector.broadcast %57 : vector<512x1xf32> to vector<512x32xf32>
    %61 = arith.mulf %59, %60 : vector<512x32xf32>
    %62 = vector.broadcast %7 : vector<1x32xf32> to vector<512x32xf32>
    %63 = arith.mulf %61, %62 : vector<512x32xf32>
    %64 = vector.broadcast %8 : vector<1x32xf32> to vector<512x32xf32>
    %65 = arith.addf %63, %64 : vector<512x32xf32>
    %66 = math.tanh %65 : vector<512x32xf32>
    %c0_17 = arith.constant 0 : index
    %c0_18 = arith.constant 0 : index
    %67 = vector.load %arg4[%c0_17, %c0_18] : memref<32x2xbf16, #tpu.memory_space<vmem>>, vector<32x2xbf16>
    %68 = arith.truncf %66 : vector<512x32xf32> to vector<512x32xbf16>
    %cst_19 = arith.constant dense<0.000000e+00> : vector<2x512xf32>
    %69 = tpu.matmul %67, %68, %cst_19 {dimension_numbers = #tpu.dot_dimension_numbers<[0], [1], [1], [0], [0, 1, 1, 0], [], []>} : vector<32x2xbf16>, vector<512x32xbf16>, vector<2x512xf32> -> vector<2x512xf32>
    %c0_20 = arith.constant 0 : index
    %c0_21 = arith.constant 0 : index
    %70 = vector.load %arg5[%c0_20, %c0_21] : memref<2x1xf32, #tpu.memory_space<vmem>>, vector<2x1xf32>
    %71 = vector.broadcast %70 : vector<2x1xf32> to vector<2x512xf32>
    %72 = arith.addf %69, %71 : vector<2x512xf32>
    %c0_22 = arith.constant 0 : index
    %c0_23 = arith.constant 0 : index
    %73 = vector.load %arg6[%c0_22, %c0_23] : memref<2x512xf32, #tpu.memory_space<vmem>>, vector<2x512xf32>
    tpu.vector_store %arg6[%c0_22, %c0_23], %72 {strides = array<i32>} : memref<2x512xf32, #tpu.memory_space<vmem>>, vector<2x512xf32>,
    return
  }
  func.func @transform_0(%arg0: i32) -> (i32, i32) {
    %c0_i32 = arith.constant 0 : i32
    %c0_i32_0 = arith.constant 0 : i32
    return %arg0, %c0_i32 : i32, i32
  }
  func.func @transform_1(%arg0: i32) -> (i32, i32, i32) {
    %c0_i32 = arith.constant 0 : i32
    %c0_i32_0 = arith.constant 0 : i32
    %c0_i32_1 = arith.constant 0 : i32
    %c0_i32_2 = arith.constant 0 : i32
    return %c0_i32, %c0_i32_0, %c0_i32_1 : i32, i32, i32
  }
  func.func @transform_2(%arg0: i32) -> (i32, i32) {
    %c0_i32 = arith.constant 0 : i32
    %c0_i32_0 = arith.constant 0 : i32
    %c0_i32_1 = arith.constant 0 : i32
    return %c0_i32, %c0_i32_0 : i32, i32
  }
  func.func @transform_3(%arg0: i32) -> (i32, i32) {
    %c0_i32 = arith.constant 0 : i32
    %c0_i32_0 = arith.constant 0 : i32
    %c0_i32_1 = arith.constant 0 : i32
    return %c0_i32, %c0_i32_0 : i32, i32
  }
  func.func @transform_4(%arg0: i32) -> (i32, i32) {
    %c0_i32 = arith.constant 0 : i32
    %c0_i32_0 = arith.constant 0 : i32
    %c0_i32_1 = arith.constant 0 : i32
    return %c0_i32, %c0_i32_0 : i32, i32
  }
  func.func @transform_5(%arg0: i32) -> (i32, i32) {
    %c0_i32 = arith.constant 0 : i32
    %c0_i32_0 = arith.constant 0 : i32
    return %c0_i32, %arg0 : i32, i32
  }
}

</mosaic_0001>

<bundles_post_ra>
// kernel: tpu_custom_call.1
= control target key start
LH: loop header
LB: loop body
LE: loop exit
PB: predicated region body
PF: predicated region fallthrough
CT: control target
= control target key end

     0   :  { %10 = vsyncpa [#allocation3], 0  ;;  %s6888_s0 = inlined_call_operand.vmem [shape: f32[2048,32], index: 0, kind: input, shape index: {}]   ;;  %s6889_s1 = inlined_call_operand.vmem [shape: bf16[2,32,32], index: 1, kind: input, shape index: {}]   ;;  %s6890_s2 = inlined_call_operand.vmem [shape: f32[6,32], index: 2, kind: input, shape index: {}]   ;;  %s6891_s3 = inlined_call_operand.vmem [shape: bf16[32,2], index: 3, kind: input, shape index: {}]   ;;  %s6892_s4 = inlined_call_operand.vmem [shape: f32[2,1], index: 4, kind: input, shape index: {}]   ;;  %s6893_s5 = inlined_call_operand.hbm [shape: f32[2,2048], index: 5, kind: output, shape index: {}]  }
   0x1   :  { %12 = vsyncpa [#allocation3 + $0x1], 0  ;;  %s4580_s18 = smov 0   ;;  %s4582_s19 = smov 0  }
   0x2   :  { %s4584_s20 = smov 0   ;;  %s4586_s21 = smov 0  }
   0x3 LB: > { %s4601_s22 = sadd.s32 4294967295, %s4545_s21   ;;  %s3580_s23 = sadd.s32 4294967294, %s4545_s21   ;;  %s4545_s21 = sphi %s4586_s21, %s7210_s21   ;;  %s4541_s20 = sphi %s4584_s20, %s7209_s20   ;;  %s4537_s19 = sphi %s4582_s19, %s7208_s19   ;;  %s4533_s18 = sphi %s4580_s18, %s7207_s18  }
   0x4   : > { %s4605_s24 = sadd.s32 1, %s4545_s21   ;;  %s135_s25 = sadd.s32 1, %s4541_s20 }
   0x5   : > { %s132_s26 = ssub.s32 %s4545_s21, %s4605_s24  ;;  %p145_p0 = scmp.ne.s32.totalorder %s4541_s20, %s4537_s19 }
   0x6   : > { %p133_p1 = scmp.eq.s32.totalorder %s132_s26, 0  ;;  %p146_p2 = scmp.eq.s32.totalorder %s4601_s22, 3 }
   0x7   : > { %p151_p3 = scmp.ne.s32.totalorder %s4537_s19, %s4533_s18  ;;  %p152_p4 = scmp.eq.s32.totalorder %s3580_s23, 3 }
   0x8   : > { %s4616_s27 = scalar_select %p133_p1, %s4541_s20, %s135_s25  }
   0x9   : > { %p4618_p5 = por %p146_p2, %p145_p0  ;;  %p4622_p6 = por %p152_p4, %p151_p3 }
   0xa   : > { %p3583_p7 = scmp.ge.s32.totalorder %s4545_s21, 1  ;;  %p191_p8 = scmp.lt.s32.totalorder %s4545_s21, 5 }
   0xc   : > { %p192_p9 = pnand %p3583_p7, %p191_p8 }
   0xe   : > { %195 = sbr.rel (%p192_p9) target bundleno = 1550 (0x60e), region = 40 }
  0x13   : > { %v3964_v0 = vld [vmem:[%s6889_s1 + $0x8] sm:$0xff]   ;;  %s3585_s7 = sshll.u32 %s4601_s22, 6  ;;  %v3965_v1 = vld [vmem:[%s6889_s1] sm:$0xff]   ;;  %vm348_vm0 = vcmask 261120   ;;  %s216_s16 = sand.u32 1, %s4537_s19  }
  0x14   : > { %p220_p10 = scmp.lt.s32.totalorder %s3585_s7, 255  ;;  %3769 = vmatprep.subr.bf16.mxu0 %v3964_v0  ;;  %s3584_s17 = sshll.u32 %s216_s16, 3 }
  0x15   : > { %3770 = vmatpush3.bf16.msra.mxu0 %v3964_v0  ;;  %s3664_s23 = sshll.u32 %s4601_s22, 7  ;;  %s218_s25 = scalar_lea.vmem [#allocation2], %s3584_s17 }
  0x16   : > { %s7212_s7 = smov (!%p220_p10, %s3585_s7), 255  ;;  %3771 = vmatprep.subr.bf16.mxu0 %v3965_v1  ;;  %s3521_s26 = sshll.u32 %s218_s25, 4  ;;  %s3522_s26 = int_to_ptr.vmem [resolvable:$true] %s3521_s26 }
  0x17   : > { %s3586_s10 = sshll.u32 %s7212_s7, 3  ;;  %s3519_s7 = scalar_lea.hbm %s6893_s5, %s3664_s23 }
  0x18   : > { %s4638_s13 = scalar_lea.vmem %s6888_s0, %s3586_s10  ;;  %s3507_s8 = scalar_lea.sflag [#allocation3], %s216_s16 }
  0x19   : > { %3772 = vmatpush3.bf16.msra.mxu0 %v3965_v1  ;;  %v227_v2 = vld [vmem:[%s4638_s13] sm:$0xff]  ;;  %v228_v3 = vld [vmem:[%s4638_s13 + $0x8] sm:$0xff]  ;;  %v229_v4 = vld [vmem:[%s4638_s13 + $0x10] sm:$0xff]  ;;  %s4485_s9 = scalar_lea.vmem %s3522_s26, 128  ;;  %s4549_s10 = smov [#allocation2]  }
  0x1a   : > { %v300_v5 = vpack.c.bf16 %v228_v3, %v227_v2  ;;  %v230_v6 = vld [vmem:[%s4638_s13 + $0x18] sm:$0xff]  ;;  %v231_v7 = vld [vmem:[%s4638_s13 + $0x20] sm:$0xff]  ;;  %v232_v8 = vld [vmem:[%s4638_s13 + $0x28] sm:$0xff]  ;;  %p4486_p11 = scmp.ne.s32.totalorder %s3522_s26, %s4485_s9  ;;  %s4489_s11 = sshll.u32 %s4549_s10, 4  ;;  %s4490_s11 = int_to_ptr.vmem [resolvable:$false] %s4489_s11 }
  0x1b   : > { %v301_v9 = vpack.c.bf16 %v230_v6, %v229_v4  ;;  %v302_v10 = vpack.c.bf16 %v232_v8, %v231_v7  ;;  %v233_v11 = vld [vmem:[%s4638_s13 + $0x30] sm:$0xff]  ;;  %v234_v12 = vld [vmem:[%s4638_s13 + $0x38] sm:$0xff]  ;;  %v235_v13 = vld [vmem:[%s4638_s13 + $0x40] sm:$0xff]  ;;  %s4491_s22 = scalar_lea.vmem %s4490_s11, 256  ;;  %p4492_p0 = scmp.lt.s32.totalorder %s3522_s26, %s4490_s11 }
  0x1c   : > { %3773 = vmatprep.mubr.msk.bf16.mxu0 %vm348_vm0, %v300_v5  ;;  %v236_v14 = vld [vmem:[%s4638_s13 + $0x48] sm:$0xff]  ;;  %v303_v15 = vpack.c.bf16 %v234_v12, %v233_v11  ;;  %v237_v17 = vld [vmem:[%s4638_s13 + $0x50] sm:$0xff]  ;;  %v238_v18 = vld [vmem:[%s4638_s13 + $0x58] sm:$0xff]  ;;  %p4487_p12 = pnand %p4486_p11, %p4618_p5  ;;  %p4493_p1 = scmp.lt.s32.totalorder %s4491_s22, %s4485_s9 }
  0x1d   : > { %3774 = vmatmul.mubr.msk.bf16.vlgmr.msra.gmra.mxu0 %vm348_vm0, %v301_v9  ;;  %v304_v16 = vpack.c.bf16 %v236_v14, %v235_v13  ;;  %v239_v19 = vld [vmem:[%s4638_s13 + $0x60] sm:$0xff]  ;;  %v240_v20 = vld [vmem:[%s4638_s13 + $0x68] sm:$0xff]  ;;  %v305_v21 = vpack.c.bf16 %v238_v18, %v237_v17  ;;  %v241_v23 = vld [vmem:[%s4638_s13 + $0x70] sm:$0xff] }
  0x1e   : > { %3777 = vmatprep.mubr.msk.bf16.mxu0 %vm348_vm0, %v302_v10  ;;  %v306_v22 = vpack.c.bf16 %v240_v20, %v239_v19  ;;  %v242_v24 = vld [vmem:[%s4638_s13 + $0x78] sm:$0xff]  ;;  %v243_v25 = vld [vmem:[%s4638_s13 + $0x80] sm:$0xff]  ;;  %v244_v26 = vld [vmem:[%s4638_s13 + $0x88] sm:$0xff]  ;;  %p4488_p13 = pneg %p4487_p12  ;;  %p4494_p2 = por %p4493_p1, %p4492_p0 }
  0x1f   : > { %v307_v27 = vpack.c.bf16 %v242_v24, %v241_v23  ;;  %v308_v28 = vpack.c.bf16 %v244_v26, %v243_v25  ;;  %v245_v29 = vld [vmem:[%s4638_s13 + $0x90] sm:$0xff]  ;;  %v246_v30 = vld [vmem:[%s4638_s13 + $0x98] sm:$0xff]  ;;  %v247_v31 = vld [vmem:[%s4638_s13 + $0xa0] sm:$0xff] }
  0x20   : > { %v248_v32 = vld [vmem:[%s4638_s13 + $0xa8] sm:$0xff]  ;;  %v309_v33 = vpack.c.bf16 %v246_v30, %v245_v29  ;;  %v249_v35 = vld [vmem:[%s4638_s13 + $0xb0] sm:$0xff]  ;;  %v250_v36 = vld [vmem:[%s4638_s13 + $0xb8] sm:$0xff]  ;;  %p4495_p3 = pnand %p4494_p2, %p4488_p13 }
  0x21   : > { %v310_v34 = vpack.c.bf16 %v248_v32, %v247_v31  ;;  %v251_v37 = vld [vmem:[%s4638_s13 + $0xc0] sm:$0xff]  ;;  %v252_v38 = vld [vmem:[%s4638_s13 + $0xc8] sm:$0xff]  ;;  %v311_v39 = vpack.c.bf16 %v250_v36, %v249_v35  ;;  %v253_v41 = vld [vmem:[%s4638_s13 + $0xd0] sm:$0xff] }
  0x22   : > { %v312_v40 = vpack.c.bf16 %v252_v38, %v251_v37  ;;  %v254_v42 = vld [vmem:[%s4638_s13 + $0xd8] sm:$0xff]  ;;  %v255_v43 = vld [vmem:[%s4638_s13 + $0xe0] sm:$0xff]  ;;  %v256_v44 = vld [vmem:[%s4638_s13 + $0xe8] sm:$0xff] }
  0x23   : > { %v313_v45 = vpack.c.bf16 %v254_v42, %v253_v41  ;;  %v314_v46 = vpack.c.bf16 %v256_v44, %v255_v43  ;;  %v257_v47 = vld [vmem:[%s4638_s13 + $0xf0] sm:$0xff]  ;;  %v258_v48 = vld [vmem:[%s4638_s13 + $0xf8] sm:$0xff]  ;;  %v259_v49 = vld [vmem:[%s4638_s13 + $0x100] sm:$0xff] }
  0x24   : > { %v260_v50 = vld [vmem:[%s4638_s13 + $0x108] sm:$0xff]  ;;  %v315_v51 = vpack.c.bf16 %v258_v48, %v257_v47  ;;  %v261_v53 = vld [vmem:[%s4638_s13 + $0x110] sm:$0xff]  ;;  %v262_v54 = vld [vmem:[%s4638_s13 + $0x118] sm:$0xff] }
  0x25   : > { %3778 = vmatmul.mubr.msk.bf16.gmra.mxu0 %vm348_vm0, %v303_v15  ;;  %v316_v52 = vpack.c.bf16 %v260_v50, %v259_v49  ;;  %v263_v55 = vld [vmem:[%s4638_s13 + $0x120] sm:$0xff]  ;;  %v264_v56 = vld [vmem:[%s4638_s13 + $0x128] sm:$0xff]  ;;  %v317_v57 = vpack.c.bf16 %v262_v54, %v261_v53  ;;  %v265_v59 = vld [vmem:[%s4638_s13 + $0x130] sm:$0xff] }
  0x26   : > { %3781 = vmatprep.mubr.msk.bf16.mxu0 %vm348_vm0, %v304_v16  ;;  %v318_v58 = vpack.c.bf16 %v264_v56, %v263_v55  ;;  %v266_v60 = vld [vmem:[%s4638_s13 + $0x138] sm:$0xff]  ;;  %v267_v61 = vld [vmem:[%s4638_s13 + $0x140] sm:$0xff]  ;;  %v268_v62 = vld [vmem:[%s4638_s13 + $0x148] sm:$0xff] }
  0x27   : > { %v319_v63 = vpack.c.bf16 %v266_v60, %v265_v59  ;;  %v320_v0 = vpack.c.bf16 %v268_v62, %v267_v61  ;;  %v269_v1 = vld [vmem:[%s4638_s13 + $0x150] sm:$0xff]  ;;  %v270_v2 = vld [vmem:[%s4638_s13 + $0x158] sm:$0xff]  ;;  %v271_v3 = vld [vmem:[%s4638_s13 + $0x160] sm:$0xff] }
  0x28   : > { %v272_v4 = vld [vmem:[%s4638_s13 + $0x168] sm:$0xff]  ;;  %v321_v5 = vpack.c.bf16 %v270_v2, %v269_v1  ;;  %v273_v7 = vld [vmem:[%s4638_s13 + $0x170] sm:$0xff]  ;;  %v274_v8 = vld [vmem:[%s4638_s13 + $0x178] sm:$0xff] }
  0x29   : > { %v322_v6 = vpack.c.bf16 %v272_v4, %v271_v3  ;;  %v275_v9 = vld [vmem:[%s4638_s13 + $0x180] sm:$0xff]  ;;  %v276_v10 = vld [vmem:[%s4638_s13 + $0x188] sm:$0xff]  ;;  %v323_v11 = vpack.c.bf16 %v274_v8, %v273_v7  ;;  %v277_v13 = vld [vmem:[%s4638_s13 + $0x190] sm:$0xff] }
  0x2a   : > { %v324_v12 = vpack.c.bf16 %v276_v10, %v275_v9  ;;  %v278_v14 = vld [vmem:[%s4638_s13 + $0x198] sm:$0xff]  ;;  %v279_v15 = vld [vmem:[%s4638_s13 + $0x1a0] sm:$0xff]  ;;  %v280_v16 = vld [vmem:[%s4638_s13 + $0x1a8] sm:$0xff] }
  0x2b   : > { %v325_v17 = vpack.c.bf16 %v278_v14, %v277_v13  ;;  %v326_v18 = vpack.c.bf16 %v280_v16, %v279_v15  ;;  %v281_v19 = vld [vmem:[%s4638_s13 + $0x1b0] sm:$0xff]  ;;  %v282_v20 = vld [vmem:[%s4638_s13 + $0x1b8] sm:$0xff]  ;;  %v299_v37 = vld [vmem:[%s6890_s2] sm:$0x3f] }
  0x2c   : > { %v327_v23 = vpack.c.bf16 %v282_v20, %v281_v19  ;;  %v285_v25 = vld [vmem:[%s4638_s13 + $0x1d0] sm:$0xff]  ;;  %v286_v26 = vld [vmem:[%s4638_s13 + $0x1d8] sm:$0xff] }
  0x2d   : > { %3782 = vmatmul.mubr.msk.bf16.gmra.mxu0 %vm348_vm0, %v305_v21  ;;  %v283_v21 = vld [vmem:[%s4638_s13 + $0x1c0] sm:$0xff]  ;;  %v329_v29 = vpack.c.bf16 %v286_v26, %v285_v25  ;;  %v289_v31 = vld [vmem:[%s4638_s13 + $0x1f0] sm:$0xff]  ;;  %v290_v32 = vld [vmem:[%s4638_s13 + $0x1f8] sm:$0xff] }
  0x2e   : > { %3785 = vmatprep.mubr.msk.bf16.mxu0 %vm348_vm0, %v306_v22  ;;  %v284_v22 = vld [vmem:[%s4638_s13 + $0x1c8] sm:$0xff] }
  0x2f   : > { %v328_v24 = vpack.c.bf16 %v284_v22, %v283_v21 }
  0x35   : > { %3786 = vmatmul.mubr.msk.bf16.gmra.mxu0 %vm348_vm0, %v307_v27  ;;  %v287_v27 = vld [vmem:[%s4638_s13 + $0x1e0] sm:$0xff] }
  0x36   : > { %3789 = vmatprep.mubr.msk.bf16.mxu0 %vm348_vm0, %v308_v28  ;;  %v288_v28 = vld [vmem:[%s4638_s13 + $0x1e8] sm:$0xff] }
  0x37   : > { %v330_v30 = vpack.c.bf16 %v288_v28, %v287_v27 }
  0x3d   : > { %3790 = vmatmul.mubr.msk.bf16.gmra.mxu0 %vm348_vm0, %v309_v33  ;;  %v331_v33 = vpack.c.bf16 %v290_v32, %v289_v31 }
  0x3e   : > { %3793 = vmatprep.mubr.msk.bf16.mxu0 %vm348_vm0, %v310_v34  ;;  %v332_v34 = vlaneseq }
  0x40   : > { %v4736_v35 = vshrl.u32 %v332_v34, 7 }
  0x42   : > { %6993 = vst [vmem:[#allocation5_spill] sm:$0xff] %v4736_v35  ;;  %v334_v36 = vsub.s32 0, %v4736_v35 }
  0x44   : > { %v4742_v38 = vrot.slane %v299_v37, %v334_v36 }
  0x45   : > { %3794 = vmatmul.mubr.msk.bf16.gmra.mxu0 %vm348_vm0, %v311_v39 }
  0x46   : > { %3797 = vmatprep.mubr.msk.bf16.mxu0 %vm348_vm0, %v312_v40 }
  0x4d   : > { %3798 = vmatmul.mubr.msk.bf16.gmra.mxu0 %vm348_vm0, %v313_v45 }
  0x4e   : > { %3801 = vmatprep.mubr.msk.bf16.mxu0 %vm348_vm0, %v314_v46 }
  0x55   : > { %3802 = vmatmul.mubr.msk.bf16.gmra.mxu0 %vm348_vm0, %v315_v51 }
  0x56   : > { %3805 = vmatprep.mubr.msk.bf16.mxu0 %vm348_vm0, %v316_v52 }
  0x5d   : > { %3806 = vmatmul.mubr.msk.bf16.gmra.mxu0 %vm348_vm0, %v317_v57 }
  0x5e   : > { %3809 = vmatprep.mubr.msk.bf16.mxu0 %vm348_vm0, %v318_v58 }
  0x65   : > { %3810 = vmatmul.mubr.msk.bf16.gmra.mxu0 %vm348_vm0, %v319_v63 }
  0x66   : > { %3813 = vmatprep.mubr.msk.bf16.mxu0 %vm348_vm0, %v320_v0 }
  0x6d   : > { %3814 = vmatmul.mubr.msk.bf16.gmra.mxu0 %vm348_vm0, %v321_v5 }
  0x6e   : > { %3817 = vmatprep.mubr.msk.bf16.mxu0 %vm348_vm0, %v322_v6 }
  0x75   : > { %3818 = vmatmul.mubr.msk.bf16.gmra.mxu0 %vm348_vm0, %v323_v11 }
  0x76   : > { %3821 = vmatprep.mubr.msk.bf16.mxu0 %vm348_vm0, %v324_v12 }
  0x7d   : > { %3822 = vmatmul.mubr.msk.bf16.gmra.mxu0 %vm348_vm0, %v325_v17 }
  0x7e   : > { %3825 = vmatprep.mubr.msk.bf16.mxu0 %vm348_vm0, %v326_v18 }
  0x85   : > { %3826 = vmatmul.mubr.msk.bf16.gmra.mxu0 %vm348_vm0, %v327_v23 }
  0x86   : > { %3829 = vmatprep.mubr.msk.bf16.mxu0 %vm348_vm0, %v328_v24 }
  0x8d   : > { %3830 = vmatmul.mubr.msk.bf16.gmra.mxu0 %vm348_vm0, %v329_v29 }
  0x8e   : > { %3833 = vmatprep.mubr.msk.bf16.mxu0 %vm348_vm0, %v330_v30 }
  0x95   : > { %3834 = vmatmul.mubr.msk.bf16.gmra.mxu0 %vm348_vm0, %v331_v33 }
  0xdd   : > { %v3775_v39 = vpop.f32.mrf.mxu0 }
  0xde   : > { %v4745_v40 = vadd.f32 %v3775_v39, %v4742_v38 }
  0xdf   : > { %v479_v41 = vpop.f32.mrf.mxu0 }
  0xe0   : > { %v4748_v42 = vadd.f32 %v479_v41, %v4742_v38  ;;  %v740_v43 = vsel %vm348_vm0, %v4745_v40, 0.0 }
  0xe1   : > { %741 = vadd.xlane.f32.xlu1 %v740_v43  ;;  %v3776_v44 = vpop.f32.mrf.mxu0 }
  0xe2   : > { %v4753_v45 = vadd.f32 %v3776_v44, %v4742_v38  ;;  %v734_v46 = vsel %vm348_vm0, %v4748_v42, 0.0 }
  0xe3   : > { %v482_v47 = vpop.f32.mrf.mxu0  ;;  %735 = vadd.xlane.f32.xlu0 %v734_v46 }
  0xe4   : > { %v4758_v48 = vadd.f32 %v482_v47, %v4742_v38  ;;  %v743_v49 = vsel %vm348_vm0, %v4753_v45, 0.0 }
  0xe5   : > { %744 = vadd.xlane.f32.xlu1 %v743_v49  ;;  %v3779_v50 = vpop.f32.mrf.mxu0 }
  0xe6   : > { %v4763_v51 = vadd.f32 %v3779_v50, %v4742_v38  ;;  %v737_v52 = vsel %vm348_vm0, %v4758_v48, 0.0 }
  0xe7   : > { %v495_v53 = vpop.f32.mrf.mxu0  ;;  %738 = vadd.xlane.f32.xlu0 %v737_v52 }
  0xe8   : > { %v4768_v55 = vadd.f32 %v495_v53, %v4742_v38  ;;  %v752_v57 = vsel %vm348_vm0, %v4763_v51, 0.0 }
  0xe9   : > { %v3780_v54 = vpop.f32.mrf.mxu0 }
  0xea   : > { %v4771_v56 = vadd.f32 %v3780_v54, %v4742_v38  ;;  %v746_v63 = vsel %vm348_vm0, %v4768_v55, 0.0 }
  0xeb   : > { %v498_v58 = vpop.f32.mrf.mxu0  ;;  %753 = vadd.xlane.f32.xlu0 %v752_v57 }
  0xec   : > { %v4776_v59 = vadd.f32 %v498_v58, %v4742_v38  ;;  %v755_v60 = vsel %vm348_vm0, %v4771_v56, 0.0 }
  0xed   : > { %756 = vadd.xlane.f32.xlu1 %v755_v60  ;;  %v3783_v61 = vpop.f32.mrf.mxu0 }
  0xee   : > { %v4781_v62 = vadd.f32 %v3783_v61, %v4742_v38  ;;  %v749_v1 = vsel %vm348_vm0, %v4776_v59, 0.0 }
  0xef   : > { %v511_v0 = vpop.f32.mrf.mxu0  ;;  %747 = vadd.xlane.f32.xlu0 %v746_v63 }
  0xf0   : > { %v4788_v3 = vadd.f32 %v511_v0, %v4742_v38  ;;  %v764_v5 = vsel %vm348_vm0, %v4781_v62, 0.0 }
  0xf1   : > { %v3784_v2 = vpop.f32.mrf.mxu0  ;;  %750 = vadd.xlane.f32.xlu1 %v749_v1 }
  0xf2   : > { %v4791_v4 = vadd.f32 %v3784_v2, %v4742_v38  ;;  %v758_v11 = vsel %vm348_vm0, %v4788_v3, 0.0 }
  0xf3   : > { %v514_v6 = vpop.f32.mrf.mxu0  ;;  %765 = vadd.xlane.f32.xlu0 %v764_v5 }
  0xf4   : > { %v4796_v7 = vadd.f32 %v514_v6, %v4742_v38  ;;  %v767_v8 = vsel %vm348_vm0, %v4791_v4, 0.0 }
  0xf5   : > { %v3787_v9 = vpop.f32.mrf.mxu0  ;;  %768 = vadd.xlane.f32.xlu1 %v767_v8 }
  0xf6   : > { %v4801_v10 = vadd.f32 %v3787_v9, %v4742_v38  ;;  %v761_v13 = vsel %vm348_vm0, %v4796_v7, 0.0 }
  0xf7   : > { %v527_v12 = vpop.f32.mrf.mxu0  ;;  %759 = vadd.xlane.f32.xlu0 %v758_v11 }
  0xf8   : > { %v4808_v15 = vadd.f32 %v527_v12, %v4742_v38  ;;  %v776_v17 = vsel %vm348_vm0, %v4801_v10, 0.0 }
  0xf9   : > { %v3788_v14 = vpop.f32.mrf.mxu0  ;;  %762 = vadd.xlane.f32.xlu1 %v761_v13 }
  0xfa   : > { %v4811_v16 = vadd.f32 %v3788_v14, %v4742_v38  ;;  %v770_v23 = vsel %vm348_vm0, %v4808_v15, 0.0 }
  0xfb   : > { %v530_v18 = vpop.f32.mrf.mxu0  ;;  %777 = vadd.xlane.f32.xlu0 %v776_v17 }
  0xfc   : > { %v4816_v19 = vadd.f32 %v530_v18, %v4742_v38  ;;  %v779_v20 = vsel %vm348_vm0, %v4811_v16, 0.0 }
  0xfd   : > { %v3791_v21 = vpop.f32.mrf.mxu0  ;;  %780 = vadd.xlane.f32.xlu1 %v779_v20 }
  0xfe   : > { %v4821_v22 = vadd.f32 %v3791_v21, %v4742_v38  ;;  %v773_v25 = vsel %vm348_vm0, %v4816_v19, 0.0 }
  0xff   : > { %v543_v24 = vpop.f32.mrf.mxu0  ;;  %771 = vadd.xlane.f32.xlu0 %v770_v23 }
 0x100   : > { %v4828_v27 = vadd.f32 %v543_v24, %v4742_v38  ;;  %v788_v29 = vsel %vm348_vm0, %v4821_v22, 0.0 }
 0x101   : > { %v3792_v26 = vpop.f32.mrf.mxu0  ;;  %774 = vadd.xlane.f32.xlu1 %v773_v25 }
 0x102   : > { %v4831_v28 = vadd.f32 %v3792_v26, %v4742_v38  ;;  %v782_v36 = vsel %vm348_vm0, %v4828_v27, 0.0 }
 0x103   : > { %v546_v30 = vpop.f32.mrf.mxu0  ;;  %789 = vadd.xlane.f32.xlu0 %v788_v29 }
 0x104   : > { %v4836_v31 = vadd.f32 %v546_v30, %v4742_v38  ;;  %v791_v32 = vsel %vm348_vm0, %v4831_v28, 0.0 }
 0x105   : > { %v3795_v33 = vpop.f32.mrf.mxu0  ;;  %792 = vadd.xlane.f32.xlu1 %v791_v32 }
 0x106   : > { %v4841_v34 = vadd.f32 %v3795_v33, %v4742_v38  ;;  %v785_v39 = vsel %vm348_vm0, %v4836_v31, 0.0 }
 0x107   : > { %v559_v37 = vpop.f32.mrf.mxu0  ;;  %783 = vadd.xlane.f32.xlu0 %v782_v36 }
 0x108   : > { %v4848_v43 = vadd.f32 %v559_v37, %v4742_v38  ;;  %v800_v46 = vsel %vm348_vm0, %v4841_v34, 0.0 }
 0x109   : > { %v3796_v41 = vpop.f32.mrf.mxu0  ;;  %786 = vadd.xlane.f32.xlu1 %v785_v39 }
 0x10a   : > { %v4851_v44 = vadd.f32 %v3796_v41, %v4742_v38  ;;  %v794_v54 = vsel %vm348_vm0, %v4848_v43, 0.0 }
 0x10b   : > { %v562_v47 = vpop.f32.mrf.mxu0  ;;  %801 = vadd.xlane.f32.xlu0 %v800_v46 }
 0x10c   : > { %v4856_v49 = vadd.f32 %v562_v47, %v4742_v38  ;;  %v803_v50 = vsel %vm348_vm0, %v4851_v44, 0.0 }
 0x10d   : > { %v3799_v52 = vpop.f32.mrf.mxu0  ;;  %804 = vadd.xlane.f32.xlu1 %v803_v50 }
 0x10e   : > { %v4861_v53 = vadd.f32 %v3799_v52, %v4742_v38  ;;  %v797_v60 = vsel %vm348_vm0, %v4856_v49, 0.0 }
 0x10f   : > { %v575_v57 = vpop.f32.mrf.mxu0  ;;  %795 = vadd.xlane.f32.xlu0 %v794_v54 }
 0x110   : > { %v4866_v58 = vadd.f32 %v575_v57, %v4742_v38  ;;  %v812_v61 = vsel %vm348_vm0, %v4861_v53, 0.0 }
 0x111   : > { %v3800_v63 = vpop.f32.mrf.mxu0  ;;  %798 = vadd.xlane.f32.xlu1 %v797_v60 }
 0x112   : > { %v4873_v0 = vadd.f32 %v3800_v63, %v4742_v38  ;;  %v806_v6 = vsel %vm348_vm0, %v4866_v58, 0.0 }
 0x113   : > { %v578_v1 = vpop.f32.mrf.mxu0  ;;  %813 = vadd.xlane.f32.xlu0 %v812_v61 }
 0x114   : > { %v4876_v2 = vadd.f32 %v578_v1, %v4742_v38  ;;  %v815_v5 = vsel %vm348_vm0, %v4873_v0, 0.0 }
 0x115   : > { %v3803_v8 = vpop.f32.mrf.mxu0  ;;  %816 = vadd.xlane.f32.xlu1 %v815_v5 }
 0x116   : > { %v4883_v9 = vadd.f32 %v3803_v8, %v4742_v38  ;;  %v809_v11 = vsel %vm348_vm0, %v4876_v2, 0.0 }
 0x117   : > { %v591_v12 = vpop.f32.mrf.mxu0  ;;  %807 = vadd.xlane.f32.xlu0 %v806_v6 }
 0x118   : > { %v4888_v13 = vadd.f32 %v591_v12, %v4742_v38  ;;  %v824_v14 = vsel %vm348_vm0, %v4883_v9, 0.0 }
 0x119   : > { %v3804_v17 = vpop.f32.mrf.mxu0  ;;  %810 = vadd.xlane.f32.xlu1 %v809_v11 }
 0x11a   : > { %v4893_v18 = vadd.f32 %v3804_v17, %v4742_v38  ;;  %v818_v24 = vsel %vm348_vm0, %v4888_v13, 0.0 }
 0x11b   : > { %v594_v20 = vpop.f32.mrf.mxu0  ;;  %825 = vadd.xlane.f32.xlu0 %v824_v14 }
 0x11c   : > { %v4896_v21 = vadd.f32 %v594_v20, %v4742_v38  ;;  %v827_v23 = vsel %vm348_vm0, %v4893_v18, 0.0 }
 0x11d   : > { %v3807_v25 = vpop.f32.mrf.mxu0  ;;  %828 = vadd.xlane.f32.xlu1 %v827_v23 }
 0x11e   : > { %v4903_v26 = vadd.f32 %v3807_v25, %v4742_v38  ;;  %v821_v29 = vsel %vm348_vm0, %v4896_v21, 0.0 }
 0x11f   : > { %v607_v30 = vpop.f32.mrf.mxu0  ;;  %819 = vadd.xlane.f32.xlu0 %v818_v24 }
 0x120   : > { %v4908_v32 = vadd.f32 %v607_v30, %v4742_v38  ;;  %v836_v33 = vsel %vm348_vm0, %v4903_v26, 0.0 }
 0x121   : > { %v3808_v36 = vpop.f32.mrf.mxu0  ;;  %822 = vadd.xlane.f32.xlu1 %v821_v29 }
 0x122   : > { %v4913_v37 = vadd.f32 %v3808_v36, %v4742_v38  ;;  %v830_v47 = vsel %vm348_vm0, %v4908_v32, 0.0 }
 0x123   : > { %v610_v39 = vpop.f32.mrf.mxu0  ;;  %837 = vadd.xlane.f32.xlu0 %v836_v33 }
 0x124   : > { %v4916_v41 = vadd.f32 %v610_v39, %v4742_v38  ;;  %v839_v46 = vsel %vm348_vm0, %v4913_v37, 0.0 }
 0x125   : > { %v3811_v50 = vpop.f32.mrf.mxu0  ;;  %840 = vadd.xlane.f32.xlu1 %v839_v46 }
 0x126   : > { %v4923_v52 = vadd.f32 %v3811_v50, %v4742_v38  ;;  %v833_v54 = vsel %vm348_vm0, %v4916_v41, 0.0 }
 0x127   : > { %v623_v57 = vpop.f32.mrf.mxu0  ;;  %831 = vadd.xlane.f32.xlu0 %v830_v47 }
 0x128   : > { %v4928_v60 = vadd.f32 %v623_v57, %v4742_v38  ;;  %v848_v61 = vsel %vm348_vm0, %v4923_v52, 0.0 }
 0x129   : > { %v3812_v63 = vpop.f32.mrf.mxu0  ;;  %834 = vadd.xlane.f32.xlu1 %v833_v54 }
 0x12a   : > { %v4933_v1 = vadd.f32 %v3812_v63, %v4742_v38  ;;  %v842_v11 = vsel %vm348_vm0, %v4928_v60, 0.0 }
 0x12b   : > { %v626_v5 = vpop.f32.mrf.mxu0  ;;  %849 = vadd.xlane.f32.xlu0 %v848_v61 }
 0x12c   : > { %v4936_v6 = vadd.f32 %v626_v5, %v4742_v38  ;;  %v851_v8 = vsel %vm348_vm0, %v4933_v1, 0.0 }
 0x12d   : > { %v3815_v12 = vpop.f32.mrf.mxu0  ;;  %852 = vadd.xlane.f32.xlu1 %v851_v8 }
 0x12e   : > { %v4943_v14 = vadd.f32 %v3815_v12, %v4742_v38  ;;  %v845_v17 = vsel %vm348_vm0, %v4936_v6, 0.0 }
 0x12f   : > { %v639_v20 = vpop.f32.mrf.mxu0  ;;  %843 = vadd.xlane.f32.xlu0 %v842_v11 }
 0x130   : > { %v4948_v23 = vadd.f32 %v639_v20, %v4742_v38  ;;  %v860_v24 = vsel %vm348_vm0, %v4943_v14, 0.0 }
 0x131   : > { %v3816_v25 = vpop.f32.mrf.mxu0  ;;  %846 = vadd.xlane.f32.xlu1 %v845_v17 }
 0x132   : > { %v4953_v29 = vadd.f32 %v3816_v25, %v4742_v38  ;;  %v854_v39 = vsel %vm348_vm0, %v4948_v23, 0.0 }
 0x133   : > { %v642_v30 = vpop.f32.mrf.mxu0  ;;  %861 = vadd.xlane.f32.xlu0 %v860_v24 }
 0x134   : > { %v4956_v33 = vadd.f32 %v642_v30, %v4742_v38  ;;  %v863_v36 = vsel %vm348_vm0, %v4953_v29, 0.0 }
 0x135   : > { %v3819_v46 = vpop.f32.mrf.mxu0  ;;  %864 = vadd.xlane.f32.xlu1 %v863_v36 }
 0x136   : > { %v4963_v47 = vadd.f32 %v3819_v46, %v4742_v38  ;;  %v857_v50 = vsel %vm348_vm0, %v4956_v33, 0.0 }
 0x137   : > { %v655_v54 = vpop.f32.mrf.mxu0  ;;  %855 = vadd.xlane.f32.xlu0 %v854_v39 }
 0x138   : > { %v4968_v57 = vadd.f32 %v655_v54, %v4742_v38  ;;  %v872_v61 = vsel %vm348_vm0, %v4963_v47, 0.0 }
 0x139   : > { %v3820_v63 = vpop.f32.mrf.mxu0  ;;  %858 = vadd.xlane.f32.xlu1 %v857_v50 }
 0x13a   : > { %v4973_v5 = vadd.f32 %v3820_v63, %v4742_v38  ;;  %v866_v17 = vsel %vm348_vm0, %v4968_v57, 0.0 }
 0x13b   : > { %v658_v8 = vpop.f32.mrf.mxu0  ;;  %873 = vadd.xlane.f32.xlu0 %v872_v61 }
 0x13c   : > { %v4976_v11 = vadd.f32 %v658_v8, %v4742_v38  ;;  %v875_v12 = vsel %vm348_vm0, %v4973_v5, 0.0 }
 0x13d   : > { %v3823_v20 = vpop.f32.mrf.mxu0  ;;  %876 = vadd.xlane.f32.xlu1 %v875_v12 }
 0x13e   : > { %v4983_v24 = vadd.f32 %v3823_v20, %v4742_v38  ;;  %v869_v25 = vsel %vm348_vm0, %v4976_v11, 0.0 }
 0x13f   : > { %v671_v30 = vpop.f32.mrf.mxu0  ;;  %867 = vadd.xlane.f32.xlu0 %v866_v17 }
 0x140   : > { %6994 = vst [vmem:[#allocation6_spill] sm:$0xff] %v4983_v24  ;;  %v4988_v36 = vadd.f32 %v671_v30, %v4742_v38  ;;  %v884_v39 = vsel %vm348_vm0, %v4983_v24, 0.0 }
 0x141   : > { %v3824_v46 = vpop.f32.mrf.mxu0  ;;  %870 = vadd.xlane.f32.xlu1 %v869_v25 }
 0x142   : > { %6995 = vst [vmem:[#allocation7_spill] sm:$0xff] %v4988_v36  ;;  %v4993_v50 = vadd.f32 %v3824_v46, %v4742_v38  ;;  %v878_v8 = vsel %vm348_vm0, %v4988_v36, 0.0 }
 0x143   : > { %v674_v54 = vpop.f32.mrf.mxu0  ;;  %885 = vadd.xlane.f32.xlu0 %v884_v39 }
 0x144   : > { %6996 = vst [vmem:[#allocation8_spill] sm:$0xff] %v4993_v50  ;;  %v4996_v61 = vadd.f32 %v674_v54, %v4742_v38  ;;  %v887_v63 = vsel %vm348_vm0, %v4993_v50, 0.0 }
 0x145   : > { %v3827_v12 = vpop.f32.mrf.mxu0  ;;  %888 = vadd.xlane.f32.xlu1 %v887_v63 }
 0x146   : > { %6997 = vst [vmem:[#allocation9_spill] sm:$0xff] %v4996_v61  ;;  %v5003_v17 = vadd.f32 %v3827_v12, %v4742_v38  ;;  %v881_v20 = vsel %vm348_vm0, %v4996_v61, 0.0 }
 0x147   : > { %v687_v25 = vpop.f32.mrf.mxu0  ;;  %879 = vadd.xlane.f32.xlu0 %v878_v8 }
 0x148   : > { %6998 = vst [vmem:[#allocation10_spill] sm:$0xff] %v5003_v17  ;;  %v5008_v30 = vadd.f32 %v687_v25, %v4742_v38  ;;  %v896_v39 = vsel %vm348_vm0, %v5003_v17, 0.0 }
 0x149   : > { %v3828_v46 = vpop.f32.mrf.mxu0  ;;  %882 = vadd.xlane.f32.xlu1 %v881_v20 }
 0x14a   : > { %6999 = vst [vmem:[#allocation11_spill] sm:$0xff] %v5008_v30  ;;  %v5013_v54 = vadd.f32 %v3828_v46, %v4742_v38  ;;  %v890_v8 = vsel %vm348_vm0, %v5008_v30, 0.0 }
 0x14b   : > { %v690_v63 = vpop.f32.mrf.mxu0  ;;  %897 = vadd.xlane.f32.xlu0 %v896_v39 }
 0x14c   : > { %7000 = vst [vmem:[#allocation12_spill] sm:$0xff] %v5013_v54  ;;  %v5016_v12 = vadd.f32 %v690_v63, %v4742_v38  ;;  %v899_v35 = vsel %vm348_vm0, %v5013_v54, 0.0 }
 0x14d   : > { %v3831_v25 = vpop.f32.mrf.mxu0  ;;  %900 = vadd.xlane.f32.xlu1 %v899_v35 }
 0x14e   : > { %7001 = vst [vmem:[#allocation13_spill] sm:$0xff] %v5016_v12  ;;  %v5023_v17 = vadd.f32 %v3831_v25, %v4742_v38  ;;  %v893_v20 = vsel %vm348_vm0, %v5016_v12, 0.0 }
 0x14f   : > { %v703_v46 = vpop.f32.mrf.mxu0  ;;  %891 = vadd.xlane.f32.xlu0 %v890_v8 }
 0x150   : > { %7002 = vst [vmem:[#allocation14_spill] sm:$0xff] %v5023_v17  ;;  %v5028_v39 = vadd.f32 %v703_v46, %v4742_v38  ;;  %v908_v63 = vsel %vm348_vm0, %v5023_v17, 0.0 }
 0x151   : > { %v3832_v54 = vpop.f32.mrf.mxu0  ;;  %894 = vadd.xlane.f32.xlu1 %v893_v20 }
 0x152   : > { %7003 = vst [vmem:[#allocation15_spill] sm:$0xff] %v5028_v39  ;;  %v5033_v30 = vadd.f32 %v3832_v54, %v4742_v38  ;;  %v902_v8 = vsel %vm348_vm0, %v5028_v39, 0.0 }
 0x153   : > { %v706_v35 = vpop.f32.mrf.mxu0  ;;  %909 = vadd.xlane.f32.xlu0 %v908_v63 }
 0x154   : > { %7004 = vst [vmem:[#allocation16_spill] sm:$0xff] %v5033_v30  ;;  %v5036_v25 = vadd.f32 %v706_v35, %v4742_v38  ;;  %v911_v12 = vsel %vm348_vm0, %v5033_v30, 0.0 }
 0x155   : > { %v5042_v46 = vpop.f32.mrf.mxu0  ;;  %912 = vadd.xlane.f32.xlu1 %v911_v12 }
 0x156   : > { %7005 = vst [vmem:[#allocation17_spill] sm:$0xff] %v5036_v25  ;;  %v905_v20 = vsel %vm348_vm0, %v5036_v25, 0.0 }
 0x157   : > { %v719_v17 = vpop.f32.mrf.mxu0  ;;  %903 = vadd.xlane.f32.xlu0 %v902_v8 }
 0x158   : > { %v5047_v54 = vadd.f32 %v719_v17, %v4742_v38 }
 0x159   : > { %v5049_v63 = vpop.f32.mrf.mxu0  ;;  %906 = vadd.xlane.f32.xlu1 %v905_v20 }
 0x15a   : > { %7006 = vst [vmem:[#allocation18_spill] sm:$0xff] %v5047_v54  ;;  %v914_v35 = vsel %vm348_vm0, %v5047_v54, 0.0 }
 0x15b   : > { %v722_v30 = vpop.f32.mrf.mxu0  ;;  %915 = vadd.xlane.f32.xlu0 %v914_v35 }
 0x15c   : > { %v5054_v39 = vadd.f32 %v722_v30, %v4742_v38 }
 0x15e   : > { %v917_v12 = vsel %vm348_vm0, %v5054_v39, 0.0 }
 0x15f   : > { %918 = vadd.xlane.f32.xlu1 %v917_v12 }
 0x16a   : > { %v742_v25 = vpop.xlane.xlu1 %741 }
 0x16b   : > { %v929_v8 = vmul.f32 0.03125, %v742_v25 }
 0x16c   : > { %v736_v61 = vpop.xlane.xlu0 %735 }
 0x16d   : > { %v5059_v17 = vsub.f32 %v4745_v40, %v929_v8  ;;  %v927_v50 = vmul.f32 0.03125, %v736_v61 }
 0x16e   : > { %v745_v20 = vpop.xlane.xlu1 %744 }
 0x16f   : > { %v5062_v36 = vsub.f32 %v4748_v42, %v927_v50  ;;  %v930_v54 = vmul.f32 0.03125, %v745_v20  ;;  %v1057_v30 = vmul.f32 %v5059_v17, %v5059_v17 }
 0x170   : > { %v739_v35 = vpop.xlane.xlu0 %738 }
 0x171   : > { %7007 = vst [vmem:[#allocation19_spill] sm:$0xff] %v5062_v36  ;;  %v5067_v24 = vsub.f32 %v4753_v45, %v930_v54  ;;  %v928_v12 = vmul.f32 0.03125, %v739_v35  ;;  %v1125_v25 = vsel %vm348_vm0, %v1057_v30, 0.0  ;;  %v1055_v40 = vmul.f32 %v5062_v36, %v5062_v36 }
 0x172   : > { %1126 = vadd.xlane.f32.xlu0 %v1125_v25 }
 0x173   : > { %v5073_v61 = vsub.f32 %v4758_v48, %v928_v12  ;;  %v1058_v42 = vmul.f32 %v5067_v24, %v5067_v24  ;;  %v1119_v45 = vsel %vm348_vm0, %v1055_v40, 0.0 }
 0x174   : > { %v754_v50 = vpop.xlane.xlu0 %753 }
 0x175   : > { %7008 = vst [vmem:[#allocation20_spill] sm:$0xff] %v5073_v61  ;;  %v933_v8 = vmul.f32 0.03125, %v754_v50  ;;  %v1128_v20 = vsel %vm348_vm0, %v1058_v42, 0.0  ;;  %v1056_v54 = vmul.f32 %v5073_v61, %v5073_v61 }
 0x176   : > { %v757_v30 = vpop.xlane.xlu1 %756  ;;  %1129 = vadd.xlane.f32.xlu1 %v1128_v20  ;;  %1120 = vadd.xlane.f32.xlu0 %v1119_v45 }
 0x177   : > { %v5082_v35 = vsub.f32 %v4763_v51, %v933_v8  ;;  %v934_v48 = vmul.f32 0.03125, %v757_v30  ;;  %v1122_v50 = vsel %vm348_vm0, %v1056_v54, 0.0 }
 0x178   : > { %v748_v12 = vpop.xlane.xlu0 %747 }
 0x179   : > { %v5085_v25 = vsub.f32 %v4771_v56, %v934_v48  ;;  %v931_v36 = vmul.f32 0.03125, %v748_v12  ;;  %v1061_v40 = vmul.f32 %v5082_v35, %v5082_v35 }
 0x17a   : > { %v751_v42 = vpop.xlane.xlu1 %750  ;;  %1123 = vadd.xlane.f32.xlu1 %v1122_v50 }
 0x17b   : > { %v5091_v61 = vsub.f32 %v4768_v55, %v931_v36  ;;  %v932_v20 = vmul.f32 0.03125, %v751_v42  ;;  %v1137_v51 = vsel %vm348_vm0, %v1061_v40, 0.0  ;;  %v1062_v8 = vmul.f32 %v5085_v25, %v5085_v25 }
 0x17c   : > { %1138 = vadd.xlane.f32.xlu0 %v1137_v51  ;;  %v766_v56 = vpop.xlane.xlu0 %765 }
 0x17d   : > { %v5097_v45 = vsub.f32 %v4776_v59, %v932_v20  ;;  %v937_v54 = vmul.f32 0.03125, %v766_v56  ;;  %v1140_v30 = vsel %vm348_vm0, %v1062_v8, 0.0  ;;  %v1059_v48 = vmul.f32 %v5091_v61, %v5091_v61 }
 0x17e   : > { %v769_v12 = vpop.xlane.xlu1 %768  ;;  %1141 = vadd.xlane.f32.xlu1 %v1140_v30 }
 0x17f   : > { %v5103_v55 = vsub.f32 %v4781_v62, %v937_v54  ;;  %v938_v36 = vmul.f32 0.03125, %v769_v12  ;;  %v1131_v50 = vsel %vm348_vm0, %v1059_v48, 0.0  ;;  %v1060_v40 = vmul.f32 %v5097_v45, %v5097_v45 }
 0x180   : > { %1132 = vadd.xlane.f32.xlu0 %v1131_v50  ;;  %v760_v59 = vpop.xlane.xlu0 %759 }
 0x181   : > { %v5109_v42 = vsub.f32 %v4791_v4, %v938_v36  ;;  %v935_v20 = vmul.f32 0.03125, %v760_v59  ;;  %v1134_v51 = vsel %vm348_vm0, %v1060_v40, 0.0  ;;  %v1065_v8 = vmul.f32 %v5103_v55, %v5103_v55 }
 0x182   : > { %v763_v56 = vpop.xlane.xlu1 %762  ;;  %1135 = vadd.xlane.f32.xlu1 %v1134_v51 }
 0x183   : > { %v5115_v62 = vsub.f32 %v4788_v3, %v935_v20  ;;  %v936_v54 = vmul.f32 0.03125, %v763_v56  ;;  %v1149_v30 = vsel %vm348_vm0, %v1065_v8, 0.0  ;;  %v1066_v48 = vmul.f32 %v5109_v42, %v5109_v42 }
 0x184   : > { %1150 = vadd.xlane.f32.xlu0 %v1149_v30  ;;  %v778_v4 = vpop.xlane.xlu0 %777 }
 0x185   : > { %v5121_v12 = vsub.f32 %v4796_v7, %v936_v54  ;;  %v941_v36 = vmul.f32 0.03125, %v778_v4  ;;  %v1152_v50 = vsel %vm348_vm0, %v1066_v48, 0.0  ;;  %v1063_v40 = vmul.f32 %v5115_v62, %v5115_v62 }
 0x186   : > { %v781_v59 = vpop.xlane.xlu1 %780  ;;  %1153 = vadd.xlane.f32.xlu1 %v1152_v50 }
 0x187   : > { %v5127_v3 = vsub.f32 %v4801_v10, %v941_v36  ;;  %v942_v20 = vmul.f32 0.03125, %v781_v59  ;;  %v1143_v51 = vsel %vm348_vm0, %v1063_v40, 0.0  ;;  %v1064_v8 = vmul.f32 %v5121_v12, %v5121_v12 }
 0x188   : > { %1144 = vadd.xlane.f32.xlu0 %v1143_v51  ;;  %v772_v7 = vpop.xlane.xlu0 %771 }
 0x189   : > { %v5133_v56 = vsub.f32 %v4811_v16, %v942_v20  ;;  %v939_v54 = vmul.f32 0.03125, %v772_v7  ;;  %v1146_v30 = vsel %vm348_vm0, %v1064_v8, 0.0  ;;  %v1069_v48 = vmul.f32 %v5127_v3, %v5127_v3 }
 0x18a   : > { %v775_v4 = vpop.xlane.xlu1 %774  ;;  %1147 = vadd.xlane.f32.xlu1 %v1146_v30 }
 0x18b   : > { %v5139_v10 = vsub.f32 %v4808_v15, %v939_v54  ;;  %v940_v36 = vmul.f32 0.03125, %v775_v4  ;;  %v1161_v50 = vsel %vm348_vm0, %v1069_v48, 0.0  ;;  %v1070_v40 = vmul.f32 %v5133_v56, %v5133_v56 }
 0x18c   : > { %1162 = vadd.xlane.f32.xlu0 %v1161_v50  ;;  %v790_v16 = vpop.xlane.xlu0 %789 }
 0x18d   : > { %v5145_v59 = vsub.f32 %v4816_v19, %v940_v36  ;;  %v945_v20 = vmul.f32 0.03125, %v790_v16  ;;  %v1164_v51 = vsel %vm348_vm0, %v1070_v40, 0.0  ;;  %v1067_v8 = vmul.f32 %v5139_v10, %v5139_v10 }
 0x18e   : > { %v793_v7 = vpop.xlane.xlu1 %792  ;;  %1165 = vadd.xlane.f32.xlu1 %v1164_v51 }
 0x18f   : > { %v5151_v15 = vsub.f32 %v4821_v22, %v945_v20  ;;  %v946_v54 = vmul.f32 0.03125, %v793_v7  ;;  %v1155_v30 = vsel %vm348_vm0, %v1067_v8, 0.0  ;;  %v1068_v48 = vmul.f32 %v5145_v59, %v5145_v59 }
 0x190   : > { %1156 = vadd.xlane.f32.xlu0 %v1155_v30  ;;  %v784_v19 = vpop.xlane.xlu0 %783 }
 0x191   : > { %v5157_v4 = vsub.f32 %v4831_v28, %v946_v54  ;;  %v943_v36 = vmul.f32 0.03125, %v784_v19  ;;  %v1158_v50 = vsel %vm348_vm0, %v1068_v48, 0.0  ;;  %v1073_v40 = vmul.f32 %v5151_v15, %v5151_v15 }
 0x192   : > { %v787_v16 = vpop.xlane.xlu1 %786  ;;  %1159 = vadd.xlane.f32.xlu1 %v1158_v50 }
 0x193   : > { %v5163_v22 = vsub.f32 %v4828_v27, %v943_v36  ;;  %v944_v20 = vmul.f32 0.03125, %v787_v16  ;;  %v1173_v51 = vsel %vm348_vm0, %v1073_v40, 0.0  ;;  %v1074_v8 = vmul.f32 %v5157_v4, %v5157_v4 }
 0x194   : > { %1174 = vadd.xlane.f32.xlu0 %v1173_v51  ;;  %v802_v28 = vpop.xlane.xlu0 %801 }
 0x195   : > { %v5169_v7 = vsub.f32 %v4836_v31, %v944_v20  ;;  %v949_v54 = vmul.f32 0.03125, %v802_v28  ;;  %v1176_v30 = vsel %vm348_vm0, %v1074_v8, 0.0  ;;  %v1071_v48 = vmul.f32 %v5163_v22, %v5163_v22 }
 0x196   : > { %v805_v19 = vpop.xlane.xlu1 %804  ;;  %1177 = vadd.xlane.f32.xlu1 %v1176_v30 }
 0x197   : > { %v5175_v27 = vsub.f32 %v4841_v34, %v949_v54  ;;  %v950_v36 = vmul.f32 0.03125, %v805_v19  ;;  %v1167_v50 = vsel %vm348_vm0, %v1071_v48, 0.0  ;;  %v1072_v40 = vmul.f32 %v5169_v7, %v5169_v7 }
 0x198   : > { %1168 = vadd.xlane.f32.xlu0 %v1167_v50  ;;  %v796_v31 = vpop.xlane.xlu0 %795 }
 0x199   : > { %v5181_v16 = vsub.f32 %v4851_v44, %v950_v36  ;;  %v947_v20 = vmul.f32 0.03125, %v796_v31  ;;  %v1170_v51 = vsel %vm348_vm0, %v1072_v40, 0.0  ;;  %v1077_v8 = vmul.f32 %v5175_v27, %v5175_v27 }
 0x19a   : > { %v799_v28 = vpop.xlane.xlu1 %798  ;;  %1171 = vadd.xlane.f32.xlu1 %v1170_v51 }
 0x19b   : > { %v5187_v34 = vsub.f32 %v4848_v43, %v947_v20  ;;  %v948_v54 = vmul.f32 0.03125, %v799_v28  ;;  %v1185_v30 = vsel %vm348_vm0, %v1077_v8, 0.0  ;;  %v1078_v48 = vmul.f32 %v5181_v16, %v5181_v16 }
 0x19c   : > { %1186 = vadd.xlane.f32.xlu0 %v1185_v30  ;;  %v814_v44 = vpop.xlane.xlu0 %813  ;;  %v5200_v43 = vadd.f32 %v5042_v46, %v4742_v38  ;;  %v5207_v8 = vadd.f32 %v5049_v63, %v4742_v38  ;;  %v3966_v38 = vld [vmem:[%s6889_s1 + $0x18] sm:$0xff]  }
 0x19d   : > { %v5193_v19 = vsub.f32 %v4856_v49, %v948_v54  ;;  %v1188_v36 = vsel %vm348_vm0, %v1078_v48, 0.0  ;;  %v1075_v50 = vmul.f32 %v5187_v34, %v5187_v34  ;;  %v953_v31 = vmul.f32 0.03125, %v814_v44  ;;  %3837 = vmatprep.subr.bf16.mxu1 %v3966_v38 }
 0x19e   : > { %v817_v40 = vpop.xlane.xlu1 %816  ;;  %1189 = vadd.xlane.f32.xlu1 %v1188_v36  ;;  %3838 = vmatpush3.bf16.msra.mxu1 %v3966_v38 }
 0x19f   : > { %v1179_v20 = vsel %vm348_vm0, %v1075_v50, 0.0  ;;  %v1076_v51 = vmul.f32 %v5193_v19, %v5193_v19  ;;  %v954_v28 = vmul.f32 0.03125, %v817_v40  ;;  %v5211_v46 = vsub.f32 %v4861_v53, %v953_v31 }
 0x1a0   : > { %1180 = vadd.xlane.f32.xlu0 %v1179_v20  ;;  %v808_v49 = vpop.xlane.xlu0 %807  ;;  %v920_v50 = vsel %vm348_vm0, %v5200_v43, 0.0  ;;  %v923_v53 = vsel %vm348_vm0, %v5207_v8, 0.0 }
 0x1a1   : > { %v951_v54 = vmul.f32 0.03125, %v808_v49  ;;  %v1182_v30 = vsel %vm348_vm0, %v1076_v51, 0.0  ;;  %v5222_v63 = vsub.f32 %v4873_v0, %v954_v28  ;;  %v1081_v0 = vmul.f32 %v5211_v46, %v5211_v46  ;;  %v3967_v28 = vld [vmem:[%s6889_s1 + $0x10] sm:$0xff]  }
 0x1a2   : > { %v811_v48 = vpop.xlane.xlu1 %810  ;;  %1183 = vadd.xlane.f32.xlu1 %v1182_v30  ;;  %3839 = vmatprep.subr.bf16.mxu1 %v3967_v28 }
 0x1a3   : > { %v5214_v44 = vsub.f32 %v4866_v58, %v951_v54  ;;  %v952_v36 = vmul.f32 0.03125, %v811_v48  ;;  %3840 = vmatpush3.bf16.msra.mxu1 %v3967_v28 }
 0x1a4   : > { %921 = vadd.xlane.f32.xlu0 %v920_v50  ;;  %v826_v20 = vpop.xlane.xlu0 %825  ;;  %v1082_v50 = vmul.f32 %v5222_v63, %v5222_v63 }
 0x1a5   : > { %v5225_v40 = vsub.f32 %v4876_v2, %v952_v36  ;;  %v1079_v58 = vmul.f32 %v5214_v44, %v5214_v44  ;;  %v957_v51 = vmul.f32 0.03125, %v826_v20 }
 0x1a6   : > { %v829_v31 = vpop.xlane.xlu1 %828  ;;  %924 = vadd.xlane.f32.xlu1 %v923_v53 }
 0x1a7   : > { %v1191_v49 = vsel %vm348_vm0, %v1079_v58, 0.0  ;;  %v1080_v54 = vmul.f32 %v5225_v40, %v5225_v40  ;;  %v958_v30 = vmul.f32 0.03125, %v829_v31  ;;  %v5243_v53 = vsub.f32 %v4883_v9, %v957_v51 }
 0x1a8   : > { %1192 = vadd.xlane.f32.xlu0 %v1191_v49  ;;  %v820_v2 = vpop.xlane.xlu0 %819  ;;  %v1197_v49 = vsel %vm348_vm0, %v1081_v0, 0.0 }
 0x1a9   : > { %v955_v48 = vmul.f32 0.03125, %v820_v2  ;;  %v1194_v36 = vsel %vm348_vm0, %v1080_v54, 0.0  ;;  %v5250_v54 = vsub.f32 %v4893_v18, %v958_v30  ;;  %v1085_v18 = vmul.f32 %v5243_v53, %v5243_v53 }
 0x1aa   : > { %v823_v20 = vpop.xlane.xlu1 %822  ;;  %1195 = vadd.xlane.f32.xlu1 %v1194_v36  ;;  %v1200_v36 = vsel %vm348_vm0, %v1082_v50, 0.0 }
 0x1ab   : > { %v5246_v38 = vsub.f32 %v4888_v13, %v955_v48  ;;  %v956_v58 = vmul.f32 0.03125, %v823_v20  ;;  %v1086_v20 = vmul.f32 %v5250_v54, %v5250_v54 }
 0x1ac   : > { %1198 = vadd.xlane.f32.xlu0 %v1197_v49  ;;  %v838_v31 = vpop.xlane.xlu0 %837 }
 0x1ad   : > { %v5253_v2 = vsub.f32 %v4896_v21, %v956_v58  ;;  %v1083_v9 = vmul.f32 %v5246_v38, %v5246_v38  ;;  %v961_v13 = vmul.f32 0.03125, %v838_v31 }
 0x1ae   : > { %v841_v51 = vpop.xlane.xlu1 %840  ;;  %1201 = vadd.xlane.f32.xlu1 %v1200_v36 }
 0x1af   : > { %v1203_v48 = vsel %vm348_vm0, %v1083_v9, 0.0  ;;  %v1084_v0 = vmul.f32 %v5253_v2, %v5253_v2  ;;  %v962_v21 = vmul.f32 0.03125, %v841_v51  ;;  %v5267_v49 = vsub.f32 %v4903_v26, %v961_v13 }
 0x1b0   : > { %1204 = vadd.xlane.f32.xlu0 %v1203_v48  ;;  %v832_v28 = vpop.xlane.xlu0 %831  ;;  %v1209_v9 = vsel %vm348_vm0, %v1085_v18, 0.0 }
 0x1b1   : > { %v959_v30 = vmul.f32 0.03125, %v832_v28  ;;  %v1206_v50 = vsel %vm348_vm0, %v1084_v0, 0.0  ;;  %v5274_v51 = vsub.f32 %v4913_v37, %v962_v21  ;;  %v1212_v28 = vsel %vm348_vm0, %v1086_v20, 0.0 }
 0x1b2   : > { %v835_v58 = vpop.xlane.xlu1 %834  ;;  %1207 = vadd.xlane.f32.xlu1 %v1206_v50  ;;  %v1089_v37 = vmul.f32 %v5267_v49, %v5267_v49 }
 0x1b3   : > { %v5270_v31 = vsub.f32 %v4908_v32, %v959_v30  ;;  %v960_v36 = vmul.f32 0.03125, %v835_v58  ;;  %v1090_v58 = vmul.f32 %v5274_v51, %v5274_v51 }
 0x1b4   : > { %1210 = vadd.xlane.f32.xlu0 %v1209_v9  ;;  %v850_v48 = vpop.xlane.xlu0 %849 }
 0x1b5   : > { %v5277_v0 = vsub.f32 %v4916_v41, %v960_v36  ;;  %v1087_v26 = vmul.f32 %v5270_v31, %v5270_v31  ;;  %v965_v32 = vmul.f32 0.03125, %v850_v48 }
 0x1b6   : > { %v853_v13 = vpop.xlane.xlu1 %852  ;;  %1213 = vadd.xlane.f32.xlu1 %v1212_v28 }
 0x1b7   : > { %v1215_v30 = vsel %vm348_vm0, %v1087_v26, 0.0  ;;  %v1088_v18 = vmul.f32 %v5277_v0, %v5277_v0  ;;  %v966_v41 = vmul.f32 0.03125, %v853_v13  ;;  %v5291_v9 = vsub.f32 %v4923_v52, %v965_v32 }
 0x1b8   : > { %1216 = vadd.xlane.f32.xlu0 %v1215_v30  ;;  %v844_v21 = vpop.xlane.xlu0 %843  ;;  %v1221_v26 = vsel %vm348_vm0, %v1089_v37, 0.0 }
 0x1b9   : > { %v963_v50 = vmul.f32 0.03125, %v844_v21  ;;  %v1218_v20 = vsel %vm348_vm0, %v1088_v18, 0.0  ;;  %v5298_v13 = vsub.f32 %v4933_v1, %v966_v41  ;;  %v1224_v21 = vsel %vm348_vm0, %v1090_v58, 0.0 }
 0x1ba   : > { %v847_v36 = vpop.xlane.xlu1 %846  ;;  %1219 = vadd.xlane.f32.xlu1 %v1218_v20  ;;  %v1093_v1 = vmul.f32 %v5291_v9, %v5291_v9 }
 0x1bb   : > { %v5294_v48 = vsub.f32 %v4928_v60, %v963_v50  ;;  %v964_v28 = vmul.f32 0.03125, %v847_v36  ;;  %v1094_v36 = vmul.f32 %v5298_v13, %v5298_v13 }
 0x1bc   : > { %1222 = vadd.xlane.f32.xlu0 %v1221_v26  ;;  %v862_v30 = vpop.xlane.xlu0 %861 }
 0x1bd   : > { %v5301_v18 = vsub.f32 %v4936_v6, %v964_v28  ;;  %v1091_v52 = vmul.f32 %v5294_v48, %v5294_v48  ;;  %v969_v60 = vmul.f32 0.03125, %v862_v30 }
 0x1be   : > { %v865_v32 = vpop.xlane.xlu1 %864  ;;  %1225 = vadd.xlane.f32.xlu1 %v1224_v21 }
 0x1bf   : > { %v1227_v50 = vsel %vm348_vm0, %v1091_v52, 0.0  ;;  %v1092_v37 = vmul.f32 %v5301_v18, %v5301_v18  ;;  %v970_v6 = vmul.f32 0.03125, %v865_v32  ;;  %v5315_v26 = vsub.f32 %v4943_v14, %v969_v60 }
 0x1c0   : > { %1228 = vadd.xlane.f32.xlu0 %v1227_v50  ;;  %v856_v41 = vpop.xlane.xlu0 %855  ;;  %v1233_v52 = vsel %vm348_vm0, %v1093_v1, 0.0 }
 0x1c1   : > { %v967_v20 = vmul.f32 0.03125, %v856_v41  ;;  %v1230_v58 = vsel %vm348_vm0, %v1092_v37, 0.0  ;;  %v5322_v32 = vsub.f32 %v4953_v29, %v970_v6  ;;  %v1236_v41 = vsel %vm348_vm0, %v1094_v36, 0.0 }
 0x1c2   : > { %v859_v28 = vpop.xlane.xlu1 %858  ;;  %1231 = vadd.xlane.f32.xlu1 %v1230_v58  ;;  %v1097_v29 = vmul.f32 %v5315_v26, %v5315_v26 }
 0x1c3   : > { %v5318_v30 = vsub.f32 %v4948_v23, %v967_v20  ;;  %v968_v21 = vmul.f32 0.03125, %v859_v28  ;;  %7009 = vst [vmem:[#allocation21_spill] sm:$0xff] %v5322_v32  ;;  %v1098_v28 = vmul.f32 %v5322_v32, %v5322_v32  ;;  %v7043_v32 = vld [vmem:[#allocation20_spill] sm:$0xff] }
 0x1c4   : > { %1234 = vadd.xlane.f32.xlu0 %v1233_v52  ;;  %v874_v50 = vpop.xlane.xlu0 %873 }
 0x1c5   : > { %v5325_v37 = vsub.f32 %v4956_v33, %v968_v21  ;;  %v1095_v14 = vmul.f32 %v5318_v30, %v5318_v30  ;;  %v973_v23 = vmul.f32 0.03125, %v874_v50 }
 0x1c6   : > { %v877_v60 = vpop.xlane.xlu1 %876  ;;  %1237 = vadd.xlane.f32.xlu1 %v1236_v41 }
 0x1c7   : > { %v1239_v20 = vsel %vm348_vm0, %v1095_v14, 0.0  ;;  %v1096_v1 = vmul.f32 %v5325_v37, %v5325_v37  ;;  %v974_v33 = vmul.f32 0.03125, %v877_v60  ;;  %v5339_v52 = vsub.f32 %v4963_v47, %v973_v23 }
 0x1c8   : > { %1240 = vadd.xlane.f32.xlu0 %v1239_v20  ;;  %v868_v6 = vpop.xlane.xlu0 %867  ;;  %v1245_v14 = vsel %vm348_vm0, %v1097_v29, 0.0 }
 0x1c9   : > { %v971_v58 = vmul.f32 0.03125, %v868_v6  ;;  %v1242_v36 = vsel %vm348_vm0, %v1096_v1, 0.0  ;;  %7010 = vst [vmem:[#allocation22_spill] sm:$0xff] %v5339_v52  ;;  %v5346_v60 = vsub.f32 %v4973_v5, %v974_v33  ;;  %v1248_v6 = vsel %vm348_vm0, %v1098_v28, 0.0 }
 0x1ca   : > { %v871_v21 = vpop.xlane.xlu1 %870  ;;  %1243 = vadd.xlane.f32.xlu1 %v1242_v36  ;;  %v1101_v5 = vmul.f32 %v5339_v52, %v5339_v52 }
 0x1cb   : > { %v5342_v50 = vsub.f32 %v4968_v57, %v971_v58  ;;  %v972_v41 = vmul.f32 0.03125, %v871_v21  ;;  %7012 = vst [vmem:[#allocation24_spill] sm:$0xff] %v5346_v60  ;;  %v1102_v21 = vmul.f32 %v5346_v60, %v5346_v60 }
 0x1cc   : > { %1246 = vadd.xlane.f32.xlu0 %v1245_v14  ;;  %v886_v20 = vpop.xlane.xlu0 %885  ;;  %v7014_v14 = vld [vmem:[#allocation6_spill] sm:$0xff]  ;;  %v1257_v52 = vsel %vm348_vm0, %v1101_v5, 0.0 }
 0x1cd   : > { %7011 = vst [vmem:[#allocation23_spill] sm:$0xff] %v5342_v50  ;;  %v5349_v1 = vsub.f32 %v4976_v11, %v972_v41  ;;  %v1099_v47 = vmul.f32 %v5342_v50, %v5342_v50  ;;  %v977_v57 = vmul.f32 0.03125, %v886_v20  ;;  %v1260_v60 = vsel %vm348_vm0, %v1102_v21, 0.0 }
 0x1ce   : > { %v889_v23 = vpop.xlane.xlu1 %888  ;;  %1249 = vadd.xlane.f32.xlu1 %v1248_v6  ;;  %v7016_v6 = vld [vmem:[#allocation7_spill] sm:$0xff] }
 0x1cf   : > { %7013 = vst [vmem:[#allocation25_spill] sm:$0xff] %v5349_v1  ;;  %v1251_v58 = vsel %vm348_vm0, %v1099_v47, 0.0  ;;  %v1100_v29 = vmul.f32 %v5349_v1, %v5349_v1  ;;  %v978_v11 = vmul.f32 0.03125, %v889_v23  ;;  %v5363_v20 = vsub.f32 %v7014_v14, %v977_v57  ;;  %v7018_v23 = vld [vmem:[#allocation8_spill] sm:$0xff] }
 0x1d0   : > { %1252 = vadd.xlane.f32.xlu0 %v1251_v58  ;;  %v880_v33 = vpop.xlane.xlu0 %879 }
 0x1d1   : > { %v975_v36 = vmul.f32 0.03125, %v880_v33  ;;  %v1254_v28 = vsel %vm348_vm0, %v1100_v29, 0.0  ;;  %7015 = vst [vmem:[#allocation6_spill] sm:$0xff] %v5363_v20  ;;  %v5370_v33 = vsub.f32 %v7018_v23, %v978_v11  ;;  %v7020_v29 = vld [vmem:[#allocation9_spill] sm:$0xff]  ;;  %v1105_v5 = vmul.f32 %v5363_v20, %v5363_v20 }
 0x1d2   : > { %v883_v41 = vpop.xlane.xlu1 %882  ;;  %1255 = vadd.xlane.f32.xlu1 %v1254_v28 }
 0x1d3   : > { %v5366_v47 = vsub.f32 %v7016_v6, %v975_v36  ;;  %v976_v1 = vmul.f32 0.03125, %v883_v41  ;;  %7019 = vst [vmem:[#allocation8_spill] sm:$0xff] %v5370_v33  ;;  %v1106_v6 = vmul.f32 %v5370_v33, %v5370_v33  ;;  %v1269_v20 = vsel %vm348_vm0, %v1105_v5, 0.0 }
 0x1d4   : > { %1258 = vadd.xlane.f32.xlu0 %v1257_v52  ;;  %v898_v58 = vpop.xlane.xlu0 %897 }
 0x1d5   : > { %7017 = vst [vmem:[#allocation7_spill] sm:$0xff] %v5366_v47  ;;  %v5373_v50 = vsub.f32 %v7020_v29, %v976_v1  ;;  %v1103_v57 = vmul.f32 %v5366_v47, %v5366_v47  ;;  %v981_v36 = vmul.f32 0.03125, %v898_v58  ;;  %v7024_v29 = vld [vmem:[#allocation11_spill] sm:$0xff]  ;;  %v1272_v33 = vsel %vm348_vm0, %v1106_v6, 0.0 }
 0x1d6   : > { %v901_v28 = vpop.xlane.xlu1 %900  ;;  %1261 = vadd.xlane.f32.xlu1 %v1260_v60  ;;  %v7022_v60 = vld [vmem:[#allocation10_spill] sm:$0xff] }
 0x1d7   : > { %7021 = vst [vmem:[#allocation9_spill] sm:$0xff] %v5373_v50  ;;  %v1263_v41 = vsel %vm348_vm0, %v1103_v57, 0.0  ;;  %v1104_v52 = vmul.f32 %v5373_v50, %v5373_v50  ;;  %v982_v11 = vmul.f32 0.03125, %v901_v28  ;;  %v5387_v58 = vsub.f32 %v7022_v60, %v981_v36  ;;  %v7026_v28 = vld [vmem:[#allocation12_spill] sm:$0xff] }
 0x1d8   : > { %1264 = vadd.xlane.f32.xlu0 %v1263_v41  ;;  %v892_v1 = vpop.xlane.xlu0 %891 }
 0x1d9   : > { %v979_v14 = vmul.f32 0.03125, %v892_v1  ;;  %v1266_v21 = vsel %vm348_vm0, %v1104_v52, 0.0  ;;  %7023 = vst [vmem:[#allocation10_spill] sm:$0xff] %v5387_v58  ;;  %v5394_v41 = vsub.f32 %v7026_v28, %v982_v11  ;;  %v7028_v52 = vld [vmem:[#allocation13_spill] sm:$0xff] }
 0x1da   : > { %v895_v23 = vpop.xlane.xlu1 %894  ;;  %1267 = vadd.xlane.f32.xlu1 %v1266_v21 }
 0x1db   : > { %v5390_v57 = vsub.f32 %v7024_v29, %v979_v14  ;;  %v980_v50 = vmul.f32 0.03125, %v895_v23  ;;  %7027 = vst [vmem:[#allocation12_spill] sm:$0xff] %v5394_v41 }
 0x1dc   : > { %1270 = vadd.xlane.f32.xlu0 %v1269_v20  ;;  %v910_v1 = vpop.xlane.xlu0 %909  ;;  %v1109_v20 = vmul.f32 %v5387_v58, %v5387_v58 }
 0x1dd   : > { %7025 = vst [vmem:[#allocation11_spill] sm:$0xff] %v5390_v57  ;;  %v5397_v47 = vsub.f32 %v7028_v52, %v980_v50  ;;  %v1107_v36 = vmul.f32 %v5390_v57, %v5390_v57  ;;  %v985_v14 = vmul.f32 0.03125, %v910_v1  ;;  %v1110_v50 = vmul.f32 %v5394_v41, %v5394_v41  ;;  %v7032_v52 = vld [vmem:[#allocation15_spill] sm:$0xff]  ;;  %v7034_v41 = vld [vmem:[#allocation16_spill] sm:$0xff] }
 0x1de   : > { %v913_v21 = vpop.xlane.xlu1 %912  ;;  %1273 = vadd.xlane.f32.xlu1 %v1272_v33  ;;  %v7030_v33 = vld [vmem:[#allocation14_spill] sm:$0xff]  ;;  %v1281_v58 = vsel %vm348_vm0, %v1109_v20, 0.0 }
 0x1df   : > { %7029 = vst [vmem:[#allocation13_spill] sm:$0xff] %v5397_v47  ;;  %v1275_v23 = vsel %vm348_vm0, %v1107_v36, 0.0  ;;  %v1108_v5 = vmul.f32 %v5397_v47, %v5397_v47  ;;  %v986_v6 = vmul.f32 0.03125, %v913_v21  ;;  %v5411_v1 = vsub.f32 %v7030_v33, %v985_v14 }
 0x1e0   : > { %1276 = vadd.xlane.f32.xlu0 %v1275_v23  ;;  %v904_v11 = vpop.xlane.xlu0 %903  ;;  %v1284_v57 = vsel %vm348_vm0, %v1110_v50, 0.0 }
 0x1e1   : > { %v983_v60 = vmul.f32 0.03125, %v904_v11  ;;  %v1278_v29 = vsel %vm348_vm0, %v1108_v5, 0.0  ;;  %7031 = vst [vmem:[#allocation14_spill] sm:$0xff] %v5411_v1  ;;  %v5419_v21 = vsub.f32 %v7034_v41, %v986_v6  ;;  %v7036_v11 = vld [vmem:[#allocation17_spill] sm:$0xff]  ;;  %v1113_v41 = vmul.f32 %v5411_v1, %v5411_v1 }
 0x1e2   : > { %v907_v28 = vpop.xlane.xlu1 %906  ;;  %1279 = vadd.xlane.f32.xlu1 %v1278_v29 }
 0x1e3   : > { %v5414_v36 = vsub.f32 %v7032_v52, %v983_v60  ;;  %v984_v47 = vmul.f32 0.03125, %v907_v28  ;;  %7035 = vst [vmem:[#allocation16_spill] sm:$0xff] %v5419_v21  ;;  %v7038_v60 = vld [vmem:[#allocation18_spill] sm:$0xff]  ;;  %v1114_v28 = vmul.f32 %v5419_v21, %v5419_v21  ;;  %v1293_v52 = vsel %vm348_vm0, %v1113_v41, 0.0 }
 0x1e4   : > { %1282 = vadd.xlane.f32.xlu0 %v1281_v58  ;;  %v916_v23 = vpop.xlane.xlu0 %915 }
 0x1e5   : > { %7033 = vst [vmem:[#allocation15_spill] sm:$0xff] %v5414_v36  ;;  %v5422_v5 = vsub.f32 %v7036_v11, %v984_v47  ;;  %v987_v29 = vmul.f32 0.03125, %v916_v23  ;;  %v1111_v14 = vmul.f32 %v5414_v36, %v5414_v36  ;;  %v1296_v11 = vsel %vm348_vm0, %v1114_v28, 0.0 }
 0x1e6   : > { %1285 = vadd.xlane.f32.xlu1 %v1284_v57 }
 0x1e7   : > { %7037 = vst [vmem:[#allocation17_spill] sm:$0xff] %v5422_v5  ;;  %v5427_v33 = vsub.f32 %v7038_v60, %v987_v29  ;;  %v1287_v20 = vsel %vm348_vm0, %v1111_v14, 0.0  ;;  %v1112_v58 = vmul.f32 %v5422_v5, %v5422_v5 }
 0x1e8   : > { %v919_v50 = vpop.xlane.xlu1 %918  ;;  %1288 = vadd.xlane.f32.xlu0 %v1287_v20 }
 0x1e9   : > { %7039 = vst [vmem:[#allocation18_spill] sm:$0xff] %v5427_v33  ;;  %v988_v47 = vmul.f32 0.03125, %v919_v50  ;;  %v1290_v6 = vsel %vm348_vm0, %v1112_v58, 0.0  ;;  %v1115_v23 = vmul.f32 %v5427_v33, %v5427_v33 }
 0x1ea   : > { %1291 = vadd.xlane.f32.xlu1 %v1290_v6 }
 0x1eb   : > { %v5438_v57 = vsub.f32 %v5054_v39, %v988_v47  ;;  %v1299_v14 = vsel %vm348_vm0, %v1115_v23, 0.0 }
 0x1ec   : > { %1294 = vadd.xlane.f32.xlu0 %v1293_v52 }
 0x1ed   : > { %7040 = vst [vmem:[#allocation26_spill] sm:$0xff] %v5438_v57  ;;  %v1116_v29 = vmul.f32 %v5438_v57, %v5438_v57 }
 0x1ee   : > { %1297 = vadd.xlane.f32.xlu1 %v1296_v11 }
 0x1ef   : > { %v1302_v60 = vsel %vm348_vm0, %v1116_v29, 0.0  ;;  %v7041_v29 = vld [vmem:[#allocation5_spill] sm:$0xff] }
 0x1f0   : > { %1300 = vadd.xlane.f32.xlu0 %v1299_v14  ;;  %v1637_v1 = vsub.s32 2, %v7041_v29 }
 0x1f2   : > { %1303 = vadd.xlane.f32.xlu1 %v1302_v60  ;;  %v1569_v60 = vsub.s32 1, %v7041_v29 }
 0x1fb   : > { %v1127_v39 = vpop.xlane.xlu0 %1126 }
 0x1fc   : > { %v1313_v20 = vmul.f32 0.03125, %v1127_v39 }
 0x1fe   : > { %v1377_v58 = vadd.f32 1e-05, %v1313_v20 }
 0x1ff   : > { %v1130_v41 = vpop.xlane.xlu1 %1129  ;;  %v1121_v50 = vpop.xlane.xlu0 %1120 }
 0x200   : > { %3970 = vrsqrt.f32 %v1377_v58  ;;  %v1314_v47 = vmul.f32 0.03125, %v1130_v41  ;;  %v1311_v6 = vmul.f32 0.03125, %v1121_v50 }
 0x202   : > { %v1378_v52 = vadd.f32 1e-05, %v1314_v47  ;;  %v1375_v28 = vadd.f32 1e-05, %v1311_v6 }
 0x203   : > { %v1124_v33 = vpop.xlane.xlu1 %1123 }
 0x204   : > { %3972 = vrsqrt.f32 %v1378_v52  ;;  %v1312_v57 = vmul.f32 0.03125, %v1124_v33  ;;  %v4482_v33 = vld [vmem:[%s6890_s2] sm:$0x3f] }
 0x205   : > { %3974 = vrsqrt.f32 %v1375_v28  ;;  %v1139_v11 = vpop.xlane.xlu0 %1138  ;;  %v5453_v6 = vrot.slane %v4482_v33, %v1569_v60 }
 0x206   : > { %v1376_v23 = vadd.f32 1e-05, %v1312_v57  ;;  %v1317_v14 = vmul.f32 0.03125, %v1139_v11  ;;  %v5455_v11 = vrot.slane %v4482_v33, %v1637_v1  ;;  %v7042_v33 = vld [vmem:[#allocation19_spill] sm:$0xff] }
 0x207   : > { %v1142_v21 = vpop.xlane.xlu1 %1141 }
 0x208   : > { %3976 = vrsqrt.f32 %v1376_v23  ;;  %v1381_v39 = vadd.f32 1e-05, %v1317_v14  ;;  %v1318_v20 = vmul.f32 0.03125, %v1142_v21 }
 0x209   : > { %v1133_v58 = vpop.xlane.xlu0 %1132 }
 0x20a   : > { %3978 = vrsqrt.f32 %v1381_v39  ;;  %v1382_v41 = vadd.f32 1e-05, %v1318_v20  ;;  %v1315_v50 = vmul.f32 0.03125, %v1133_v58 }
 0x20b   : > { %v1136_v47 = vpop.xlane.xlu1 %1135 }
 0x20c   : > { %3980 = vrsqrt.f32 %v1382_v41  ;;  %v1379_v57 = vadd.f32 1e-05, %v1315_v50  ;;  %v1316_v52 = vmul.f32 0.03125, %v1136_v47 }
 0x20d   : > { %v3971_v28 = vpop.eup %3970  ;;  %v1151_v21 = vpop.xlane.xlu0 %1150 }
 0x20e   : > { %v1505_v23 = vmul.f32 %v3971_v28, %v5059_v17  ;;  %3982 = vrsqrt.f32 %v1379_v57  ;;  %v1380_v14 = vadd.f32 1e-05, %v1316_v52  ;;  %v1321_v39 = vmul.f32 0.03125, %v1151_v21 }
 0x20f   : > { %v1154_v20 = vpop.xlane.xlu1 %1153 }
 0x210   : > { %v1573_v58 = vmul.f32 %v5453_v6, %v1505_v23  ;;  %3984 = vrsqrt.f32 %v1380_v14  ;;  %v1385_v29 = vadd.f32 1e-05, %v1321_v39  ;;  %v1322_v5 = vmul.f32 0.03125, %v1154_v20 }
 0x211   : > { %v3973_v60 = vpop.eup %3972  ;;  %v1145_v36 = vpop.xlane.xlu0 %1144 }
 0x212   : > { %v3975_v41 = vpop.eup %3974  ;;  %v1641_v50 = vadd.f32 %v5455_v11, %v1573_v58  ;;  %v1506_v1 = vmul.f32 %v3973_v60, %v5067_v24  ;;  %3986 = vrsqrt.f32 %v1385_v29  ;;  %v1386_v47 = vadd.f32 1e-05, %v1322_v5 }
 0x213   : > { %v1503_v17 = vmul.f32 %v3975_v41, %v7042_v33  ;;  %v1319_v57 = vmul.f32 0.03125, %v1145_v36  ;;  %v1148_v52 = vpop.xlane.xlu1 %1147 }
 0x214   : > { %3988 = vtanh.f32 %v1641_v50  ;;  %v1574_v28 = vmul.f32 %v5453_v6, %v1506_v1  ;;  %v1320_v21 = vmul.f32 0.03125, %v1148_v52 }
 0x215   : > { %v3977_v23 = vpop.eup %3976  ;;  %3990 = vrsqrt.f32 %v1386_v47  ;;  %v1383_v14 = vadd.f32 1e-05, %v1319_v57  ;;  %v1163_v39 = vpop.xlane.xlu0 %1162  ;;  %v1571_v20 = vmul.f32 %v5453_v6, %v1503_v17 }
 0x216   : > { %v1642_v58 = vadd.f32 %v5455_v11, %v1574_v28  ;;  %v1504_v24 = vmul.f32 %v3977_v23, %v7043_v32  ;;  %v1384_v29 = vadd.f32 1e-05, %v1320_v21  ;;  %v1325_v5 = vmul.f32 0.03125, %v1163_v39 }
 0x217   : > { %v3979_v60 = vpop.eup %3978  ;;  %3992 = vrsqrt.f32 %v1383_v14  ;;  %v1166_v36 = vpop.xlane.xlu1 %1165  ;;  %v1639_v41 = vadd.f32 %v5455_v11, %v1571_v20 }
 0x218   : > { %3994 = vtanh.f32 %v1642_v58  ;;  %v1509_v50 = vmul.f32 %v3979_v60, %v5082_v35  ;;  %v1389_v1 = vadd.f32 1e-05, %v1325_v5  ;;  %v1326_v47 = vmul.f32 0.03125, %v1166_v36 }
 0x219   : > { %v3981_v33 = vpop.eup %3980  ;;  %3996 = vrsqrt.f32 %v1384_v29  ;;  %v1157_v57 = vpop.xlane.xlu0 %1156  ;;  %v1572_v17 = vmul.f32 %v5453_v6, %v1504_v24 }
 0x21a   : > { %v1577_v52 = vmul.f32 %v5453_v6, %v1509_v50  ;;  %v1510_v32 = vmul.f32 %v3981_v33, %v5085_v25  ;;  %3998 = vrsqrt.f32 %v1389_v1  ;;  %v1390_v28 = vadd.f32 1e-05, %v1326_v47 }
 0x21b   : > { %v3983_v21 = vpop.eup %3982  ;;  %v1323_v23 = vmul.f32 0.03125, %v1157_v57  ;;  %v1160_v14 = vpop.xlane.xlu1 %1159  ;;  %v1640_v39 = vadd.f32 %v5455_v11, %v1572_v17  ;;  %4000 = vtanh.f32 %v1639_v41 }
 0x21c   : > { %v1645_v35 = vadd.f32 %v5455_v11, %v1577_v52  ;;  %v1578_v20 = vmul.f32 %v5453_v6, %v1510_v32  ;;  %v1507_v58 = vmul.f32 %v3983_v21, %v5091_v61  ;;  %4002 = vrsqrt.f32 %v1390_v28 }
 0x21d   : > { %v3985_v24 = vpop.eup %3984  ;;  %v1387_v29 = vadd.f32 1e-05, %v1323_v23  ;;  %v1324_v5 = vmul.f32 0.03125, %v1160_v14  ;;  %v1175_v60 = vpop.xlane.xlu0 %1174  ;;  %4004 = vtanh.f32 %v1640_v39 }
 0x21e   : > { %4006 = vtanh.f32 %v1645_v35  ;;  %v1646_v25 = vadd.f32 %v5455_v11, %v1578_v20  ;;  %v1575_v36 = vmul.f32 %v5453_v6, %v1507_v58  ;;  %v1508_v50 = vmul.f32 %v3985_v24, %v5097_v45 }
 0x21f   : > { %v3987_v41 = vpop.eup %3986  ;;  %4008 = vrsqrt.f32 %v1387_v29  ;;  %v1388_v1 = vadd.f32 1e-05, %v1324_v5  ;;  %v1329_v47 = vmul.f32 0.03125, %v1175_v60  ;;  %v1178_v33 = vpop.xlane.xlu1 %1177 }
 0x220   : > { %4010 = vtanh.f32 %v1646_v25  ;;  %v1643_v61 = vadd.f32 %v5455_v11, %v1575_v36  ;;  %v1576_v57 = vmul.f32 %v5453_v6, %v1508_v50  ;;  %v1513_v17 = vmul.f32 %v3987_v41, %v5103_v55 }
 0x221   : > { %v5481_v52 = vpop.eup %3988  ;;  %4012 = vrsqrt.f32 %v1388_v1  ;;  %v1393_v32 = vadd.f32 1e-05, %v1329_v47  ;;  %v1330_v28 = vmul.f32 0.03125, %v1178_v33  ;;  %v1169_v21 = vpop.xlane.xlu0 %1168 }
 0x222   : > { %v3991_v23 = vpop.eup %3990  ;;  %4014 = vtanh.f32 %v1643_v61  ;;  %v1644_v45 = vadd.f32 %v5455_v11, %v1576_v57  ;;  %v1581_v14 = vmul.f32 %v5453_v6, %v1513_v17  ;;  %v1327_v39 = vmul.f32 0.03125, %v1169_v21 }
 0x223   : > { %v1514_v35 = vmul.f32 %v3991_v23, %v5109_v42  ;;  %4016 = vrsqrt.f32 %v1393_v32  ;;  %v1394_v20 = vadd.f32 1e-05, %v1330_v28  ;;  %v1172_v58 = vpop.xlane.xlu1 %1171 }
 0x224   : > { %v3993_v24 = vpop.eup %3992  ;;  %4018 = vtanh.f32 %v1644_v45  ;;  %v1649_v55 = vadd.f32 %v5455_v11, %v1581_v14  ;;  %v1391_v29 = vadd.f32 1e-05, %v1327_v39  ;;  %v1328_v5 = vmul.f32 0.03125, %v1172_v58 }
 0x225   : > { %v3995_v60 = vpop.eup %3994  ;;  %v1582_v25 = vmul.f32 %v5453_v6, %v1514_v35  ;;  %v1511_v36 = vmul.f32 %v3993_v24, %v5115_v62  ;;  %4020 = vrsqrt.f32 %v1394_v20  ;;  %v1187_v50 = vpop.xlane.xlu0 %1186 }
 0x226   : > { %v3997_v41 = vpop.eup %3996  ;;  %4022 = vtanh.f32 %v1649_v55  ;;  %v1392_v1 = vadd.f32 1e-05, %v1328_v5  ;;  %v1333_v42 = vmul.f32 0.03125, %v1187_v50  ;;  %v1768_v35 = vpack.c.bf16 %v3995_v60, %v5481_v52 }
 0x227   : > { %v3999_v47 = vpop.eup %3998  ;;  %v1650_v33 = vadd.f32 %v5455_v11, %v1582_v25  ;;  %v1579_v61 = vmul.f32 %v5453_v6, %v1511_v36  ;;  %v1512_v57 = vmul.f32 %v3997_v41, %v5121_v12  ;;  %4024 = vrsqrt.f32 %v1391_v29  ;;  %v1190_v17 = vpop.xlane.xlu1 %1189 }
 0x228   : > { %v4001_v32 = vpop.eup %4000  ;;  %v1517_v28 = vmul.f32 %v3999_v47, %v5127_v3  ;;  %4026 = vrsqrt.f32 %v1392_v1  ;;  %v1397_v62 = vadd.f32 1e-05, %v1333_v42  ;;  %v1334_v21 = vmul.f32 0.03125, %v1190_v17 }
 0x229   : > { %v4003_v23 = vpop.eup %4002  ;;  %4028 = vtanh.f32 %v1650_v33  ;;  %v1647_v45 = vadd.f32 %v5455_v11, %v1579_v61  ;;  %v1580_v14 = vmul.f32 %v5453_v6, %v1512_v57  ;;  %v1181_v39 = vpop.xlane.xlu0 %1180 }
 0x22a   : > { %v4005_v20 = vpop.eup %4004  ;;  %v1585_v12 = vmul.f32 %v5453_v6, %v1517_v28  ;;  %v1518_v58 = vmul.f32 %v4003_v23, %v5133_v56  ;;  %4030 = vrsqrt.f32 %v1397_v62  ;;  %v1398_v24 = vadd.f32 1e-05, %v1334_v21 }
 0x22b   : > { %v5498_v3 = vpop.eup %4006  ;;  %4032 = vtanh.f32 %v1647_v45  ;;  %v1648_v55 = vadd.f32 %v5455_v11, %v1580_v14  ;;  %v1331_v29 = vmul.f32 0.03125, %v1181_v39  ;;  %v1184_v5 = vpop.xlane.xlu1 %1183  ;;  %v1767_v25 = vpack.c.bf16 %v4005_v20, %v4001_v32 }
 0x22c   : > { %v4009_v36 = vpop.eup %4008  ;;  %v1653_v50 = vadd.f32 %v5455_v11, %v1585_v12  ;;  %v1586_v52 = vmul.f32 %v5453_v6, %v1518_v58  ;;  %4034 = vrsqrt.f32 %v1398_v24  ;;  %v1332_v60 = vmul.f32 0.03125, %v1184_v5 }
 0x22d   : > { %v4011_v41 = vpop.eup %4010  ;;  %4036 = vtanh.f32 %v1648_v55  ;;  %v1515_v56 = vmul.f32 %v4009_v36, %v5139_v10  ;;  %v1395_v1 = vadd.f32 1e-05, %v1331_v29  ;;  %3841 = vmatprep.mubr.msk.bf16.mxu1 %vm348_vm0, %v1767_v25  ;;  %v922_v42 = vpop.xlane.xlu0 %921 }
 0x22e   : > { %v4013_v47 = vpop.eup %4012  ;;  %4038 = vtanh.f32 %v1653_v50  ;;  %v1654_v33 = vadd.f32 %v5455_v11, %v1586_v52  ;;  %v1396_v61 = vadd.f32 1e-05, %v1332_v60  ;;  %3842 = vmatmul.mubr.msk.bf16.vlgmr.msra.gmra.mxu1 %vm348_vm0, %v1768_v35  ;;  %v989_v57 = vmul.f32 0.03125, %v922_v42 }
 0x22f   : > { %v4015_v17 = vpop.eup %4014  ;;  %v1583_v32 = vmul.f32 %v5453_v6, %v1515_v56  ;;  %v1516_v28 = vmul.f32 %v4013_v47, %v5145_v59  ;;  %4040 = vrsqrt.f32 %v1395_v1  ;;  %v925_v62 = vpop.xlane.xlu1 %924  ;;  %v1770_v45 = vpack.c.bf16 %v4011_v41, %v5498_v3 }
 0x230   : > { %v4017_v10 = vpop.eup %4016  ;;  %4042 = vtanh.f32 %v1654_v33  ;;  %v5510_v21 = vsub.f32 %v5200_v43, %v989_v57  ;;  %v990_v23 = vmul.f32 0.03125, %v925_v62 }
 0x231   : > { %v4019_v14 = vpop.eup %4018  ;;  %v1651_v39 = vadd.f32 %v5455_v11, %v1583_v32  ;;  %v1584_v35 = vmul.f32 %v5453_v6, %v1516_v28  ;;  %v1521_v20 = vmul.f32 %v4017_v10, %v5151_v15  ;;  %4044 = vrsqrt.f32 %v1396_v61  ;;  %v1193_v12 = vpop.xlane.xlu0 %1192 }
 0x232   : > { %v4021_v59 = vpop.eup %4020  ;;  %v5517_v58 = vsub.f32 %v5207_v8, %v990_v23  ;;  %v1335_v24 = vmul.f32 0.03125, %v1193_v12  ;;  %v1769_v55 = vpack.c.bf16 %v4019_v14, %v4015_v17  ;;  %v1117_v43 = vmul.f32 %v5510_v21, %v5510_v21 }
 0x233   : > { %v5521_v29 = vpop.eup %4022  ;;  %4046 = vtanh.f32 %v1651_v39  ;;  %v1652_v3 = vadd.f32 %v5455_v11, %v1584_v35  ;;  %v1589_v5 = vmul.f32 %v5453_v6, %v1521_v20  ;;  %v1522_v15 = vmul.f32 %v4021_v59, %v5157_v4  ;;  %v1196_v25 = vpop.xlane.xlu1 %1195 }
 0x234   : > { %v4025_v36 = vpop.eup %4024  ;;  %v1399_v50 = vadd.f32 1e-05, %v1335_v24  ;;  %v1336_v52 = vmul.f32 0.03125, %v1196_v25  ;;  %3845 = vmatprep.mubr.msk.bf16.mxu1 %vm348_vm0, %v1769_v55  ;;  %v1305_v8 = vsel %vm348_vm0, %v1117_v43, 0.0  ;;  %v1118_v60 = vmul.f32 %v5517_v58, %v5517_v58 }
 0x235   : > { %v4027_v41 = vpop.eup %4026  ;;  %4048 = vtanh.f32 %v1652_v3  ;;  %v1657_v56 = vadd.f32 %v5455_v11, %v1589_v5  ;;  %v1590_v1 = vmul.f32 %v5453_v6, %v1522_v15  ;;  %v1519_v42 = vmul.f32 %v4025_v36, %v5163_v22  ;;  %1306 = vadd.xlane.f32.xlu0 %v1305_v8  ;;  %v1199_v4 = vpop.xlane.xlu0 %1198 }
 0x236   : > { %v4029_v47 = vpop.eup %4028  ;;  %v1520_v33 = vmul.f32 %v4027_v41, %v5169_v7  ;;  %4050 = vrsqrt.f32 %v1399_v50  ;;  %v1400_v61 = vadd.f32 1e-05, %v1336_v52  ;;  %3846 = vmatmul.mubr.msk.bf16.gmra.mxu1 %vm348_vm0, %v1770_v45  ;;  %v1337_v57 = vmul.f32 0.03125, %v1199_v4 }
 0x237   : > { %v4031_v17 = vpop.eup %4030  ;;  %4052 = vtanh.f32 %v1657_v56  ;;  %v1658_v32 = vadd.f32 %v5455_v11, %v1590_v1  ;;  %v1587_v28 = vmul.f32 %v5453_v6, %v1519_v42  ;;  %v1308_v62 = vsel %vm348_vm0, %v1118_v60, 0.0  ;;  %v1202_v10 = vpop.xlane.xlu1 %1201 }
 0x238   : > { %v4033_v22 = vpop.eup %4032  ;;  %v1588_v23 = vmul.f32 %v5453_v6, %v1520_v33  ;;  %v1525_v14 = vmul.f32 %v4031_v17, %v5175_v27  ;;  %4054 = vrsqrt.f32 %v1400_v61  ;;  %v1401_v7 = vadd.f32 1e-05, %v1337_v57  ;;  %1309 = vadd.xlane.f32.xlu1 %v1308_v62 }
 0x239   : > { %v4035_v39 = vpop.eup %4034  ;;  %4056 = vtanh.f32 %v1658_v32  ;;  %v1655_v45 = vadd.f32 %v5455_v11, %v1587_v28  ;;  %v1338_v35 = vmul.f32 0.03125, %v1202_v10  ;;  %v1205_v20 = vpop.xlane.xlu0 %1204  ;;  %v1772_v12 = vpack.c.bf16 %v4029_v47, %v5521_v29 }
 0x23a   : > { %v4037_v59 = vpop.eup %4036  ;;  %v1656_v24 = vadd.f32 %v5455_v11, %v1588_v23  ;;  %v1593_v55 = vmul.f32 %v5453_v6, %v1525_v14  ;;  %v1526_v43 = vmul.f32 %v4035_v39, %v5181_v16  ;;  %4058 = vrsqrt.f32 %v1401_v7 }
 0x23b   : > { %v4039_v27 = vpop.eup %4038  ;;  %4060 = vtanh.f32 %v1655_v45  ;;  %v1402_v3 = vadd.f32 1e-05, %v1338_v35  ;;  %v1339_v5 = vmul.f32 0.03125, %v1205_v20  ;;  %v1208_v15 = vpop.xlane.xlu1 %1207  ;;  %v1771_v25 = vpack.c.bf16 %v4037_v59, %v4033_v22 }
 0x23c   : > { %v4041_v36 = vpop.eup %4040  ;;  %4062 = vtanh.f32 %v1656_v24  ;;  %v1661_v50 = vadd.f32 %v5455_v11, %v1593_v55  ;;  %v1594_v29 = vmul.f32 %v5453_v6, %v1526_v43  ;;  %v1340_v52 = vmul.f32 0.03125, %v1208_v15 }
 0x23d   : > { %v4043_v8 = vpop.eup %4042  ;;  %v1523_v60 = vmul.f32 %v4041_v36, %v5187_v34  ;;  %4064 = vrsqrt.f32 %v1402_v3  ;;  %v1403_v41 = vadd.f32 1e-05, %v1339_v5  ;;  %3849 = vmatprep.mubr.msk.bf16.mxu1 %vm348_vm0, %v1771_v25  ;;  %v1211_v16 = vpop.xlane.xlu0 %1210 }
 0x23e   : > { %v4045_v56 = vpop.eup %4044  ;;  %4066 = vtanh.f32 %v1661_v50  ;;  %v1662_v1 = vadd.f32 %v5455_v11, %v1594_v29  ;;  %v1404_v42 = vadd.f32 1e-05, %v1340_v52  ;;  %3850 = vmatmul.mubr.msk.bf16.gmra.mxu1 %vm348_vm0, %v1772_v12  ;;  %v1341_v4 = vmul.f32 0.03125, %v1211_v16 }
 0x23f   : > { %v1591_v47 = vmul.f32 %v5453_v6, %v1523_v60  ;;  %v1524_v33 = vmul.f32 %v4045_v56, %v5193_v19  ;;  %4068 = vrsqrt.f32 %v1403_v41  ;;  %v1214_v61 = vpop.xlane.xlu1 %1213  ;;  %v1774_v45 = vpack.c.bf16 %v4043_v8, %v4039_v27 }
 0x240   : > { %v4047_v34 = vpop.eup %4046  ;;  %4070 = vtanh.f32 %v1662_v1  ;;  %v1405_v57 = vadd.f32 1e-05, %v1341_v4  ;;  %v1342_v17 = vmul.f32 0.03125, %v1214_v61 }
 0x241   : > { %v1659_v32 = vadd.f32 %v5455_v11, %v1591_v47  ;;  %v1592_v28 = vmul.f32 %v5453_v6, %v1524_v33  ;;  %4072 = vrsqrt.f32 %v1404_v42  ;;  %v1217_v62 = vpop.xlane.xlu0 %1216 }
 0x242   : > { %v4049_v10 = vpop.eup %4048  ;;  %4074 = vrsqrt.f32 %v1405_v57  ;;  %v1406_v22 = vadd.f32 1e-05, %v1342_v17  ;;  %v1343_v23 = vmul.f32 0.03125, %v1217_v62 }
 0x243   : > { %v4051_v14 = vpop.eup %4050  ;;  %4076 = vtanh.f32 %v1659_v32  ;;  %v1660_v19 = vadd.f32 %v5455_v11, %v1592_v28  ;;  %v1220_v7 = vpop.xlane.xlu1 %1219  ;;  %v1773_v39 = vpack.c.bf16 %v4049_v10, %v4047_v34 }
 0x244   : > { %v4053_v35 = vpop.eup %4052  ;;  %v1527_v20 = vmul.f32 %v4051_v14, %v5214_v44  ;;  %4078 = vrsqrt.f32 %v1406_v22  ;;  %v1407_v12 = vadd.f32 1e-05, %v1343_v23  ;;  %v1344_v59 = vmul.f32 0.03125, %v1220_v7 }
 0x245   : > { %v4055_v24 = vpop.eup %4054  ;;  %4080 = vtanh.f32 %v1660_v19  ;;  %3853 = vmatprep.mubr.msk.bf16.mxu1 %vm348_vm0, %v1773_v39  ;;  %v1223_v55 = vpop.xlane.xlu0 %1222 }
 0x246   : > { %v4057_v43 = vpop.eup %4056  ;;  %v1595_v3 = vmul.f32 %v5453_v6, %v1527_v20  ;;  %v1528_v5 = vmul.f32 %v4055_v24, %v5225_v40  ;;  %4082 = vrsqrt.f32 %v1407_v12  ;;  %v1408_v15 = vadd.f32 1e-05, %v1344_v59  ;;  %3854 = vmatmul.mubr.msk.bf16.gmra.mxu1 %vm348_vm0, %v1774_v45 }
 0x247   : > { %v4059_v27 = vpop.eup %4058  ;;  %v1345_v25 = vmul.f32 0.03125, %v1223_v55  ;;  %v1226_v44 = vpop.xlane.xlu1 %1225  ;;  %v1776_v40 = vpack.c.bf16 %v4057_v43, %v4053_v35 }
 0x248   : > { %v4061_v36 = vpop.eup %4060  ;;  %v1663_v50 = vadd.f32 %v5455_v11, %v1595_v3  ;;  %v1596_v29 = vmul.f32 %v5453_v6, %v1528_v5  ;;  %v1529_v52 = vmul.f32 %v4059_v27, %v5211_v46  ;;  %4084 = vrsqrt.f32 %v1408_v15 }
 0x249   : > { %v4063_v8 = vpop.eup %4062  ;;  %v1409_v60 = vadd.f32 1e-05, %v1345_v25  ;;  %v1346_v41 = vmul.f32 0.03125, %v1226_v44  ;;  %v1229_v16 = vpop.xlane.xlu0 %1228 }
 0x24a   : > { %v4065_v56 = vpop.eup %4064  ;;  %4086 = vtanh.f32 %v1663_v50  ;;  %v1664_v1 = vadd.f32 %v5455_v11, %v1596_v29  ;;  %v1597_v42 = vmul.f32 %v5453_v6, %v1529_v52  ;;  %v1347_v4 = vmul.f32 0.03125, %v1229_v16 }
 0x24b   : > { %v5566_v47 = vpop.eup %4066  ;;  %v1530_v33 = vmul.f32 %v4065_v56, %v5222_v63  ;;  %4088 = vrsqrt.f32 %v1409_v60  ;;  %v1410_v61 = vadd.f32 1e-05, %v1346_v41  ;;  %v1232_v46 = vpop.xlane.xlu1 %1231  ;;  %v1775_v34 = vpack.c.bf16 %v4063_v8, %v4061_v36 }
 0x24c   : > { %v4069_v57 = vpop.eup %4068  ;;  %4090 = vtanh.f32 %v1664_v1  ;;  %v1665_v17 = vadd.f32 %v5455_v11, %v1597_v42  ;;  %v1411_v32 = vadd.f32 1e-05, %v1347_v4  ;;  %v1348_v28 = vmul.f32 0.03125, %v1232_v46 }
 0x24d   : > { %v4071_v62 = vpop.eup %4070  ;;  %v1598_v10 = vmul.f32 %v5453_v6, %v1530_v33  ;;  %v1531_v22 = vmul.f32 %v4069_v57, %v5246_v38  ;;  %4092 = vrsqrt.f32 %v1410_v61  ;;  %3857 = vmatprep.mubr.msk.bf16.mxu1 %vm348_vm0, %v1775_v34  ;;  %v1235_v23 = vpop.xlane.xlu0 %1234 }
 0x24e   : > { %v4073_v63 = vpop.eup %4072  ;;  %4094 = vtanh.f32 %v1665_v17  ;;  %v1412_v14 = vadd.f32 1e-05, %v1348_v28  ;;  %3858 = vmatmul.mubr.msk.bf16.gmra.mxu1 %vm348_vm0, %v1776_v40  ;;  %v1349_v19 = vmul.f32 0.03125, %v1235_v23  ;;  %v1778_v15 = vpack.c.bf16 %v4071_v62, %v5566_v47 }
 0x24f   : > { %v4075_v7 = vpop.eup %4074  ;;  %v1666_v39 = vadd.f32 %v5455_v11, %v1598_v10  ;;  %v1599_v45 = vmul.f32 %v5453_v6, %v1531_v22  ;;  %v1532_v35 = vmul.f32 %v4073_v63, %v5253_v2  ;;  %4096 = vrsqrt.f32 %v1411_v32  ;;  %v1238_v20 = vpop.xlane.xlu1 %1237 }
 0x250   : > { %v4077_v38 = vpop.eup %4076  ;;  %v1533_v12 = vmul.f32 %v4075_v7, %v5243_v53  ;;  %4098 = vrsqrt.f32 %v1412_v14  ;;  %v1413_v59 = vadd.f32 1e-05, %v1349_v19  ;;  %v1350_v24 = vmul.f32 0.03125, %v1238_v20 }
 0x251   : > { %v4079_v55 = vpop.eup %4078  ;;  %4100 = vtanh.f32 %v1666_v39  ;;  %v1667_v43 = vadd.f32 %v5455_v11, %v1599_v45  ;;  %v1600_v3 = vmul.f32 %v5453_v6, %v1532_v35  ;;  %v1241_v5 = vpop.xlane.xlu0 %1240 }
 0x252   : > { %v4081_v27 = vpop.eup %4080  ;;  %v1601_v2 = vmul.f32 %v5453_v6, %v1533_v12  ;;  %v1534_v25 = vmul.f32 %v4079_v55, %v5250_v54  ;;  %4102 = vrsqrt.f32 %v1413_v59  ;;  %v1414_v44 = vadd.f32 1e-05, %v1350_v24 }
 0x253   : > { %v4083_v53 = vpop.eup %4082  ;;  %4104 = vtanh.f32 %v1667_v43  ;;  %v1668_v36 = vadd.f32 %v5455_v11, %v1600_v3  ;;  %v1351_v50 = vmul.f32 0.03125, %v1241_v5  ;;  %v1244_v29 = vpop.xlane.xlu1 %1243  ;;  %v1777_v52 = vpack.c.bf16 %v4081_v27, %v4077_v38 }
 0x254   : > { %v1669_v8 = vadd.f32 %v5455_v11, %v1601_v2  ;;  %v1602_v60 = vmul.f32 %v5453_v6, %v1534_v25  ;;  %v1535_v41 = vmul.f32 %v4083_v53, %v5270_v31  ;;  %4106 = vrsqrt.f32 %v1414_v44 }
 0x255   : > { %v4085_v16 = vpop.eup %4084  ;;  %4108 = vtanh.f32 %v1668_v36  ;;  %v1415_v40 = vadd.f32 1e-05, %v1351_v50  ;;  %v1352_v54 = vmul.f32 0.03125, %v1244_v29  ;;  %3861 = vmatprep.mubr.msk.bf16.mxu1 %vm348_vm0, %v1777_v52  ;;  %v1247_v56 = vpop.xlane.xlu0 %1246 }
 0x256   : > { %4110 = vtanh.f32 %v1669_v8  ;;  %v1670_v1 = vadd.f32 %v5455_v11, %v1602_v60  ;;  %v1603_v42 = vmul.f32 %v5453_v6, %v1535_v41  ;;  %v1536_v4 = vmul.f32 %v4085_v16, %v5277_v0  ;;  %3862 = vmatmul.mubr.msk.bf16.gmra.mxu1 %vm348_vm0, %v1778_v15 }
 0x257   : > { %v4087_v47 = vpop.eup %4086  ;;  %4112 = vrsqrt.f32 %v1415_v40  ;;  %v1416_v31 = vadd.f32 1e-05, %v1352_v54  ;;  %v1353_v33 = vmul.f32 0.03125, %v1247_v56  ;;  %v1250_v61 = vpop.xlane.xlu1 %1249 }
 0x258   : > { %v4089_v46 = vpop.eup %4088  ;;  %4114 = vtanh.f32 %v1670_v1  ;;  %v1671_v34 = vadd.f32 %v5455_v11, %v1603_v42  ;;  %v1604_v57 = vmul.f32 %v5453_v6, %v1536_v4  ;;  %v1354_v17 = vmul.f32 0.03125, %v1250_v61 }
 0x259   : > { %v4091_v32 = vpop.eup %4090  ;;  %v1537_v28 = vmul.f32 %v4089_v46, %v5267_v49  ;;  %4116 = vrsqrt.f32 %v1416_v31  ;;  %v1417_v62 = vadd.f32 1e-05, %v1353_v33  ;;  %v1253_v0 = vpop.xlane.xlu0 %1252 }
 0x25a   : > { %v4093_v10 = vpop.eup %4092  ;;  %4118 = vtanh.f32 %v1671_v34  ;;  %v1672_v22 = vadd.f32 %v5455_v11, %v1604_v57  ;;  %v1418_v23 = vadd.f32 1e-05, %v1354_v17  ;;  %v1355_v63 = vmul.f32 0.03125, %v1253_v0 }
 0x25b   : > { %v4095_v14 = vpop.eup %4094  ;;  %v1605_v19 = vmul.f32 %v5453_v6, %v1537_v28  ;;  %v1538_v7 = vmul.f32 %v4093_v10, %v5274_v51  ;;  %4120 = vrsqrt.f32 %v1417_v62  ;;  %v1256_v39 = vpop.xlane.xlu1 %1255  ;;  %v1779_v45 = vpack.c.bf16 %v4091_v32, %v4087_v47 }
 0x25c   : > { %v4097_v35 = vpop.eup %4096  ;;  %4122 = vtanh.f32 %v1672_v22  ;;  %v1419_v49 = vadd.f32 1e-05, %v1355_v63  ;;  %v1356_v20 = vmul.f32 0.03125, %v1256_v39 }
 0x25d   : > { %v4099_v38 = vpop.eup %4098  ;;  %v1673_v12 = vadd.f32 %v5455_v11, %v1605_v19  ;;  %v1606_v59 = vmul.f32 %v5453_v6, %v1538_v7  ;;  %v1539_v24 = vmul.f32 %v4097_v35, %v5294_v48  ;;  %4124 = vrsqrt.f32 %v1418_v23  ;;  %3865 = vmatprep.mubr.msk.bf16.mxu1 %vm348_vm0, %v1779_v45  ;;  %v1259_v55 = vpop.xlane.xlu0 %1258 }
 0x25e   : > { %v4101_v43 = vpop.eup %4100  ;;  %v1540_v51 = vmul.f32 %v4099_v38, %v5301_v18  ;;  %4126 = vrsqrt.f32 %v1419_v49  ;;  %v1420_v3 = vadd.f32 1e-05, %v1356_v20  ;;  %v1357_v5 = vmul.f32 0.03125, %v1259_v55  ;;  %v7044_v55 = vld [vmem:[#allocation21_spill] sm:$0xff] }
 0x25f   : > { %v4103_v15 = vpop.eup %4102  ;;  %4128 = vtanh.f32 %v1673_v12  ;;  %v1674_v27 = vadd.f32 %v5455_v11, %v1606_v59  ;;  %v1607_v2 = vmul.f32 %v5453_v6, %v1539_v24  ;;  %v1262_v25 = vpop.xlane.xlu1 %1261  ;;  %v1780_v44 = vpack.c.bf16 %v4101_v43, %v4095_v14 }
 0x260   : > { %v4105_v53 = vpop.eup %4104  ;;  %v1608_v48 = vmul.f32 %v5453_v6, %v1540_v51  ;;  %v1541_v36 = vmul.f32 %v4103_v15, %v5291_v9  ;;  %4130 = vrsqrt.f32 %v1420_v3  ;;  %v1421_v50 = vadd.f32 1e-05, %v1357_v5 }
 0x261   : > { %v4107_v29 = vpop.eup %4106  ;;  %4132 = vtanh.f32 %v1674_v27  ;;  %v1675_v18 = vadd.f32 %v5455_v11, %v1607_v2  ;;  %v1358_v52 = vmul.f32 0.03125, %v1262_v25  ;;  %3866 = vmatmul.mubr.msk.bf16.gmra.mxu1 %vm348_vm0, %v1780_v44  ;;  %v1265_v8 = vpop.xlane.xlu0 %1264 }
 0x262   : > { %v4109_v60 = vpop.eup %4108  ;;  %v1676_v41 = vadd.f32 %v5455_v11, %v1608_v48  ;;  %v1609_v16 = vmul.f32 %v5453_v6, %v1541_v36  ;;  %v1542_v40 = vmul.f32 %v4107_v29, %v5298_v13  ;;  %4134 = vrsqrt.f32 %v1421_v50  ;;  %v7046_v50 = vld [vmem:[#allocation25_spill] sm:$0xff] }
 0x263   : > { %v4111_v54 = vpop.eup %4110  ;;  %4136 = vtanh.f32 %v1675_v18  ;;  %v1422_v9 = vadd.f32 1e-05, %v1358_v52  ;;  %v1359_v56 = vmul.f32 0.03125, %v1265_v8  ;;  %v1268_v1 = vpop.xlane.xlu1 %1267  ;;  %v1781_v42 = vpack.c.bf16 %v4109_v60, %v4105_v53 }
 0x264   : > { %v4113_v4 = vpop.eup %4112  ;;  %4138 = vtanh.f32 %v1676_v41  ;;  %v1677_v47 = vadd.f32 %v5455_v11, %v1609_v16  ;;  %v1610_v31 = vmul.f32 %v5453_v6, %v1542_v40  ;;  %v1360_v33 = vmul.f32 0.03125, %v1268_v1 }
 0x265   : > { %v4115_v61 = vpop.eup %4114  ;;  %v1543_v46 = vmul.f32 %v4113_v4, %v5318_v30  ;;  %4140 = vrsqrt.f32 %v1422_v9  ;;  %v1423_v34 = vadd.f32 1e-05, %v1359_v56  ;;  %3869 = vmatprep.mubr.msk.bf16.mxu1 %vm348_vm0, %v1781_v42  ;;  %v1271_v13 = vpop.xlane.xlu0 %1270  ;;  %v7047_v56 = vld [vmem:[#allocation22_spill] sm:$0xff] }
 0x266   : > { %v4117_v57 = vpop.eup %4116  ;;  %4142 = vtanh.f32 %v1677_v47  ;;  %v1678_v17 = vadd.f32 %v5455_v11, %v1610_v31  ;;  %v1424_v32 = vadd.f32 1e-05, %v1360_v33  ;;  %v1361_v28 = vmul.f32 0.03125, %v1271_v13 }
 0x267   : > { %v4119_v62 = vpop.eup %4118  ;;  %v1611_v0 = vmul.f32 %v5453_v6, %v1543_v46  ;;  %v1544_v10 = vmul.f32 %v4117_v57, %v5325_v37  ;;  %4144 = vrsqrt.f32 %v1423_v34  ;;  %v1274_v22 = vpop.xlane.xlu1 %1273  ;;  %v1782_v23 = vpack.c.bf16 %v4115_v61, %v4111_v54  ;;  %v7048_v57 = vld [vmem:[#allocation24_spill] sm:$0xff] }
 0x268   : > { %v4121_v30 = vpop.eup %4120  ;;  %4146 = vtanh.f32 %v1678_v17  ;;  %v1425_v63 = vadd.f32 1e-05, %v1361_v28  ;;  %v1362_v14 = vmul.f32 0.03125, %v1274_v22 }
 0x269   : > { %v4123_v19 = vpop.eup %4122  ;;  %v1679_v7 = vadd.f32 %v5455_v11, %v1611_v0  ;;  %v1612_v39 = vmul.f32 %v5453_v6, %v1544_v10  ;;  %v1545_v45 = vmul.f32 %v4121_v30, %v5315_v26  ;;  %4148 = vrsqrt.f32 %v1424_v32  ;;  %3870 = vmatmul.mubr.msk.bf16.gmra.mxu1 %vm348_vm0, %v1782_v23  ;;  %v1277_v35 = vpop.xlane.xlu0 %1276  ;;  %v7045_v26 = vld [vmem:[#allocation23_spill] sm:$0xff] }
 0x26a   : > { %v4125_v49 = vpop.eup %4124  ;;  %4150 = vrsqrt.f32 %v1425_v63  ;;  %v1426_v37 = vadd.f32 1e-05, %v1362_v14  ;;  %v1363_v20 = vmul.f32 0.03125, %v1277_v35  ;;  %v1783_v38 = vpack.c.bf16 %v4123_v19, %v4119_v62  ;;  %v7049_v14 = vld [vmem:[#allocation7_spill] sm:$0xff] }
 0x26b   : > { %v4127_v12 = vpop.eup %4126  ;;  %4152 = vtanh.f32 %v1679_v7  ;;  %v1680_v59 = vadd.f32 %v5455_v11, %v1612_v39  ;;  %v1613_v24 = vmul.f32 %v5453_v6, %v1545_v45  ;;  %v1546_v43 = vmul.f32 %v4125_v49, %v7044_v55  ;;  %v1280_v51 = vpop.xlane.xlu1 %1279 }
 0x26c   : > { %v4129_v3 = vpop.eup %4128  ;;  %v1547_v5 = vmul.f32 %v4127_v12, %v7045_v26  ;;  %4154 = vrsqrt.f32 %v1426_v37  ;;  %v1427_v15 = vadd.f32 1e-05, %v1363_v20  ;;  %v1364_v27 = vmul.f32 0.03125, %v1280_v51  ;;  %3873 = vmatprep.mubr.msk.bf16.mxu1 %vm348_vm0, %v1783_v38  ;;  %v7050_v12 = vld [vmem:[#allocation9_spill] sm:$0xff] }
 0x26d   : > { %v4131_v2 = vpop.eup %4130  ;;  %4156 = vtanh.f32 %v1680_v59  ;;  %v1681_v25 = vadd.f32 %v5455_v11, %v1613_v24  ;;  %v1614_v44 = vmul.f32 %v5453_v6, %v1546_v43  ;;  %v1283_v53 = vpop.xlane.xlu0 %1282  ;;  %v7051_v43 = vld [vmem:[#allocation6_spill] sm:$0xff] }
 0x26e   : > { %v4133_v48 = vpop.eup %4132  ;;  %v1615_v36 = vmul.f32 %v5453_v6, %v1547_v5  ;;  %v1548_v29 = vmul.f32 %v4131_v2, %v7046_v50  ;;  %4158 = vrsqrt.f32 %v1427_v15  ;;  %v1428_v18 = vadd.f32 1e-05, %v1364_v27 }
 0x26f   : > { %v4135_v52 = vpop.eup %4134  ;;  %4160 = vtanh.f32 %v1681_v25  ;;  %v1682_v8 = vadd.f32 %v5455_v11, %v1614_v44  ;;  %v1365_v60 = vmul.f32 0.03125, %v1283_v53  ;;  %v1286_v41 = vpop.xlane.xlu1 %1285  ;;  %v1784_v16 = vpack.c.bf16 %v4133_v48, %v4129_v3  ;;  %v7052_v53 = vld [vmem:[#allocation8_spill] sm:$0xff] }
 0x270   : > { %v4137_v40 = vpop.eup %4136  ;;  %v1683_v54 = vadd.f32 %v5455_v11, %v1615_v36  ;;  %v1616_v9 = vmul.f32 %v5453_v6, %v1548_v29  ;;  %v1549_v1 = vmul.f32 %v4135_v52, %v7047_v56  ;;  %4162 = vrsqrt.f32 %v1428_v18 }
 0x271   : > { %v4139_v42 = vpop.eup %4138  ;;  %4164 = vtanh.f32 %v1682_v8  ;;  %v1429_v4 = vadd.f32 1e-05, %v1365_v60  ;;  %v1366_v47 = vmul.f32 0.03125, %v1286_v41  ;;  %3874 = vmatmul.mubr.msk.bf16.gmra.mxu1 %vm348_vm0, %v1784_v16  ;;  %v1289_v31 = vpop.xlane.xlu0 %1288 }
 0x272   : > { %v4141_v33 = vpop.eup %4140  ;;  %4166 = vtanh.f32 %v1683_v54  ;;  %v1684_v61 = vadd.f32 %v5455_v11, %v1616_v9  ;;  %v1617_v46 = vmul.f32 %v5453_v6, %v1549_v1  ;;  %v1367_v34 = vmul.f32 0.03125, %v1289_v31  ;;  %v7054_v31 = vld [vmem:[#allocation13_spill] sm:$0xff] }
 0x273   : > { %v4143_v13 = vpop.eup %4142  ;;  %v1550_v17 = vmul.f32 %v4141_v33, %v7048_v57  ;;  %4168 = vrsqrt.f32 %v1429_v4  ;;  %v1430_v32 = vadd.f32 1e-05, %v1366_v47  ;;  %v1292_v28 = vpop.xlane.xlu1 %1291  ;;  %v1785_v62 = vpack.c.bf16 %v4139_v42, %v4137_v40  ;;  %v7053_v40 = vld [vmem:[#allocation11_spill] sm:$0xff] }
 0x274   : > { %v4145_v0 = vpop.eup %4144  ;;  %4170 = vtanh.f32 %v1684_v61  ;;  %v1685_v10 = vadd.f32 %v5455_v11, %v1617_v46  ;;  %v1431_v22 = vadd.f32 1e-05, %v1367_v34  ;;  %v1368_v23 = vmul.f32 0.03125, %v1292_v28  ;;  %v7055_v28 = vld [vmem:[#allocation10_spill] sm:$0xff] }
 0x275   : > { %v4147_v30 = vpop.eup %4146  ;;  %v1618_v63 = vmul.f32 %v5453_v6, %v1550_v17  ;;  %v1551_v19 = vmul.f32 %v4145_v0, %v7049_v14  ;;  %4172 = vrsqrt.f32 %v1430_v32  ;;  %3877 = vmatprep.mubr.msk.bf16.mxu1 %vm348_vm0, %v1785_v62  ;;  %v1295_v7 = vpop.xlane.xlu0 %1294 }
 0x276   : > { %v4149_v39 = vpop.eup %4148  ;;  %4174 = vtanh.f32 %v1685_v10  ;;  %v1432_v45 = vadd.f32 1e-05, %v1368_v23  ;;  %v1369_v35 = vmul.f32 0.03125, %v1295_v7  ;;  %v1786_v49 = vpack.c.bf16 %v4147_v30, %v4143_v13 }
 0x277   : > { %v4151_v37 = vpop.eup %4150  ;;  %v1686_v20 = vadd.f32 %v5455_v11, %v1618_v63  ;;  %v1619_v38 = vmul.f32 %v5453_v6, %v1551_v19  ;;  %v1552_v59 = vmul.f32 %v4149_v39, %v7050_v12  ;;  %4176 = vrsqrt.f32 %v1431_v22  ;;  %v1298_v24 = vpop.xlane.xlu1 %1297  ;;  %v7056_v63 = vld [vmem:[#allocation12_spill] sm:$0xff] }
 0x278   : > { %v4153_v55 = vpop.eup %4152  ;;  %v1553_v51 = vmul.f32 %v4151_v37, %v7051_v43  ;;  %4178 = vrsqrt.f32 %v1432_v45  ;;  %v1433_v3 = vadd.f32 1e-05, %v1369_v35  ;;  %v1370_v26 = vmul.f32 0.03125, %v1298_v24  ;;  %v7057_v35 = vld [vmem:[#allocation15_spill] sm:$0xff] }
 0x279   : > { %v4155_v5 = vpop.eup %4154  ;;  %4180 = vtanh.f32 %v1686_v20  ;;  %v1687_v15 = vadd.f32 %v5455_v11, %v1619_v38  ;;  %v1620_v27 = vmul.f32 %v5453_v6, %v1552_v59  ;;  %3878 = vmatmul.mubr.msk.bf16.gmra.mxu1 %vm348_vm0, %v1786_v49  ;;  %v1301_v2 = vpop.xlane.xlu0 %1300  ;;  %v7058_v20 = vld [vmem:[#allocation17_spill] sm:$0xff] }
 0x27a   : > { %v4157_v25 = vpop.eup %4156  ;;  %v1621_v44 = vmul.f32 %v5453_v6, %v1553_v51  ;;  %v1554_v48 = vmul.f32 %v4155_v5, %v7052_v53  ;;  %4182 = vrsqrt.f32 %v1433_v3  ;;  %v1434_v36 = vadd.f32 1e-05, %v1370_v26  ;;  %v7059_v3 = vld [vmem:[#allocation14_spill] sm:$0xff] }
 0x27b   : > { %v4159_v50 = vpop.eup %4158  ;;  %4184 = vtanh.f32 %v1687_v15  ;;  %v1688_v29 = vadd.f32 %v5455_v11, %v1620_v27  ;;  %v1371_v18 = vmul.f32 0.03125, %v1301_v2  ;;  %v1304_v52 = vpop.xlane.xlu1 %1303  ;;  %v1787_v8 = vpack.c.bf16 %v4157_v25, %v4153_v55 }
 0x27c   : > { %v4161_v60 = vpop.eup %4160  ;;  %v1689_v41 = vadd.f32 %v5455_v11, %v1621_v44  ;;  %v1622_v16 = vmul.f32 %v5453_v6, %v1554_v48  ;;  %v1555_v54 = vmul.f32 %v4159_v50, %v7053_v40  ;;  %4186 = vrsqrt.f32 %v1434_v36  ;;  %v7060_v44 = vld [vmem:[#allocation16_spill] sm:$0xff] }
 0x27d   : > { %v4163_v9 = vpop.eup %4162  ;;  %4188 = vtanh.f32 %v1688_v29  ;;  %v1435_v56 = vadd.f32 1e-05, %v1371_v18  ;;  %v1372_v1 = vmul.f32 0.03125, %v1304_v52  ;;  %3881 = vmatprep.mubr.msk.bf16.mxu1 %vm348_vm0, %v1787_v8  ;;  %v7061_v8 = vld [vmem:[#allocation18_spill] sm:$0xff] }
 0x27e   : > { %v4165_v42 = vpop.eup %4164  ;;  %4190 = vtanh.f32 %v1689_v41  ;;  %v1690_v4 = vadd.f32 %v5455_v11, %v1622_v16  ;;  %v1623_v47 = vmul.f32 %v5453_v6, %v1555_v54  ;;  %v1556_v33 = vmul.f32 %v4163_v9, %v7054_v31  ;;  %v7062_v9 = vld [vmem:[#allocation26_spill] sm:$0xff] }
 0x27f   : > { %v4167_v61 = vpop.eup %4166  ;;  %4192 = vrsqrt.f32 %v1435_v56  ;;  %v1436_v46 = vadd.f32 1e-05, %v1372_v1  ;;  %v1788_v34 = vpack.c.bf16 %v4165_v42, %v4161_v60 }
 0x280   : > { %v4169_v13 = vpop.eup %4168  ;;  %4194 = vtanh.f32 %v1690_v4  ;;  %v1691_v57 = vadd.f32 %v5455_v11, %v1623_v47  ;;  %v1624_v17 = vmul.f32 %v5453_v6, %v1556_v33 }
 0x281   : > { %v4171_v32 = vpop.eup %4170  ;;  %v1557_v62 = vmul.f32 %v4169_v13, %v7055_v28  ;;  %4196 = vrsqrt.f32 %v1436_v46  ;;  %3882 = vmatmul.mubr.msk.bf16.gmra.mxu1 %vm348_vm0, %v1788_v34 }
 0x282   : > { %v4173_v0 = vpop.eup %4172  ;;  %v1692_v10 = vadd.f32 %v5455_v11, %v1624_v17  ;;  %v1789_v22 = vpack.c.bf16 %v4171_v32, %v4167_v61  ;;  %4198 = vtanh.f32 %v1691_v57 }
 0x283   : > { %v4175_v23 = vpop.eup %4174  ;;  %v1625_v30 = vmul.f32 %v5453_v6, %v1557_v62  ;;  %v1558_v14 = vmul.f32 %v4173_v0, %v7056_v63 }
 0x284   : > { %v4177_v19 = vpop.eup %4176  ;;  %4200 = vtanh.f32 %v1692_v10  ;;  %3885 = vmatprep.mubr.msk.bf16.mxu1 %vm348_vm0, %v1789_v22 }
 0x285   : > { %v4179_v7 = vpop.eup %4178  ;;  %v1693_v39 = vadd.f32 %v5455_v11, %v1625_v30  ;;  %v1626_v45 = vmul.f32 %v5453_v6, %v1558_v14  ;;  %v1559_v49 = vmul.f32 %v4177_v19, %v7057_v35 }
 0x286   : > { %v4181_v37 = vpop.eup %4180  ;;  %v1560_v38 = vmul.f32 %v4179_v7, %v7058_v20 }
 0x287   : > { %v4183_v12 = vpop.eup %4182  ;;  %v1694_v59 = vadd.f32 %v5455_v11, %v1626_v45  ;;  %v1627_v24 = vmul.f32 %v5453_v6, %v1559_v49  ;;  %v1790_v55 = vpack.c.bf16 %v4181_v37, %v4175_v23  ;;  %4202 = vtanh.f32 %v1693_v39 }
 0x288   : > { %v4185_v43 = vpop.eup %4184  ;;  %v1628_v51 = vmul.f32 %v5453_v6, %v1560_v38  ;;  %v1561_v26 = vmul.f32 %v4183_v12, %v7059_v3 }
 0x289   : > { %v4187_v5 = vpop.eup %4186  ;;  %4204 = vtanh.f32 %v1694_v59  ;;  %v1695_v15 = vadd.f32 %v5455_v11, %v1627_v24  ;;  %3886 = vmatmul.mubr.msk.bf16.gmra.mxu1 %vm348_vm0, %v1790_v55  ;;  %v7063_v55 = vld [vmem:[#allocation5_spill] sm:$0xff] }
 0x28a   : > { %v4189_v27 = vpop.eup %4188  ;;  %v1696_v2 = vadd.f32 %v5455_v11, %v1628_v51  ;;  %v1629_v25 = vmul.f32 %v5453_v6, %v1561_v26  ;;  %v1562_v53 = vmul.f32 %v4187_v5, %v7060_v44 }
 0x28b   : > { %v4191_v48 = vpop.eup %4190  ;;  %4206 = vtanh.f32 %v1695_v15  ;;  %v1791_v36 = vpack.c.bf16 %v4189_v27, %v4185_v43  ;;  %v1801_v43 = vsub.s32 3, %v7063_v55 }
 0x28c   : > { %v4193_v50 = vpop.eup %4192  ;;  %4208 = vtanh.f32 %v1696_v2  ;;  %v1697_v29 = vadd.f32 %v5455_v11, %v1629_v25  ;;  %v1630_v18 = vmul.f32 %v5453_v6, %v1562_v53 }
 0x28d   : > { %v4195_v52 = vpop.eup %4194  ;;  %v1563_v60 = vmul.f32 %v4193_v50, %v7061_v8  ;;  %3889 = vmatprep.mubr.msk.bf16.mxu1 %vm348_vm0, %v1791_v36 }
 0x28e   : > { %v4197_v41 = vpop.eup %4196  ;;  %v1698_v16 = vadd.f32 %v5455_v11, %v1630_v18  ;;  %v1792_v40 = vpack.c.bf16 %v4195_v52, %v4191_v48  ;;  %4210 = vtanh.f32 %v1697_v29 }
 0x28f   : > { %v1631_v54 = vmul.f32 %v5453_v6, %v1563_v60  ;;  %v1564_v56 = vmul.f32 %v4197_v41, %v7062_v9  ;;  %v4199_v1 = vpop.eup %4198 }
 0x290   : > { %4212 = vtanh.f32 %v1698_v16 }
 0x291   : > { %v4201_v42 = vpop.eup %4200  ;;  %v1699_v4 = vadd.f32 %v5455_v11, %v1631_v54  ;;  %v1632_v47 = vmul.f32 %v5453_v6, %v1564_v56  ;;  %3890 = vmatmul.mubr.msk.bf16.gmra.mxu1 %vm348_vm0, %v1792_v40 }
 0x292   : > { %v1793_v31 = vpack.c.bf16 %v4201_v42, %v4199_v1 }
 0x293   : > { %v1700_v33 = vadd.f32 %v5455_v11, %v1632_v47  ;;  %4214 = vtanh.f32 %v1699_v4 }
 0x294   : > { %3893 = vmatprep.mubr.msk.bf16.mxu1 %vm348_vm0, %v1793_v31  ;;  %v4203_v61 = vpop.eup %4202 }
 0x295   : > { %4216 = vtanh.f32 %v1700_v33 }
 0x296   : > { %v4205_v46 = vpop.eup %4204 }
 0x297   : > { %v1794_v34 = vpack.c.bf16 %v4205_v46, %v4203_v61 }
 0x298   : > { %v4207_v13 = vpop.eup %4206 }
 0x299   : > { %v4209_v57 = vpop.eup %4208  ;;  %3894 = vmatmul.mubr.msk.bf16.gmra.mxu1 %vm348_vm0, %v1794_v34 }
 0x29a   : > { %v1795_v17 = vpack.c.bf16 %v4209_v57, %v4207_v13 }
 0x29b   : > { %v4211_v32 = vpop.eup %4210 }
 0x29c   : > { %3897 = vmatprep.mubr.msk.bf16.mxu1 %vm348_vm0, %v1795_v17 }
 0x29d   : > { %v4213_v28 = vpop.eup %4212 }
 0x29e   : > { %v1796_v62 = vpack.c.bf16 %v4213_v28, %v4211_v32 }
 0x2a0   : > { %v4215_v0 = vpop.eup %4214 }
 0x2a1   : > { %3898 = vmatmul.mubr.msk.bf16.gmra.mxu1 %vm348_vm0, %v1796_v62 }
 0x2a2   : > { %v4217_v10 = vpop.eup %4216 }
 0x2a3   : > { %v1797_v22 = vpack.c.bf16 %v4217_v10, %v4215_v0 }
 0x2a5   : > { %3901 = vmatprep.mubr.msk.bf16.mxu1 %vm348_vm0, %v1797_v22 }
 0x2be   : > { %v1307_v23 = vpop.xlane.xlu0 %1306 }
 0x2bf   : > { %v1373_v30 = vmul.f32 0.03125, %v1307_v23 }
 0x2c1   : > { %v1437_v63 = vadd.f32 1e-05, %v1373_v30  ;;  %v1310_v14 = vpop.xlane.xlu1 %1309 }
 0x2c2   : > { %v1374_v19 = vmul.f32 0.03125, %v1310_v14 }
 0x2c3   : > { %4218 = vrsqrt.f32 %v1437_v63 }
 0x2c4   : > { %v1438_v7 = vadd.f32 1e-05, %v1374_v19 }
 0x2c6   : > { %4220 = vrsqrt.f32 %v1438_v7 }
 0x2d0   : > { %v4219_v39 = vpop.eup %4218 }
 0x2d1   : > { %v1565_v45 = vmul.f32 %v4219_v39, %v5510_v21  ;;  %v4483_v21 = vld [vmem:[%s6890_s2] sm:$0x3f] }
 0x2d3   : > { %v4221_v35 = vpop.eup %4220  ;;  %v1633_v49 = vmul.f32 %v5453_v6, %v1565_v45 }
 0x2d4   : > { %v1566_v37 = vmul.f32 %v4221_v35, %v5517_v58  ;;  %v5709_v58 = vrot.slane %v4483_v21, %v1801_v43 }
 0x2d5   : > { %v1701_v20 = vadd.f32 %v5455_v11, %v1633_v49 }
 0x2d6   : > { %v1634_v38 = vmul.f32 %v5453_v6, %v1566_v37 }
 0x2d7   : > { %4222 = vtanh.f32 %v1701_v20 }
 0x2d8   : > { %v1702_v12 = vadd.f32 %v5455_v11, %v1634_v38 }
 0x2da   : > { %4224 = vtanh.f32 %v1702_v12 }
 0x2e4   : > { %v4223_v59 = vpop.eup %4222 }
 0x2e7   : > { %v4225_v24 = vpop.eup %4224 }
 0x2e8   : > { %v1798_v51 = vpack.c.bf16 %v4225_v24, %v4223_v59 }
 0x2ea   : > { %3902 = vmatmul.mubr.msk.bf16.gmra.mxu1 %vm348_vm0, %v1798_v51 }
 0x2ee   : > { %v3843_v3 = vpop.f32.mrf.mxu1 }
 0x2ef   : > { %v5712_v6 = vadd.f32 %v3843_v3, %v5709_v58 }
 0x2f0   : > { %v1945_v11 = vpop.f32.mrf.mxu1 }
 0x2f1   : > { %7064 = vst [vmem:[#allocation19_spill] sm:$0xff] %v5712_v6  ;;  %v5715_v26 = vadd.f32 %v1945_v11, %v5709_v58  ;;  %v2206_v5 = vsel %vm348_vm0, %v5712_v6, 0.0 }
 0x2f2   : > { %v3844_v15 = vpop.f32.mrf.mxu1  ;;  %2207 = vadd.xlane.f32.xlu0 %v2206_v5 }
 0x2f3   : > { %7065 = vst [vmem:[#allocation20_spill] sm:$0xff] %v5715_v26  ;;  %v5720_v27 = vadd.f32 %v3844_v15, %v5709_v58  ;;  %v2200_v53 = vsel %vm348_vm0, %v5715_v26, 0.0 }
 0x2f4   : > { %v1948_v2 = vpop.f32.mrf.mxu1 }
 0x2f5   : > { %7066 = vst [vmem:[#allocation21_spill] sm:$0xff] %v5720_v27  ;;  %v5723_v25 = vadd.f32 %v1948_v2, %v5709_v58  ;;  %v2209_v44 = vsel %vm348_vm0, %v5720_v27, 0.0 }
 0x2f6   : > { %2210 = vadd.xlane.f32.xlu1 %v2209_v44  ;;  %v3847_v48 = vpop.f32.mrf.mxu1  ;;  %2201 = vadd.xlane.f32.xlu0 %v2200_v53 }
 0x2f7   : > { %7067 = vst [vmem:[#allocation23_spill] sm:$0xff] %v5723_v25  ;;  %v5730_v36 = vadd.f32 %v3847_v48, %v5709_v58  ;;  %v2203_v18 = vsel %vm348_vm0, %v5723_v25, 0.0 }
 0x2f8   : > { %v1961_v50 = vpop.f32.mrf.mxu1 }
 0x2f9   : > { %v5733_v29 = vadd.f32 %v1961_v50, %v5709_v58  ;;  %v2218_v52 = vsel %vm348_vm0, %v5730_v36, 0.0 }
 0x2fa   : > { %2204 = vadd.xlane.f32.xlu1 %v2203_v18  ;;  %v3848_v8 = vpop.f32.mrf.mxu1  ;;  %2219 = vadd.xlane.f32.xlu0 %v2218_v52 }
 0x2fb   : > { %7068 = vst [vmem:[#allocation25_spill] sm:$0xff] %v5733_v29  ;;  %v5740_v60 = vadd.f32 %v3848_v8, %v5709_v58  ;;  %v2212_v54 = vsel %vm348_vm0, %v5733_v29, 0.0 }
 0x2fc   : > { %v1964_v41 = vpop.f32.mrf.mxu1 }
 0x2fd   : > { %v5743_v16 = vadd.f32 %v1964_v41, %v5709_v58  ;;  %v2221_v40 = vsel %vm348_vm0, %v5740_v60, 0.0 }
 0x2fe   : > { %2222 = vadd.xlane.f32.xlu1 %v2221_v40  ;;  %v3851_v9 = vpop.f32.mrf.mxu1  ;;  %2213 = vadd.xlane.f32.xlu0 %v2212_v54 }
 0x2ff   : > { %7069 = vst [vmem:[#allocation22_spill] sm:$0xff] %v5743_v16  ;;  %v5750_v56 = vadd.f32 %v3851_v9, %v5709_v58  ;;  %v2215_v4 = vsel %vm348_vm0, %v5743_v16, 0.0 }
 0x300   : > { %v1977_v1 = vpop.f32.mrf.mxu1 }
 0x301   : > { %v5753_v42 = vadd.f32 %v1977_v1, %v5709_v58  ;;  %v2230_v47 = vsel %vm348_vm0, %v5750_v56, 0.0 }
 0x302   : > { %2216 = vadd.xlane.f32.xlu1 %v2215_v4  ;;  %v3852_v31 = vpop.f32.mrf.mxu1  ;;  %2231 = vadd.xlane.f32.xlu0 %v2230_v47 }
 0x303   : > { %v5760_v33 = vadd.f32 %v3852_v31, %v5709_v58  ;;  %v2224_v13 = vsel %vm348_vm0, %v5753_v42, 0.0 }
 0x304   : > { %v1980_v61 = vpop.f32.mrf.mxu1 }
 0x305   : > { %v5763_v46 = vadd.f32 %v1980_v61, %v5709_v58  ;;  %v2233_v34 = vsel %vm348_vm0, %v5760_v33, 0.0 }
 0x306   : > { %2234 = vadd.xlane.f32.xlu1 %v2233_v34  ;;  %v3855_v57 = vpop.f32.mrf.mxu1  ;;  %2225 = vadd.xlane.f32.xlu0 %v2224_v13 }
 0x307   : > { %v5770_v17 = vadd.f32 %v3855_v57, %v5709_v58  ;;  %v2227_v62 = vsel %vm348_vm0, %v5763_v46, 0.0 }
 0x308   : > { %v1993_v32 = vpop.f32.mrf.mxu1 }
 0x309   : > { %v5773_v28 = vadd.f32 %v1993_v32, %v5709_v58  ;;  %v2242_v0 = vsel %vm348_vm0, %v5770_v17, 0.0 }
 0x30a   : > { %2228 = vadd.xlane.f32.xlu1 %v2227_v62  ;;  %v3856_v10 = vpop.f32.mrf.mxu1  ;;  %2243 = vadd.xlane.f32.xlu0 %v2242_v0 }
 0x30b   : > { %v5780_v22 = vadd.f32 %v3856_v10, %v5709_v58  ;;  %v2236_v14 = vsel %vm348_vm0, %v5773_v28, 0.0 }
 0x30c   : > { %v1996_v23 = vpop.f32.mrf.mxu1 }
 0x30d   : > { %v5783_v30 = vadd.f32 %v1996_v23, %v5709_v58  ;;  %v2245_v63 = vsel %vm348_vm0, %v5780_v22, 0.0 }
 0x30e   : > { %2246 = vadd.xlane.f32.xlu1 %v2245_v63  ;;  %v3859_v19 = vpop.f32.mrf.mxu1  ;;  %2237 = vadd.xlane.f32.xlu0 %v2236_v14 }
 0x30f   : > { %v5790_v7 = vadd.f32 %v3859_v19, %v5709_v58  ;;  %v2239_v35 = vsel %vm348_vm0, %v5783_v30, 0.0 }
 0x310   : > { %v2009_v39 = vpop.f32.mrf.mxu1 }
 0x311   : > { %7070 = vst [vmem:[#allocation24_spill] sm:$0xff] %v5790_v7  ;;  %v5793_v45 = vadd.f32 %v2009_v39, %v5709_v58  ;;  %v2254_v49 = vsel %vm348_vm0, %v5790_v7, 0.0 }
 0x312   : > { %2240 = vadd.xlane.f32.xlu1 %v2239_v35  ;;  %v3860_v37 = vpop.f32.mrf.mxu1  ;;  %2255 = vadd.xlane.f32.xlu0 %v2254_v49 }
 0x313   : > { %7071 = vst [vmem:[#allocation7_spill] sm:$0xff] %v5793_v45  ;;  %v5800_v20 = vadd.f32 %v3860_v37, %v5709_v58  ;;  %v2248_v24 = vsel %vm348_vm0, %v5793_v45, 0.0 }
 0x314   : > { %v2012_v38 = vpop.f32.mrf.mxu1 }
 0x315   : > { %7072 = vst [vmem:[#allocation9_spill] sm:$0xff] %v5800_v20  ;;  %v5803_v12 = vadd.f32 %v2012_v38, %v5709_v58  ;;  %v2257_v59 = vsel %vm348_vm0, %v5800_v20, 0.0 }
 0x316   : > { %2258 = vadd.xlane.f32.xlu1 %v2257_v59  ;;  %v3863_v43 = vpop.f32.mrf.mxu1  ;;  %2249 = vadd.xlane.f32.xlu0 %v2248_v24 }
 0x317   : > { %7073 = vst [vmem:[#allocation6_spill] sm:$0xff] %v5803_v12  ;;  %v5810_v51 = vadd.f32 %v3863_v43, %v5709_v58  ;;  %v2251_v11 = vsel %vm348_vm0, %v5803_v12, 0.0 }
 0x318   : > { %v2025_v21 = vpop.f32.mrf.mxu1 }
 0x319   : > { %v5813_v3 = vadd.f32 %v2025_v21, %v5709_v58  ;;  %v2266_v5 = vsel %vm348_vm0, %v5810_v51, 0.0 }
 0x31a   : > { %2252 = vadd.xlane.f32.xlu1 %v2251_v11  ;;  %v3864_v15 = vpop.f32.mrf.mxu1  ;;  %2267 = vadd.xlane.f32.xlu0 %v2266_v5 }
 0x31b   : > { %7074 = vst [vmem:[#allocation8_spill] sm:$0xff] %v5813_v3  ;;  %v5820_v2 = vadd.f32 %v3864_v15, %v5709_v58  ;;  %v2260_v50 = vsel %vm348_vm0, %v5813_v3, 0.0 }
 0x31c   : > { %v2028_v44 = vpop.f32.mrf.mxu1 }
 0x31d   : > { %v5823_v53 = vadd.f32 %v2028_v44, %v5709_v58  ;;  %v2269_v48 = vsel %vm348_vm0, %v5820_v2, 0.0 }
 0x31e   : > { %2270 = vadd.xlane.f32.xlu1 %v2269_v48  ;;  %2261 = vadd.xlane.f32.xlu0 %v2260_v50 }
 0x31f   : > { %7075 = vst [vmem:[#allocation11_spill] sm:$0xff] %v5823_v53  ;;  %v2263_v52 = vsel %vm348_vm0, %v5823_v53, 0.0 }
 0x321   : > { %v3867_v18 = vpop.f32.mrf.mxu1 }
 0x322   : > { %v5832_v8 = vadd.f32 %v3867_v18, %v5709_v58  ;;  %2264 = vadd.xlane.f32.xlu1 %v2263_v52 }
 0x323   : > { %v2041_v41 = vpop.f32.mrf.mxu1 }
 0x324   : > { %v5835_v40 = vadd.f32 %v2041_v41, %v5709_v58  ;;  %v2278_v54 = vsel %vm348_vm0, %v5832_v8, 0.0 }
 0x325   : > { %2279 = vadd.xlane.f32.xlu0 %v2278_v54  ;;  %v3868_v9 = vpop.f32.mrf.mxu1 }
 0x326   : > { %v5840_v1 = vadd.f32 %v3868_v9, %v5709_v58  ;;  %v2272_v61 = vsel %vm348_vm0, %v5835_v40, 0.0 }
 0x327   : > { %v2044_v4 = vpop.f32.mrf.mxu1 }
 0x328   : > { %v5843_v47 = vadd.f32 %v2044_v4, %v5709_v58  ;;  %v2281_v31 = vsel %vm348_vm0, %v5840_v1, 0.0 }
 0x329   : > { %2282 = vadd.xlane.f32.xlu1 %v2281_v31  ;;  %2273 = vadd.xlane.f32.xlu0 %v2272_v61  ;;  %v3871_v34 = vpop.f32.mrf.mxu1 }
 0x32a   : > { %v5850_v13 = vadd.f32 %v3871_v34, %v5709_v58  ;;  %v2275_v62 = vsel %vm348_vm0, %v5843_v47, 0.0 }
 0x32b   : > { %v2057_v57 = vpop.f32.mrf.mxu1 }
 0x32c   : > { %v5853_v32 = vadd.f32 %v2057_v57, %v5709_v58  ;;  %v2290_v0 = vsel %vm348_vm0, %v5850_v13, 0.0 }
 0x32d   : > { %2276 = vadd.xlane.f32.xlu1 %v2275_v62  ;;  %2291 = vadd.xlane.f32.xlu0 %v2290_v0  ;;  %v3872_v10 = vpop.f32.mrf.mxu1 }
 0x32e   : > { %v5860_v23 = vadd.f32 %v3872_v10, %v5709_v58  ;;  %v2284_v39 = vsel %vm348_vm0, %v5853_v32, 0.0 }
 0x32f   : > { %v2060_v63 = vpop.f32.mrf.mxu1 }
 0x330   : > { %v5863_v14 = vadd.f32 %v2060_v63, %v5709_v58  ;;  %v2293_v19 = vsel %vm348_vm0, %v5860_v23, 0.0 }
 0x331   : > { %2294 = vadd.xlane.f32.xlu1 %v2293_v19  ;;  %2285 = vadd.xlane.f32.xlu0 %v2284_v39  ;;  %v3875_v35 = vpop.f32.mrf.mxu1 }
 0x332   : > { %v5870_v49 = vadd.f32 %v3875_v35, %v5709_v58  ;;  %v2287_v59 = vsel %vm348_vm0, %v5863_v14, 0.0 }
 0x333   : > { %v2073_v37 = vpop.f32.mrf.mxu1 }
 0x334   : > { %7076 = vst [vmem:[#allocation13_spill] sm:$0xff] %v5870_v49  ;;  %v5873_v38 = vadd.f32 %v2073_v37, %v5709_v58  ;;  %v2302_v24 = vsel %vm348_vm0, %v5870_v49, 0.0 }
 0x335   : > { %2288 = vadd.xlane.f32.xlu1 %v2287_v59  ;;  %2303 = vadd.xlane.f32.xlu0 %v2302_v24  ;;  %v3876_v43 = vpop.f32.mrf.mxu1 }
 0x336   : > { %7077 = vst [vmem:[#allocation10_spill] sm:$0xff] %v5873_v38  ;;  %v5880_v21 = vadd.f32 %v3876_v43, %v5709_v58  ;;  %v2296_v44 = vsel %vm348_vm0, %v5873_v38, 0.0 }
 0x337   : > { %v2076_v11 = vpop.f32.mrf.mxu1 }
 0x338   : > { %7078 = vst [vmem:[#allocation12_spill] sm:$0xff] %v5880_v21  ;;  %v5883_v5 = vadd.f32 %v2076_v11, %v5709_v58  ;;  %v2305_v15 = vsel %vm348_vm0, %v5880_v21, 0.0 }
 0x339   : > { %2306 = vadd.xlane.f32.xlu1 %v2305_v15  ;;  %2297 = vadd.xlane.f32.xlu0 %v2296_v44  ;;  %v3879_v48 = vpop.f32.mrf.mxu1 }
 0x33a   : > { %7079 = vst [vmem:[#allocation15_spill] sm:$0xff] %v5883_v5  ;;  %v5890_v50 = vadd.f32 %v3879_v48, %v5709_v58  ;;  %v2299_v41 = vsel %vm348_vm0, %v5883_v5, 0.0 }
 0x33b   : > { %v2089_v18 = vpop.f32.mrf.mxu1 }
 0x33c   : > { %v5893_v52 = vadd.f32 %v2089_v18, %v5709_v58  ;;  %v2314_v54 = vsel %vm348_vm0, %v5890_v50, 0.0 }
 0x33d   : > { %2300 = vadd.xlane.f32.xlu1 %v2299_v41  ;;  %2315 = vadd.xlane.f32.xlu0 %v2314_v54  ;;  %v3880_v9 = vpop.f32.mrf.mxu1 }
 0x33e   : > { %7080 = vst [vmem:[#allocation17_spill] sm:$0xff] %v5893_v52  ;;  %v5900_v4 = vadd.f32 %v3880_v9, %v5709_v58  ;;  %v2308_v57 = vsel %vm348_vm0, %v5893_v52, 0.0 }
 0x33f   : > { %v2092_v31 = vpop.f32.mrf.mxu1 }
 0x340   : > { %v5903_v61 = vadd.f32 %v2092_v31, %v5709_v58  ;;  %v2317_v34 = vsel %vm348_vm0, %v5900_v4, 0.0 }
 0x341   : > { %2318 = vadd.xlane.f32.xlu1 %v2317_v34  ;;  %2309 = vadd.xlane.f32.xlu0 %v2308_v57  ;;  %v3883_v62 = vpop.f32.mrf.mxu1 }
 0x342   : > { %7081 = vst [vmem:[#allocation14_spill] sm:$0xff] %v5903_v61  ;;  %v5910_v0 = vadd.f32 %v3883_v62, %v5709_v58  ;;  %v2311_v19 = vsel %vm348_vm0, %v5903_v61, 0.0 }
 0x343   : > { %v2105_v10 = vpop.f32.mrf.mxu1 }
 0x344   : > { %v5913_v63 = vadd.f32 %v2105_v10, %v5709_v58  ;;  %v2326_v39 = vsel %vm348_vm0, %v5910_v0, 0.0 }
 0x345   : > { %2312 = vadd.xlane.f32.xlu1 %v2311_v19  ;;  %2327 = vadd.xlane.f32.xlu0 %v2326_v39  ;;  %v3884_v35 = vpop.f32.mrf.mxu1 }
 0x346   : > { %v5920_v37 = vadd.f32 %v3884_v35, %v5709_v58  ;;  %v2320_v11 = vsel %vm348_vm0, %v5913_v63, 0.0 }
 0x347   : > { %v2108_v59 = vpop.f32.mrf.mxu1 }
 0x348   : > { %v5923_v24 = vadd.f32 %v2108_v59, %v5709_v58  ;;  %v2329_v43 = vsel %vm348_vm0, %v5920_v37, 0.0 }
 0x349   : > { %2330 = vadd.xlane.f32.xlu1 %v2329_v43  ;;  %2321 = vadd.xlane.f32.xlu0 %v2320_v11  ;;  %v3887_v15 = vpop.f32.mrf.mxu1 }
 0x34a   : > { %v5930_v44 = vadd.f32 %v3887_v15, %v5709_v58  ;;  %v2323_v41 = vsel %vm348_vm0, %v5923_v24, 0.0 }
 0x34b   : > { %v2121_v48 = vpop.f32.mrf.mxu1 }
 0x34c   : > { %v5933_v18 = vadd.f32 %v2121_v48, %v5709_v58  ;;  %v2338_v54 = vsel %vm348_vm0, %v5930_v44, 0.0 }
 0x34d   : > { %2324 = vadd.xlane.f32.xlu1 %v2323_v41  ;;  %2339 = vadd.xlane.f32.xlu0 %v2338_v54  ;;  %v3888_v9 = vpop.f32.mrf.mxu1 }
 0x34e   : > { %v5940_v31 = vadd.f32 %v3888_v9, %v5709_v58  ;;  %v2332_v10 = vsel %vm348_vm0, %v5933_v18, 0.0 }
 0x34f   : > { %v2124_v34 = vpop.f32.mrf.mxu1 }
 0x350   : > { %v5943_v57 = vadd.f32 %v2124_v34, %v5709_v58  ;;  %v2341_v62 = vsel %vm348_vm0, %v5940_v31, 0.0 }
 0x351   : > { %2342 = vadd.xlane.f32.xlu1 %v2341_v62  ;;  %2333 = vadd.xlane.f32.xlu0 %v2332_v10  ;;  %v3891_v19 = vpop.f32.mrf.mxu1 }
 0x352   : > { %v5950_v39 = vadd.f32 %v3891_v19, %v5709_v58  ;;  %v2335_v59 = vsel %vm348_vm0, %v5943_v57, 0.0 }
 0x353   : > { %v5952_v35 = vpop.f32.mrf.mxu1 }
 0x354   : > { %7082 = vst [vmem:[#allocation16_spill] sm:$0xff] %v5950_v39  ;;  %v2350_v43 = vsel %vm348_vm0, %v5950_v39, 0.0 }
 0x355   : > { %2336 = vadd.xlane.f32.xlu1 %v2335_v59  ;;  %2351 = vadd.xlane.f32.xlu0 %v2350_v43  ;;  %v3892_v11 = vpop.f32.mrf.mxu1 }
 0x356   : > { %v5959_v15 = vadd.f32 %v3892_v11, %v5709_v58 }
 0x357   : > { %v5961_v48 = vpop.f32.mrf.mxu1 }
 0x358   : > { %7083 = vst [vmem:[#allocation18_spill] sm:$0xff] %v5959_v15  ;;  %v2353_v41 = vsel %vm348_vm0, %v5959_v15, 0.0 }
 0x359   : > { %2354 = vadd.xlane.f32.xlu1 %v2353_v41  ;;  %v3895_v54 = vpop.f32.mrf.mxu1 }
 0x35a   : > { %v5966_v9 = vadd.f32 %v3895_v54, %v5709_v58 }
 0x35b   : > { %v2153_v34 = vpop.f32.mrf.mxu1 }
 0x35c   : > { %v5969_v62 = vadd.f32 %v2153_v34, %v5709_v58  ;;  %v2362_v10 = vsel %vm348_vm0, %v5966_v9, 0.0 }
 0x35d   : > { %2363 = vadd.xlane.f32.xlu0 %v2362_v10  ;;  %v3896_v19 = vpop.f32.mrf.mxu1 }
 0x35e   : > { %7084 = vst [vmem:[#allocation26_spill] sm:$0xff] %v5969_v62  ;;  %v5974_v59 = vadd.f32 %v3896_v19, %v5709_v58  ;;  %v2356_v54 = vsel %vm348_vm0, %v5969_v62, 0.0 }
 0x35f   : > { %v2156_v43 = vpop.f32.mrf.mxu1 }
 0x360   : > { %7085 = vst [vmem:[#allocation27_spill] sm:$0xff] %v5974_v59  ;;  %v5977_v11 = vadd.f32 %v2156_v43, %v5709_v58  ;;  %v2365_v41 = vsel %vm348_vm0, %v5974_v59, 0.0 }
 0x361   : > { %2366 = vadd.xlane.f32.xlu1 %v2365_v41  ;;  %2357 = vadd.xlane.f32.xlu0 %v2356_v54  ;;  %v3899_v34 = vpop.f32.mrf.mxu1 }
 0x362   : > { %7086 = vst [vmem:[#allocation28_spill] sm:$0xff] %v5977_v11  ;;  %v5984_v5 = vadd.f32 %v3899_v34, %v5709_v58  ;;  %v2359_v43 = vsel %vm348_vm0, %v5977_v11, 0.0 }
 0x363   : > { %v2169_v10 = vpop.f32.mrf.mxu1 }
 0x364   : > { %v5987_v19 = vadd.f32 %v2169_v10, %v5709_v58  ;;  %v2374_v55 = vsel %vm348_vm0, %v5984_v5, 0.0 }
 0x365   : > { %2360 = vadd.xlane.f32.xlu1 %v2359_v43  ;;  %2375 = vadd.xlane.f32.xlu0 %v2374_v55  ;;  %v3900_v38 = vpop.f32.mrf.mxu1 }
 0x366   : > { %v5994_v41 = vadd.f32 %v3900_v38, %v5709_v58  ;;  %v2368_v15 = vsel %vm348_vm0, %v5987_v19, 0.0 }
 0x367   : > { %v2172_v54 = vpop.f32.mrf.mxu1 }
 0x368   : > { %v5997_v34 = vadd.f32 %v2172_v54, %v5709_v58  ;;  %v2377_v10 = vsel %vm348_vm0, %v5994_v41, 0.0 }
 0x369   : > { %2378 = vadd.xlane.f32.xlu1 %v2377_v10  ;;  %2369 = vadd.xlane.f32.xlu0 %v2368_v15 }
 0x36a   : > { %v2371_v43 = vsel %vm348_vm0, %v5997_v34, 0.0 }
 0x36d   : > { %2372 = vadd.xlane.f32.xlu1 %v2371_v43 }
 0x37b   : > { %v6005_v55 = vpop.xlane.xlu0 %2207 }
 0x37c   : > { %7087 = vst [vmem:[#allocation29_spill] sm:$0xff] %v6005_v55 }
 0x37f   : > { %v6007_v38 = vpop.xlane.xlu1 %2210  ;;  %v6009_v39 = vpop.xlane.xlu0 %2201 }
 0x380   : > { %7088 = vst [vmem:[#allocation30_spill] sm:$0xff] %v6007_v38  ;;  %7089 = vst [vmem:[#allocation31_spill] sm:$0xff] %v6009_v39 }
 0x383   : > { %v6011_v54 = vpop.xlane.xlu1 %2204  ;;  %v2220_v21 = vpop.xlane.xlu0 %2219 }
 0x384   : > { %7090 = vst [vmem:[#allocation32_spill] sm:$0xff] %v6011_v54  ;;  %v2398_v53 = vmul.f32 0.03125, %v2220_v21  ;;  %v6051_v21 = vadd.f32 %v5961_v48, %v5709_v58 }
 0x387   : > { %v2223_v12 = vpop.xlane.xlu1 %2222  ;;  %v6013_v45 = vpop.xlane.xlu0 %2213 }
 0x38b   : > { %v6015_v25 = vpop.xlane.xlu1 %2216  ;;  %v2232_v10 = vpop.xlane.xlu0 %2231 }
 0x38c   : > { %7091 = vst [vmem:[#allocation33_spill] sm:$0xff] %v6015_v25  ;;  %v2402_v25 = vmul.f32 0.03125, %v2232_v10 }
 0x38f   : > { %v2235_v15 = vpop.xlane.xlu1 %2234  ;;  %v2226_v26 = vpop.xlane.xlu0 %2225 }
 0x390   : > { %v2403_v10 = vmul.f32 0.03125, %v2235_v15 }
 0x393   : > { %v2229_v49 = vpop.xlane.xlu1 %2228  ;;  %v2244_v20 = vpop.xlane.xlu0 %2243 }
 0x394   : > { %v2406_v15 = vmul.f32 0.03125, %v2244_v20 }
 0x397   : > { %v2247_v43 = vpop.xlane.xlu1 %2246  ;;  %v2238_v7 = vpop.xlane.xlu0 %2237 }
 0x39b   : > { %v6017_v27 = vpop.xlane.xlu1 %2240  ;;  %v6019_v11 = vpop.xlane.xlu0 %2255 }
 0x39c   : > { %7092 = vst [vmem:[#allocation34_spill] sm:$0xff] %v6019_v11  ;;  %v6038_v11 = vadd.f32 %v5952_v35, %v5709_v58  ;;  %v2399_v35 = vmul.f32 0.03125, %v2223_v12  ;;  %v6071_v12 = vsub.f32 %v5750_v56, %v2402_v25 }
 0x39e   : > { %7097 = vst [vmem:[#allocation39_spill] sm:$0xff] %v6038_v11  ;;  %7101 = vst [vmem:[#allocation43_spill] sm:$0xff] %v6071_v12 }
 0x39f   : > { %v6021_v39 = vpop.xlane.xlu1 %2258  ;;  %v6023_v54 = vpop.xlane.xlu0 %2249 }
 0x3a0   : > { %7093 = vst [vmem:[#allocation35_spill] sm:$0xff] %v6021_v39  ;;  %7094 = vst [vmem:[#allocation36_spill] sm:$0xff] %v6023_v54 }
 0x3a3   : > { %v6025_v38 = vpop.xlane.xlu1 %2252  ;;  %v6027_v6 = vpop.xlane.xlu0 %2267 }
 0x3a4   : > { %7095 = vst [vmem:[#allocation37_spill] sm:$0xff] %v6025_v38 }
 0x3a7   : > { %v6029_v62 = vpop.xlane.xlu1 %2270  ;;  %v6031_v61 = vpop.xlane.xlu0 %2261 }
 0x3a8   : > { %7096 = vst [vmem:[#allocation38_spill] sm:$0xff] %v6031_v61 }
 0x3aa   : > { %v3903_v55 = vpop.f32.mrf.mxu1 }
 0x3ab   : > { %v6034_v52 = vadd.f32 %v3903_v55, %v5709_v58  ;;  %v6040_v39 = vpop.xlane.xlu1 %2264  ;;  %v6054_v55 = vsub.f32 %v5730_v36, %v2398_v53  ;;  %v6068_v36 = vsub.f32 %v5740_v60, %v2399_v35  ;;  %v2401_v60 = vmul.f32 0.03125, %v2229_v49 }
 0x3ac   : > { %v2185_v3 = vpop.f32.mrf.mxu1  ;;  %7098 = vst [vmem:[#allocation40_spill] sm:$0xff] %v6040_v39 }
 0x3ad   : > { %v2386_v38 = vsel %vm348_vm0, %v6034_v52, 0.0  ;;  %v6057_v39 = vadd.f32 %v2185_v3, %v5709_v58  ;;  %7100 = vst [vmem:[#allocation42_spill] sm:$0xff] %v6068_v36  ;;  %v2347_v3 = vsel %vm348_vm0, %v6051_v21, 0.0  ;;  %v2526_v53 = vmul.f32 %v6054_v55, %v6054_v55 }
 0x3ae   : > { %2387 = vadd.xlane.f32.xlu0 %v2386_v38  ;;  %v3904_v54 = vpop.f32.mrf.mxu1  ;;  %v6044_v16 = vpop.xlane.xlu0 %2279  ;;  %v2344_v38 = vsel %vm348_vm0, %v6038_v11, 0.0  ;;  %v2400_v11 = vmul.f32 0.03125, %v2226_v26  ;;  %v2527_v35 = vmul.f32 %v6068_v36, %v6068_v36  ;;  %v2530_v26 = vmul.f32 %v6071_v12, %v6071_v12 }
 0x3af   : > { %v6047_v61 = vadd.f32 %v3904_v54, %v5709_v58  ;;  %v2602_v56 = vsel %vm348_vm0, %v2526_v53, 0.0  ;;  %v6102_v53 = vsub.f32 %v5763_v46, %v2401_v60  ;;  %v2407_v12 = vmul.f32 0.03125, %v2247_v43 }
 0x3b0   : > { %v2188_v29 = vpop.f32.mrf.mxu1  ;;  %v2404_v36 = vmul.f32 0.03125, %v2238_v7  ;;  %v2614_v20 = vsel %vm348_vm0, %v2530_v26, 0.0  ;;  %v2405_v43 = vmul.f32 0.03125, %v6017_v27 }
 0x3b1   : > { %7099 = vst [vmem:[#allocation41_spill] sm:$0xff] %v6047_v61  ;;  %v2389_v54 = vsel %vm348_vm0, %v6047_v61, 0.0  ;;  %v6078_v61 = vadd.f32 %v2188_v29, %v5709_v58  ;;  %v6090_v58 = vsub.f32 %v5760_v33, %v2403_v10  ;;  %v6093_v29 = vsub.f32 %v5753_v42, %v2400_v11 }
 0x3b2   : > { %v6063_v59 = vpop.xlane.xlu1 %2282  ;;  %2345 = vadd.xlane.f32.xlu0 %v2344_v38  ;;  %2390 = vadd.xlane.f32.xlu1 %v2389_v54  ;;  %v6065_v48 = vpop.xlane.xlu0 %2273  ;;  %v2380_v38 = vsel %vm348_vm0, %v6057_v39, 0.0  ;;  %v2605_v33 = vsel %vm348_vm0, %v2527_v35, 0.0  ;;  %v6106_v42 = vsub.f32 %v5770_v17, %v2406_v15  ;;  %v6118_v7 = vsub.f32 %v5780_v22, %v2407_v12 }
 0x3b3   : > { %v2531_v11 = vmul.f32 %v6090_v58, %v6090_v58  ;;  %v2528_v10 = vmul.f32 %v6093_v29, %v6093_v29  ;;  %v6121_v17 = vsub.f32 %v5773_v28, %v2404_v36  ;;  %v2529_v60 = vmul.f32 %v6102_v53, %v6102_v53 }
 0x3b4   : > { %v2414_v35 = vmul.f32 0.03125, %v6027_v6  ;;  %v6136_v27 = vsub.f32 %v5783_v30, %v2405_v43  ;;  %v2535_v6 = vmul.f32 %v6118_v7, %v6118_v7  ;;  %v2419_v43 = vmul.f32 0.03125, %v6063_v59 }
 0x3b5   : > { %v2617_v26 = vsel %vm348_vm0, %v2531_v11, 0.0  ;;  %v2608_v15 = vsel %vm348_vm0, %v2528_v10, 0.0  ;;  %v2611_v22 = vsel %vm348_vm0, %v2529_v60, 0.0  ;;  %v2532_v36 = vmul.f32 %v6121_v17, %v6121_v17 }
 0x3b6   : > { %v6082_v54 = vpop.xlane.xlu1 %2276  ;;  %2348 = vadd.xlane.f32.xlu1 %v2347_v3  ;;  %2381 = vadd.xlane.f32.xlu0 %v2380_v38  ;;  %v2292_v25 = vpop.xlane.xlu0 %2291  ;;  %v2383_v3 = vsel %vm348_vm0, %v6078_v61, 0.0  ;;  %v6144_v12 = vsub.f32 %v5810_v51, %v2414_v35  ;;  %v2418_v11 = vmul.f32 0.03125, %v6044_v16  ;;  %v2629_v60 = vsel %vm348_vm0, %v2535_v6, 0.0 }
 0x3b7   : > { %v2533_v51 = vmul.f32 %v6136_v27, %v6136_v27  ;;  %v2416_v35 = vmul.f32 0.03125, %v6065_v48  ;;  %v6168_v6 = vsub.f32 %v5840_v1, %v2419_v43 }
 0x3b8   : > { %7102 = vst [vmem:[#allocation44_spill] sm:$0xff] %v6144_v12  ;;  %v6160_v16 = vsub.f32 %v5832_v8, %v2418_v11 }
 0x3b9   : > { %v6173_v8 = vsub.f32 %v5835_v40, %v2416_v35  ;;  %v2547_v43 = vmul.f32 %v6168_v6, %v6168_v6 }
 0x3ba   : > { %v6097_v38 = vpop.xlane.xlu1 %2294  ;;  %2384 = vadd.xlane.f32.xlu1 %v2383_v3  ;;  %2603 = vadd.xlane.f32.xlu0 %v2602_v56  ;;  %v6099_v49 = vpop.xlane.xlu0 %2285  ;;  %v2534_v3 = vmul.f32 %v6106_v42, %v6106_v42 }
 0x3bb   : > { %v2423_v40 = vmul.f32 0.03125, %v6097_v38  ;;  %v2665_v38 = vsel %vm348_vm0, %v2547_v43, 0.0 }
 0x3bc   : > { %v2626_v10 = vsel %vm348_vm0, %v2534_v3, 0.0  ;;  %v2542_v3 = vmul.f32 %v6144_v12, %v6144_v12 }
 0x3be   : > { %v6113_v56 = vpop.xlane.xlu1 %2288  ;;  %2606 = vadd.xlane.f32.xlu1 %v2605_v33  ;;  %2615 = vadd.xlane.f32.xlu0 %v2614_v20  ;;  %v6115_v46 = vpop.xlane.xlu0 %2303  ;;  %v2415_v20 = vmul.f32 0.03125, %v6029_v62  ;;  %v2650_v48 = vsel %vm348_vm0, %v2542_v3, 0.0  ;;  %v2544_v3 = vmul.f32 %v6173_v8, %v6173_v8 }
 0x3c0   : > { %v6157_v62 = vsub.f32 %v5820_v2, %v2415_v20  ;;  %v2422_v2 = vmul.f32 0.03125, %v2292_v25  ;;  %v2623_v20 = vsel %vm348_vm0, %v2533_v51, 0.0 }
 0x3c2   : > { %v6131_v33 = vpop.xlane.xlu1 %2306  ;;  %2618 = vadd.xlane.f32.xlu1 %v2617_v26  ;;  %2609 = vadd.xlane.f32.xlu0 %v2608_v15  ;;  %v6133_v28 = vpop.xlane.xlu0 %2297  ;;  %v2620_v15 = vsel %vm348_vm0, %v2532_v36, 0.0  ;;  %v2417_v36 = vmul.f32 0.03125, %v6082_v54  ;;  %v2543_v11 = vmul.f32 %v6157_v62, %v6157_v62  ;;  %v6186_v25 = vsub.f32 %v5850_v13, %v2422_v2 }
 0x3c3   : > { %v6197_v13 = vsub.f32 %v5860_v23, %v2423_v40 }
 0x3c4   : > { %v6183_v54 = vsub.f32 %v5843_v47, %v2417_v36  ;;  %v2653_v51 = vsel %vm348_vm0, %v2543_v11, 0.0 }
 0x3c5   : > { %v2551_v12 = vmul.f32 %v6197_v13, %v6197_v13 }
 0x3c6   : > { %v6149_v26 = vpop.xlane.xlu1 %2300  ;;  %2612 = vadd.xlane.f32.xlu1 %v2611_v22  ;;  %2627 = vadd.xlane.f32.xlu0 %v2626_v10  ;;  %v2316_v30 = vpop.xlane.xlu0 %2315  ;;  %v2546_v10 = vmul.f32 %v6160_v16, %v6160_v16  ;;  %v2545_v36 = vmul.f32 %v6183_v54, %v6183_v54 }
 0x3c7   : > { %v2430_v11 = vmul.f32 0.03125, %v2316_v30 }
 0x3c8   : > { %v2662_v35 = vsel %vm348_vm0, %v2546_v10, 0.0  ;;  %v2656_v10 = vsel %vm348_vm0, %v2544_v3, 0.0  ;;  %v2659_v43 = vsel %vm348_vm0, %v2545_v36, 0.0 }
 0x3ca   : > { %v2319_v22 = vpop.xlane.xlu1 %2318  ;;  %2630 = vadd.xlane.f32.xlu1 %v2629_v60  ;;  %2621 = vadd.xlane.f32.xlu0 %v2620_v15  ;;  %v6165_v59 = vpop.xlane.xlu0 %2309  ;;  %v2420_v15 = vmul.f32 0.03125, %v6099_v49  ;;  %v2550_v49 = vmul.f32 %v6186_v25, %v6186_v25 }
 0x3cb   : > { %v2431_v40 = vmul.f32 0.03125, %v2319_v22 }
 0x3cc   : > { %v6205_v2 = vsub.f32 %v5853_v32, %v2420_v15 }
 0x3cd   : > { %v6222_v22 = vsub.f32 %v5900_v4, %v2431_v40 }
 0x3ce   : > { %v6180_v60 = vpop.xlane.xlu1 %2312  ;;  %2624 = vadd.xlane.f32.xlu1 %v2623_v20  ;;  %2651 = vadd.xlane.f32.xlu0 %v2650_v48  ;;  %v2328_v1 = vpop.xlane.xlu0 %2327  ;;  %v2421_v48 = vmul.f32 0.03125, %v6113_v56  ;;  %v6217_v56 = vsub.f32 %v5890_v50, %v2430_v11  ;;  %v2548_v15 = vmul.f32 %v6205_v2, %v6205_v2 }
 0x3cf   : > { %v2434_v30 = vmul.f32 0.03125, %v2328_v1  ;;  %7103 = vst [vmem:[#allocation45_spill] sm:$0xff] %v6222_v22 }
 0x3d0   : > { %v6214_v32 = vsub.f32 %v5863_v14, %v2421_v48  ;;  %v2668_v50 = vsel %vm348_vm0, %v2548_v15, 0.0  ;;  %v2558_v48 = vmul.f32 %v6217_v56, %v6217_v56 }
 0x3d1   : > { %v6226_v14 = vsub.f32 %v5910_v0, %v2434_v30  ;;  %v2559_v0 = vmul.f32 %v6222_v22, %v6222_v22  ;;  %v7155_v22 = vld [vmem:[#allocation20_spill] sm:$0xff] }
 0x3d2   : > { %v2331_v20 = vpop.xlane.xlu1 %2330  ;;  %2654 = vadd.xlane.f32.xlu1 %v2653_v51  ;;  %2663 = vadd.xlane.f32.xlu0 %v2662_v35  ;;  %v2322_v47 = vpop.xlane.xlu0 %2321  ;;  %v2674_v35 = vsel %vm348_vm0, %v2550_v49, 0.0  ;;  %v2549_v1 = vmul.f32 %v6214_v32, %v6214_v32 }
 0x3d3   : > { %v2432_v36 = vmul.f32 0.03125, %v2322_v47 }
 0x3d4   : > { %v2671_v40 = vsel %vm348_vm0, %v2549_v1, 0.0 }
 0x3d6   : > { %v2325_v51 = vpop.xlane.xlu1 %2324  ;;  %2666 = vadd.xlane.f32.xlu1 %v2665_v38  ;;  %2657 = vadd.xlane.f32.xlu0 %v2656_v10  ;;  %v2340_v23 = vpop.xlane.xlu0 %2339  ;;  %v2435_v38 = vmul.f32 0.03125, %v2331_v20  ;;  %v2677_v10 = vsel %vm348_vm0, %v2551_v12, 0.0  ;;  %v6237_v20 = vsub.f32 %v5913_v63, %v2432_v36 }
 0x3d7   : > { %v2433_v12 = vmul.f32 0.03125, %v2325_v51  ;;  %v2438_v11 = vmul.f32 0.03125, %v2340_v23 }
 0x3d8   : > { %v6234_v4 = vsub.f32 %v5920_v37, %v2435_v38  ;;  %v2701_v37 = vsel %vm348_vm0, %v2559_v0, 0.0  ;;  %v2560_v23 = vmul.f32 %v6237_v20, %v6237_v20 }
 0x3d9   : > { %v6248_v63 = vsub.f32 %v5923_v24, %v2433_v12  ;;  %v6256_v15 = vsub.f32 %v5930_v44, %v2438_v11 }
 0x3da   : > { %v2343_v3 = vpop.xlane.xlu1 %2342  ;;  %2660 = vadd.xlane.f32.xlu1 %v2659_v43  ;;  %2675 = vadd.xlane.f32.xlu0 %v2674_v35  ;;  %v2334_v49 = vpop.xlane.xlu0 %2333  ;;  %v2698_v43 = vsel %vm348_vm0, %v2558_v48, 0.0  ;;  %v2562_v35 = vmul.f32 %v6226_v14, %v6226_v14  ;;  %v2563_v51 = vmul.f32 %v6234_v4, %v6234_v4  ;;  %v2704_v48 = vsel %vm348_vm0, %v2560_v23, 0.0 }
 0x3db   : > { %7104 = vst [vmem:[#allocation46_spill] sm:$0xff] %v6256_v15  ;;  %v2439_v38 = vmul.f32 0.03125, %v2343_v3  ;;  %v2436_v36 = vmul.f32 0.03125, %v2334_v49  ;;  %v2561_v12 = vmul.f32 %v6248_v63, %v6248_v63  ;;  %v2566_v49 = vmul.f32 %v6256_v15, %v6256_v15 }
 0x3dc   : > { %v2713_v1 = vsel %vm348_vm0, %v2563_v51, 0.0 }
 0x3dd   : > { %v6266_v0 = vsub.f32 %v5940_v31, %v2439_v38  ;;  %v6269_v44 = vsub.f32 %v5933_v18, %v2436_v36  ;;  %v2722_v31 = vsel %vm348_vm0, %v2566_v49, 0.0 }
 0x3de   : > { %2678 = vadd.xlane.f32.xlu1 %v2677_v10  ;;  %2669 = vadd.xlane.f32.xlu0 %v2668_v50  ;;  %v2337_v47 = vpop.xlane.xlu1 %2336  ;;  %v6245_v30 = vpop.xlane.xlu0 %2351  ;;  %v2710_v10 = vsel %vm348_vm0, %v2562_v35, 0.0 }
 0x3df   : > { %7105 = vst [vmem:[#allocation47_spill] sm:$0xff] %v6266_v0  ;;  %7106 = vst [vmem:[#allocation48_spill] sm:$0xff] %v6269_v44  ;;  %v2437_v3 = vmul.f32 0.03125, %v2337_v47  ;;  %v2567_v18 = vmul.f32 %v6266_v0, %v6266_v0  ;;  %v2564_v47 = vmul.f32 %v6269_v44, %v6269_v44 }
 0x3e1   : > { %v6277_v35 = vsub.f32 %v5943_v57, %v2437_v3  ;;  %v2725_v57 = vsel %vm348_vm0, %v2567_v18, 0.0  ;;  %v2716_v36 = vsel %vm348_vm0, %v2564_v47, 0.0 }
 0x3e2   : > { %2672 = vadd.xlane.f32.xlu1 %v2671_v40  ;;  %2699 = vadd.xlane.f32.xlu0 %v2698_v43  ;;  %v6259_v50 = vpop.xlane.xlu1 %2354  ;;  %v2707_v43 = vsel %vm348_vm0, %v2561_v12, 0.0 }
 0x3e3   : > { %7107 = vst [vmem:[#allocation49_spill] sm:$0xff] %v6277_v35 }
 0x3e6   : > { %2702 = vadd.xlane.f32.xlu1 %v2701_v37  ;;  %2711 = vadd.xlane.f32.xlu0 %v2710_v10  ;;  %v2364_v24 = vpop.xlane.xlu0 %2363  ;;  %v2565_v10 = vmul.f32 %v6277_v35, %v6277_v35 }
 0x3ea   : > { %v2367_v11 = vpop.xlane.xlu1 %2366  ;;  %2714 = vadd.xlane.f32.xlu1 %v2713_v1  ;;  %2705 = vadd.xlane.f32.xlu0 %v2704_v48  ;;  %v6273_v40 = vpop.xlane.xlu0 %2357 }
 0x3ee   : > { %v6284_v37 = vpop.xlane.xlu1 %2360  ;;  %2708 = vadd.xlane.f32.xlu1 %v2707_v43  ;;  %2723 = vadd.xlane.f32.xlu0 %v2722_v31  ;;  %v2376_v51 = vpop.xlane.xlu0 %2375  ;;  %v2719_v31 = vsel %vm348_vm0, %v2565_v10, 0.0 }
 0x3ef   : > { %v2450_v23 = vmul.f32 0.03125, %v2376_v51 }
 0x3f1   : > { %v6287_v38 = vsub.f32 %v5984_v5, %v2450_v23 }
 0x3f2   : > { %v2379_v1 = vpop.xlane.xlu1 %2378  ;;  %2726 = vadd.xlane.f32.xlu1 %v2725_v57  ;;  %2717 = vadd.xlane.f32.xlu0 %v2716_v36  ;;  %v2370_v48 = vpop.xlane.xlu0 %2369 }
 0x3f3   : > { %7108 = vst [vmem:[#allocation50_spill] sm:$0xff] %v6287_v38  ;;  %v2451_v12 = vmul.f32 0.03125, %v2379_v1  ;;  %v2448_v3 = vmul.f32 0.03125, %v2370_v48  ;;  %v2578_v49 = vmul.f32 %v6287_v38, %v6287_v38  ;;  %v2446_v48 = vmul.f32 0.03125, %v2364_v24 }
 0x3f5   : > { %v6296_v43 = vsub.f32 %v5994_v41, %v2451_v12  ;;  %v6299_v5 = vsub.f32 %v5987_v19, %v2448_v3  ;;  %v2758_v18 = vsel %vm348_vm0, %v2578_v49, 0.0  ;;  %v6316_v49 = vsub.f32 %v5966_v9, %v2446_v48 }
 0x3f6   : > { %v2373_v47 = vpop.xlane.xlu1 %2372  ;;  %2720 = vadd.xlane.f32.xlu1 %v2719_v31  ;;  %2759 = vadd.xlane.f32.xlu0 %v2758_v18 }
 0x3f7   : > { %7109 = vst [vmem:[#allocation51_spill] sm:$0xff] %v6296_v43  ;;  %7110 = vst [vmem:[#allocation52_spill] sm:$0xff] %v6299_v5  ;;  %v2449_v51 = vmul.f32 0.03125, %v2373_v47  ;;  %v2579_v23 = vmul.f32 %v6296_v43, %v6296_v43  ;;  %v2576_v57 = vmul.f32 %v6299_v5, %v6299_v5 }
 0x3f8   : > { %7112 = vst [vmem:[#allocation54_spill] sm:$0xff] %v6316_v49 }
 0x3f9   : > { %v6308_v41 = vsub.f32 %v5997_v34, %v2449_v51  ;;  %v2761_v19 = vsel %vm348_vm0, %v2579_v23, 0.0  ;;  %v2752_v36 = vsel %vm348_vm0, %v2576_v57, 0.0  ;;  %v2447_v34 = vmul.f32 0.03125, %v2367_v11 }
 0x3fa   : > { %2762 = vadd.xlane.f32.xlu1 %v2761_v19  ;;  %2753 = vadd.xlane.f32.xlu0 %v2752_v36  ;;  %v2396_v57 = vmul.f32 0.03125, %v6013_v45  ;;  %v7114_v19 = vld [vmem:[#allocation27_spill] sm:$0xff]  ;;  %v7116_v36 = vld [vmem:[#allocation41_spill] sm:$0xff] }
 0x3fb   : > { %7111 = vst [vmem:[#allocation53_spill] sm:$0xff] %v6308_v41  ;;  %v2577_v10 = vmul.f32 %v6308_v41, %v6308_v41  ;;  %v6327_v24 = vsub.f32 %v7114_v19, %v2447_v34  ;;  %v7118_v45 = vld [vmem:[#allocation25_spill] sm:$0xff] }
 0x3fc   : > { %v7120_v34 = vld [vmem:[#allocation33_spill] sm:$0xff] }
 0x3fd   : > { %v2755_v1 = vsel %vm348_vm0, %v2577_v10, 0.0  ;;  %7115 = vst [vmem:[#allocation27_spill] sm:$0xff] %v6327_v24 }
 0x3fe   : > { %2756 = vadd.xlane.f32.xlu1 %v2755_v1 }
 0x437   : > { %v2388_v12 = vpop.xlane.xlu0 %2387 }
 0x438   : > { %v2454_v3 = vmul.f32 0.03125, %v2388_v12 }
 0x43a   : > { %v6319_v31 = vsub.f32 %v6034_v52, %v2454_v3  ;;  %v2574_v52 = vmul.f32 %v6316_v49, %v6316_v49  ;;  %v6340_v3 = vsub.f32 %v7118_v45, %v2396_v57 }
 0x43b   : > { %v2391_v18 = vpop.xlane.xlu1 %2390  ;;  %v6321_v47 = vpop.xlane.xlu0 %2345 }
 0x43c   : > { %7113 = vst [vmem:[#allocation55_spill] sm:$0xff] %v6319_v31  ;;  %v2455_v51 = vmul.f32 0.03125, %v2391_v18  ;;  %v2582_v23 = vmul.f32 %v6319_v31, %v6319_v31  ;;  %7119 = vst [vmem:[#allocation25_spill] sm:$0xff] %v6340_v3  ;;  %v2397_v18 = vmul.f32 0.03125, %v7120_v34  ;;  %v2746_v49 = vsel %vm348_vm0, %v2574_v52, 0.0  ;;  %v7123_v34 = vld [vmem:[#allocation22_spill] sm:$0xff] }
 0x43e   : > { %v6330_v10 = vsub.f32 %v7116_v36, %v2455_v51  ;;  %v2770_v9 = vsel %vm348_vm0, %v2582_v23, 0.0  ;;  %v7121_v51 = vld [vmem:[#allocation38_spill] sm:$0xff] }
 0x43f   : > { %v6335_v11 = vpop.xlane.xlu1 %2348  ;;  %2771 = vadd.xlane.f32.xlu0 %v2770_v9  ;;  %v2382_v1 = vpop.xlane.xlu0 %2381  ;;  %v2412_v19 = vmul.f32 0.03125, %v7121_v51  ;;  %v2575_v9 = vmul.f32 %v6327_v24, %v6327_v24  ;;  %v6356_v51 = vsub.f32 %v7123_v34, %v2397_v18  ;;  %v2524_v24 = vmul.f32 %v6340_v3, %v6340_v3 }
 0x440   : > { %7117 = vst [vmem:[#allocation41_spill] sm:$0xff] %v6330_v10  ;;  %v2452_v48 = vmul.f32 0.03125, %v2382_v1  ;;  %v2583_v12 = vmul.f32 %v6330_v10, %v6330_v10 }
 0x441   : > { %7124 = vst [vmem:[#allocation38_spill] sm:$0xff] %v6356_v51 }
 0x442   : > { %v6345_v23 = vsub.f32 %v6057_v39, %v2452_v48  ;;  %v2773_v36 = vsel %vm348_vm0, %v2583_v12, 0.0  ;;  %v7125_v39 = vld [vmem:[#allocation8_spill] sm:$0xff] }
 0x443   : > { %2774 = vadd.xlane.f32.xlu1 %v2773_v36  ;;  %v2385_v1 = vpop.xlane.xlu1 %2384  ;;  %2747 = vadd.xlane.f32.xlu0 %v2746_v49  ;;  %v6351_v10 = vpop.xlane.xlu0 %2603  ;;  %v6359_v48 = vsub.f32 %v7125_v39, %v2412_v19  ;;  %v7127_v12 = vld [vmem:[#allocation40_spill] sm:$0xff]  ;;  %v2428_v36 = vmul.f32 0.03125, %v6165_v59  ;;  %v7129_v39 = vld [vmem:[#allocation11_spill] sm:$0xff]  ;;  %v2596_v59 = vsel %vm348_vm0, %v2524_v24, 0.0 }
 0x444   : > { %7122 = vst [vmem:[#allocation33_spill] sm:$0xff] %v6345_v23  ;;  %v2453_v57 = vmul.f32 0.03125, %v2385_v1  ;;  %v2580_v45 = vmul.f32 %v6345_v23, %v6345_v23  ;;  %v2413_v52 = vmul.f32 0.03125, %v7127_v12  ;;  %v2749_v1 = vsel %vm348_vm0, %v2575_v9, 0.0 }
 0x445   : > { %7126 = vst [vmem:[#allocation22_spill] sm:$0xff] %v6359_v48  ;;  %v2540_v9 = vmul.f32 %v6359_v48, %v6359_v48 }
 0x446   : > { %v6366_v49 = vsub.f32 %v6078_v61, %v2453_v57  ;;  %v2764_v23 = vsel %vm348_vm0, %v2580_v45, 0.0  ;;  %v6377_v12 = vsub.f32 %v7129_v39, %v2413_v52  ;;  %v2525_v61 = vmul.f32 %v6356_v51, %v6356_v51  ;;  %v7131_v57 = vld [vmem:[#allocation17_spill] sm:$0xff] }
 0x447   : > { %2750 = vadd.xlane.f32.xlu1 %v2749_v1  ;;  %v6370_v18 = vpop.xlane.xlu1 %2606  ;;  %2765 = vadd.xlane.f32.xlu0 %v2764_v23  ;;  %v6372_v19 = vpop.xlane.xlu0 %2615  ;;  %v6385_v45 = vsub.f32 %v7131_v57, %v2428_v36  ;;  %v2429_v23 = vmul.f32 0.03125, %v6180_v60  ;;  %v2444_v1 = vmul.f32 0.03125, %v6273_v40  ;;  %v7133_v39 = vld [vmem:[#allocation29_spill] sm:$0xff]  ;;  %v2644_v48 = vsel %vm348_vm0, %v2540_v9, 0.0  ;;  %v7134_v60 = vld [vmem:[#allocation14_spill] sm:$0xff]  ;;  %v7138_v9 = vld [vmem:[#allocation19_spill] sm:$0xff] }
 0x448   : > { %7128 = vst [vmem:[#allocation8_spill] sm:$0xff] %v6366_v49  ;;  %v2581_v34 = vmul.f32 %v6366_v49, %v6366_v49  ;;  %7130 = vst [vmem:[#allocation40_spill] sm:$0xff] %v6377_v12  ;;  %v2394_v51 = vmul.f32 0.03125, %v7133_v39  ;;  %v2599_v49 = vsel %vm348_vm0, %v2525_v61, 0.0  ;;  %v2541_v36 = vmul.f32 %v6377_v12, %v6377_v12  ;;  %v7136_v40 = vld [vmem:[#allocation26_spill] sm:$0xff] }
 0x449   : > { %7132 = vst [vmem:[#allocation11_spill] sm:$0xff] %v6385_v45  ;;  %v6400_v57 = vsub.f32 %v7134_v60, %v2429_v23  ;;  %v7140_v12 = vld [vmem:[#allocation30_spill] sm:$0xff] }
 0x44a   : > { %v2767_v3 = vsel %vm348_vm0, %v2581_v34, 0.0  ;;  %v6403_v34 = vsub.f32 %v7136_v40, %v2444_v1  ;;  %v6411_v31 = vsub.f32 %v7138_v9, %v2394_v51  ;;  %v2395_v41 = vmul.f32 0.03125, %v7140_v12  ;;  %v7141_v23 = vld [vmem:[#allocation34_spill] sm:$0xff]  ;;  %v7142_v40 = vld [vmem:[#allocation28_spill] sm:$0xff]  ;;  %v7144_v12 = vld [vmem:[#allocation21_spill] sm:$0xff] }
 0x44b   : > { %2768 = vadd.xlane.f32.xlu1 %v2767_v3  ;;  %v6390_v52 = vpop.xlane.xlu1 %2618  ;;  %2597 = vadd.xlane.f32.xlu0 %v2596_v59  ;;  %v6392_v24 = vpop.xlane.xlu0 %2609  ;;  %7135 = vst [vmem:[#allocation17_spill] sm:$0xff] %v6400_v57  ;;  %v2445_v3 = vmul.f32 0.03125, %v6284_v37  ;;  %v2556_v59 = vmul.f32 %v6385_v45, %v6385_v45  ;;  %v2410_v60 = vmul.f32 0.03125, %v7141_v23  ;;  %v2647_v1 = vsel %vm348_vm0, %v2541_v36, 0.0 }
 0x44c   : > { %7137 = vst [vmem:[#allocation29_spill] sm:$0xff] %v6403_v34  ;;  %7139 = vst [vmem:[#allocation14_spill] sm:$0xff] %v6411_v31  ;;  %v6425_v45 = vsub.f32 %v7144_v12, %v2395_v41  ;;  %v2522_v36 = vmul.f32 %v6411_v31, %v6411_v31  ;;  %v7150_v12 = vld [vmem:[#allocation32_spill] sm:$0xff] }
 0x44d   : > { %v6417_v5 = vsub.f32 %v7142_v40, %v2445_v3  ;;  %v2692_v37 = vsel %vm348_vm0, %v2556_v59, 0.0  ;;  %v7146_v3 = vld [vmem:[#allocation24_spill] sm:$0xff]  ;;  %v7148_v59 = vld [vmem:[#allocation35_spill] sm:$0xff]  ;;  %v2393_v38 = vmul.f32 0.03125, %v7150_v12  ;;  %v2427_v12 = vmul.f32 0.03125, %v6131_v33 }
 0x44e   : > { %7145 = vst [vmem:[#allocation19_spill] sm:$0xff] %v6425_v45  ;;  %v6430_v23 = vsub.f32 %v7146_v3, %v2410_v60  ;;  %v2411_v40 = vmul.f32 0.03125, %v7148_v59  ;;  %v7151_v3 = vld [vmem:[#allocation36_spill] sm:$0xff] }
 0x44f   : > { %2600 = vadd.xlane.f32.xlu1 %v2599_v49  ;;  %v6408_v39 = vpop.xlane.xlu1 %2612  ;;  %2645 = vadd.xlane.f32.xlu0 %v2644_v48  ;;  %v2628_v61 = vpop.xlane.xlu0 %2627  ;;  %7143 = vst [vmem:[#allocation26_spill] sm:$0xff] %v6417_v5  ;;  %v2557_v49 = vmul.f32 %v6400_v57, %v6400_v57  ;;  %v2572_v48 = vmul.f32 %v6403_v34, %v6403_v34  ;;  %v2426_v57 = vmul.f32 0.03125, %v6115_v46  ;;  %v7149_v34 = vld [vmem:[#allocation31_spill] sm:$0xff]  ;;  %v2408_v59 = vmul.f32 0.03125, %v7151_v3 }
 0x450   : > { %7147 = vst [vmem:[#allocation30_spill] sm:$0xff] %v6430_v23  ;;  %v2392_v41 = vmul.f32 0.03125, %v7149_v34  ;;  %v2590_v46 = vsel %vm348_vm0, %v2522_v36, 0.0  ;;  %v2790_v3 = vmul.f32 0.03125, %v2628_v61  ;;  %v7161_v61 = vld [vmem:[#allocation6_spill] sm:$0xff] }
 0x451   : > { %v2695_v43 = vsel %vm348_vm0, %v2557_v49, 0.0  ;;  %v2523_v49 = vmul.f32 %v6425_v45, %v6425_v45 }
 0x452   : > { %v6459_v45 = vsub.f32 %v7155_v22, %v2392_v41 }
 0x453   : > { %2648 = vadd.xlane.f32.xlu1 %v2647_v1  ;;  %v2631_v51 = vpop.xlane.xlu1 %2630  ;;  %2693 = vadd.xlane.f32.xlu0 %v2692_v37  ;;  %v2622_v9 = vpop.xlane.xlu0 %2621  ;;  %v2740_v1 = vsel %vm348_vm0, %v2572_v48, 0.0  ;;  %v2573_v37 = vmul.f32 %v6417_v5, %v6417_v5  ;;  %v7152_v48 = vld [vmem:[#allocation9_spill] sm:$0xff] }
 0x454   : > { %v2791_v35 = vmul.f32 0.03125, %v2631_v51  ;;  %v6447_v44 = vsub.f32 %v7152_v48, %v2411_v40  ;;  %v7153_v5 = vld [vmem:[#allocation37_spill] sm:$0xff]  ;;  %v2442_v51 = vmul.f32 0.03125, %v6245_v30  ;;  %7156 = vst [vmem:[#allocation34_spill] sm:$0xff] %v6459_v45  ;;  %v7157_v40 = vld [vmem:[#allocation23_spill] sm:$0xff] }
 0x455   : > { %v2409_v34 = vmul.f32 0.03125, %v7153_v5  ;;  %v2743_v36 = vsel %vm348_vm0, %v2573_v37, 0.0  ;;  %v6462_v48 = vsub.f32 %v7157_v40, %v2393_v38  ;;  %v7163_v37 = vld [vmem:[#allocation12_spill] sm:$0xff]  ;;  %v2593_v38 = vsel %vm348_vm0, %v2523_v49, 0.0 }
 0x456   : > { %v2855_v30 = vadd.f32 1e-05, %v2791_v35  ;;  %v6474_v22 = vsub.f32 %v7163_v37, %v2427_v12  ;;  %v2539_v41 = vmul.f32 %v6447_v44, %v6447_v44  ;;  %v2854_v40 = vadd.f32 1e-05, %v2790_v3 }
 0x457   : > { %2696 = vadd.xlane.f32.xlu1 %v2695_v43  ;;  %v2625_v31 = vpop.xlane.xlu1 %2624  ;;  %2741 = vadd.xlane.f32.xlu0 %v2740_v1  ;;  %v6440_v60 = vpop.xlane.xlu0 %2651  ;;  %v2538_v43 = vmul.f32 %v6430_v23, %v6430_v23  ;;  %v7154_v1 = vld [vmem:[#allocation13_spill] sm:$0xff]  ;;  %7158 = vst [vmem:[#allocation28_spill] sm:$0xff] %v6462_v48  ;;  %v7159_v23 = vld [vmem:[#allocation7_spill] sm:$0xff]  ;;  %v2782_v35 = vmul.f32 0.03125, %v6351_v10  ;;  %v2520_v49 = vmul.f32 %v6459_v45, %v6459_v45  ;;  %v2424_v10 = vmul.f32 0.03125, %v6133_v28 }
 0x458   : > { %v6454_v0 = vsub.f32 %v7154_v1, %v2426_v57  ;;  %v6467_v15 = vsub.f32 %v7159_v23, %v2408_v59  ;;  %v2443_v57 = vmul.f32 0.03125, %v6259_v50  ;;  %v6471_v1 = vsub.f32 %v7161_v61, %v2409_v34  ;;  %7164 = vst [vmem:[#allocation35_spill] sm:$0xff] %v6474_v22 }
 0x459   : > { %v2638_v23 = vsel %vm348_vm0, %v2538_v43, 0.0  ;;  %v2521_v12 = vmul.f32 %v6462_v48, %v6462_v48  ;;  %4226 = vrsqrt.f32 %v2855_v30  ;;  %v2788_v43 = vmul.f32 0.03125, %v2622_v9 }
 0x45a   : > { %7160 = vst [vmem:[#allocation21_spill] sm:$0xff] %v6467_v15  ;;  %7162 = vst [vmem:[#allocation24_spill] sm:$0xff] %v6471_v1  ;;  %v2554_v50 = vmul.f32 %v6454_v0, %v6454_v0  ;;  %v2536_v61 = vmul.f32 %v6467_v15, %v6467_v15  ;;  %v2641_v37 = vsel %vm348_vm0, %v2539_v41, 0.0  ;;  %4228 = vrsqrt.f32 %v2854_v40  ;;  %v7168_v40 = vld [vmem:[#allocation10_spill] sm:$0xff] }
 0x45b   : > { %2744 = vadd.xlane.f32.xlu1 %v2743_v36  ;;  %v6464_v5 = vpop.xlane.xlu1 %2654  ;;  %2591 = vadd.xlane.f32.xlu0 %v2590_v46  ;;  %v2664_v33 = vpop.xlane.xlu0 %2663  ;;  %v7165_v36 = vld [vmem:[#allocation16_spill] sm:$0xff]  ;;  %v2846_v30 = vadd.f32 1e-05, %v2782_v35  ;;  %v2584_v41 = vsel %vm348_vm0, %v2520_v49, 0.0  ;;  %v2852_v48 = vadd.f32 1e-05, %v2788_v43 }
 0x45c   : > { %v6480_v46 = vsub.f32 %v7165_v36, %v2442_v51  ;;  %v7166_v51 = vld [vmem:[#allocation18_spill] sm:$0xff]  ;;  %v2537_v36 = vmul.f32 %v6471_v1, %v6471_v1  ;;  %v2632_v35 = vsel %vm348_vm0, %v2536_v61, 0.0 }
 0x45d   : > { %v6493_v3 = vsub.f32 %v7166_v51, %v2443_v57  ;;  %v2686_v57 = vsel %vm348_vm0, %v2554_v50, 0.0  ;;  %v6511_v50 = vsub.f32 %v7168_v40, %v2424_v10  ;;  %4230 = vrsqrt.f32 %v2846_v30 }
 0x45e   : > { %v2570_v9 = vmul.f32 %v6480_v46, %v6480_v46  ;;  %4232 = vrsqrt.f32 %v2852_v48 }
 0x45f   : > { %2594 = vadd.xlane.f32.xlu1 %v2593_v38  ;;  %v2667_v59 = vpop.xlane.xlu1 %2666  ;;  %2639 = vadd.xlane.f32.xlu0 %v2638_v23  ;;  %v6486_v34 = vpop.xlane.xlu0 %2657  ;;  %7167 = vst [vmem:[#allocation31_spill] sm:$0xff] %v6493_v3  ;;  %v2555_v38 = vmul.f32 %v6474_v22, %v6474_v22  ;;  %v2789_v23 = vmul.f32 0.03125, %v2625_v31  ;;  %v2571_v1 = vmul.f32 %v6493_v3, %v6493_v3  ;;  %v2587_v31 = vsel %vm348_vm0, %v2521_v12, 0.0 }
 0x460   : > { %v2803_v51 = vmul.f32 0.03125, %v2667_v59  ;;  %v6516_v59 = vsel %vm348_vm0, %v2537_v36, 0.0  ;;  %v2734_v43 = vsel %vm348_vm0, %v2570_v9, 0.0  ;;  %v2787_v12 = vmul.f32 0.03125, %v6390_v52 }
 0x461   : > { %v2689_v22 = vsel %vm348_vm0, %v2555_v38, 0.0  ;;  %v2737_v36 = vsel %vm348_vm0, %v2571_v1, 0.0  ;;  %v2552_v1 = vmul.f32 %v6511_v50, %v6511_v50 }
 0x462   : > { %v2867_v3 = vadd.f32 1e-05, %v2803_v51  ;;  %v2851_v51 = vadd.f32 1e-05, %v2787_v12 }
 0x463   : > { %2642 = vadd.xlane.f32.xlu1 %v2641_v37  ;;  %v2661_v15 = vpop.xlane.xlu1 %2660  ;;  %2687 = vadd.xlane.f32.xlu0 %v2686_v57  ;;  %v2676_v28 = vpop.xlane.xlu0 %2675  ;;  %v2853_v37 = vadd.f32 1e-05, %v2789_v23  ;;  %v2802_v57 = vmul.f32 0.03125, %v2664_v33  ;;  %v2440_v33 = vmul.f32 0.03125, %v6321_v47  ;;  %v2786_v23 = vmul.f32 0.03125, %v6372_v19  ;;  %v7170_v47 = vld [vmem:[#allocation15_spill] sm:$0xff] }
 0x464   : > { %v2806_v45 = vmul.f32 0.03125, %v2676_v28  ;;  %v2425_v28 = vmul.f32 0.03125, %v6149_v26 }
 0x465   : > { %v2866_v26 = vadd.f32 1e-05, %v2802_v57  ;;  %v7171_v57 = vld [vmem:[#allocation39_spill] sm:$0xff] }
 0x466   : > { %v2870_v49 = vadd.f32 1e-05, %v2806_v45  ;;  %v2783_v45 = vmul.f32 0.03125, %v6370_v18  ;;  %v2801_v18 = vmul.f32 0.03125, %v2661_v15  ;;  %v4484_v15 = vld [vmem:[%s6890_s2] sm:$0x3f] }
 0x467   : > { %2690 = vadd.xlane.f32.xlu1 %v2689_v22  ;;  %v2679_v10 = vpop.xlane.xlu1 %2678  ;;  %2735 = vadd.xlane.f32.xlu0 %v2734_v43  ;;  %v2670_v38 = vpop.xlane.xlu0 %2669  ;;  %v7169_v22 = vld [vmem:[#allocation5_spill] sm:$0xff]  ;;  %v6529_v43 = vsub.f32 %v7170_v47, %v2425_v28 }
 0x468   : > { %v2807_v61 = vmul.f32 0.03125, %v2679_v10  ;;  %v2804_v40 = vmul.f32 0.03125, %v2670_v38  ;;  %4234 = vrsqrt.f32 %v2870_v49  ;;  %v3034_v30 = vsub.s32 4, %v7169_v22 }
 0x469   : > { %4236 = vrsqrt.f32 %v2853_v37  ;;  %v4227_v37 = vpop.eup %4226  ;;  %v6532_v49 = vsub.f32 %v7171_v57, %v2440_v33  ;;  %v2441_v10 = vmul.f32 0.03125, %v6335_v11  ;;  %v2847_v12 = vadd.f32 1e-05, %v2783_v45 }
 0x46a   : > { %v2871_v52 = vadd.f32 1e-05, %v2807_v61  ;;  %v2868_v9 = vadd.f32 1e-05, %v2804_v40  ;;  %4238 = vrsqrt.f32 %v2867_v3  ;;  %v2850_v3 = vadd.f32 1e-05, %v2786_v23  ;;  %v4229_v61 = vpop.eup %4228 }
 0x46b   : > { %2738 = vadd.xlane.f32.xlu1 %v2737_v36  ;;  %v2673_v48 = vpop.xlane.xlu1 %2672  ;;  %2585 = vadd.xlane.f32.xlu0 %v2584_v41  ;;  %v2800_v41 = vmul.f32 0.03125, %v6486_v34  ;;  %v6539_v28 = vrot.slane %v4484_v15, %v3034_v30  ;;  %v3102_v40 = vsub.s32 5, %v7169_v22  ;;  %v2785_v36 = vmul.f32 0.03125, %v6408_v39 }
 0x46c   : > { %4240 = vrsqrt.f32 %v2871_v52  ;;  %v2805_v19 = vmul.f32 0.03125, %v2673_v48  ;;  %v2983_v11 = vmul.f32 %v4227_v37, %v6118_v7  ;;  %v2865_v33 = vadd.f32 1e-05, %v2801_v18 }
 0x46d   : > { %4242 = vrsqrt.f32 %v2868_v9  ;;  %v2680_v34 = vsel %vm348_vm0, %v2552_v1, 0.0  ;;  %v2784_v45 = vmul.f32 0.03125, %v6392_v24  ;;  %v2553_v23 = vmul.f32 %v6529_v43, %v6529_v43  ;;  %v4231_v24 = vpop.eup %4230 }
 0x46e   : > { %4244 = vrsqrt.f32 %v2866_v26  ;;  %v2869_v38 = vadd.f32 1e-05, %v2805_v19  ;;  %v2568_v26 = vmul.f32 %v6532_v49, %v6532_v49  ;;  %v6551_v52 = vsub.f32 %v6051_v21, %v2441_v10  ;;  %v4233_v30 = vpop.eup %4232 }
 0x46f   : > { %4246 = vrsqrt.f32 %v2851_v51  ;;  %2588 = vadd.xlane.f32.xlu1 %v2587_v31  ;;  %2633 = vadd.xlane.f32.xlu0 %v2632_v35  ;;  %v2982_v39 = vmul.f32 %v4229_v61, %v6106_v42  ;;  %v2864_v7 = vadd.f32 1e-05, %v2800_v41  ;;  %v2849_v31 = vadd.f32 1e-05, %v2785_v36 }
 0x470   : > { %4248 = vrsqrt.f32 %v2869_v38  ;;  %v2799_v35 = vmul.f32 0.03125, %v6464_v5  ;;  %v3051_v9 = vmul.f32 %v6539_v28, %v2983_v11  ;;  %v6557_v51 = vrot.slane %v4484_v15, %v3102_v40 }
 0x471   : > { %4250 = vrsqrt.f32 %v2847_v12  ;;  %v2848_v48 = vadd.f32 1e-05, %v2784_v45  ;;  %v2798_v21 = vmul.f32 0.03125, %v6440_v60  ;;  %v2683_v1 = vsel %vm348_vm0, %v2553_v23, 0.0 }
 0x472   : > { %4252 = vrsqrt.f32 %v2850_v3  ;;  %v3050_v47 = vmul.f32 %v6539_v28, %v2982_v39  ;;  %v2728_v5 = vsel %vm348_vm0, %v2568_v26, 0.0  ;;  %v2863_v19 = vadd.f32 1e-05, %v2799_v35 }
 0x473   : > { %2636 = vadd.xlane.f32.xlu1 %v6516_v59  ;;  %2681 = vadd.xlane.f32.xlu0 %v2680_v34  ;;  %4254 = vrsqrt.f32 %v2865_v33  ;;  %v2569_v59 = vmul.f32 %v6551_v52, %v6551_v52  ;;  %v3119_v60 = vadd.f32 %v6557_v51, %v3051_v9  ;;  %v2980_v12 = vmul.f32 %v4233_v30, %v6121_v17 }
 0x474   : > { %4256 = vrsqrt.f32 %v2864_v7  ;;  %v2862_v3 = vadd.f32 1e-05, %v2798_v21  ;;  %v3118_v61 = vadd.f32 %v6557_v51, %v3050_v47 }
 0x475   : > { %v4235_v42 = vpop.eup %4234  ;;  %4258 = vrsqrt.f32 %v2849_v31  ;;  %v2731_v40 = vsel %vm348_vm0, %v2569_v59, 0.0 }
 0x476   : > { %v4237_v18 = vpop.eup %4236  ;;  %v2998_v37 = vmul.f32 %v4235_v42, %v6186_v25  ;;  %4260 = vrsqrt.f32 %v2848_v48 }
 0x477   : > { %2684 = vadd.xlane.f32.xlu1 %v2683_v1  ;;  %2729 = vadd.xlane.f32.xlu0 %v2728_v5  ;;  %v4239_v57 = vpop.eup %4238  ;;  %v2981_v36 = vmul.f32 %v4237_v18, %v6136_v27  ;;  %4262 = vrsqrt.f32 %v2863_v19  ;;  %v7172_v1 = vld [vmem:[#allocation42_spill] sm:$0xff] }
 0x478   : > { %v3066_v41 = vmul.f32 %v6539_v28, %v2998_v37  ;;  %v2995_v34 = vmul.f32 %v4239_v57, %v6168_v6  ;;  %4264 = vtanh.f32 %v3119_v60  ;;  %v2974_v6 = vmul.f32 %v4231_v24, %v6054_v55 }
 0x479   : > { %v4241_v10 = vpop.eup %4240  ;;  %4266 = vrsqrt.f32 %v2862_v3  ;;  %v3049_v35 = vmul.f32 %v6539_v28, %v2981_v36 }
 0x47a   : > { %v4243_v38 = vpop.eup %4242  ;;  %v2999_v15 = vmul.f32 %v4241_v10, %v6197_v13  ;;  %v3134_v11 = vadd.f32 %v6557_v51, %v3066_v41  ;;  %v3048_v13 = vmul.f32 %v6539_v28, %v2980_v12  ;;  %4268 = vtanh.f32 %v3118_v61 }
 0x47b   : > { %v4245_v25 = vpop.eup %4244  ;;  %v2996_v33 = vmul.f32 %v4243_v38, %v6205_v2  ;;  %2732 = vadd.xlane.f32.xlu1 %v2731_v40  ;;  %v3063_v48 = vmul.f32 %v6539_v28, %v2995_v34  ;;  %v3042_v18 = vmul.f32 %v6539_v28, %v2974_v6 }
 0x47c   : > { %v4247_v17 = vpop.eup %4246  ;;  %v3067_v45 = vmul.f32 %v6539_v28, %v2999_v15  ;;  %v2994_v27 = vmul.f32 %v4245_v25, %v6160_v16  ;;  %4270 = vtanh.f32 %v3134_v11  ;;  %v3116_v5 = vadd.f32 %v6557_v51, %v3048_v13 }
 0x47d   : > { %v4249_v23 = vpop.eup %4248  ;;  %v3064_v26 = vmul.f32 %v6539_v28, %v2996_v33  ;;  %v2979_v30 = vmul.f32 %v4247_v17, %v6090_v58  ;;  %v3117_v58 = vadd.f32 %v6557_v51, %v3049_v35  ;;  %v3131_v57 = vadd.f32 %v6557_v51, %v3063_v48 }
 0x47e   : > { %v4251_v39 = vpop.eup %4250  ;;  %v3135_v7 = vadd.f32 %v6557_v51, %v3067_v45  ;;  %v2997_v2 = vmul.f32 %v4249_v23, %v6214_v32  ;;  %v7173_v32 = vld [vmem:[#allocation43_spill] sm:$0xff]  ;;  %v3062_v55 = vmul.f32 %v6539_v28, %v2994_v27  ;;  %v3110_v61 = vadd.f32 %v6557_v51, %v3042_v18 }
 0x47f   : > { %v4253_v31 = vpop.eup %4252  ;;  %v3132_v9 = vadd.f32 %v6557_v51, %v3064_v26  ;;  %v2975_v42 = vmul.f32 %v4251_v39, %v7172_v1  ;;  %v3047_v37 = vmul.f32 %v6539_v28, %v2979_v30 }
 0x480   : > { %4272 = vtanh.f32 %v3135_v7  ;;  %v3065_v16 = vmul.f32 %v6539_v28, %v2997_v2  ;;  %v4255_v21 = vpop.eup %4254  ;;  %v2978_v47 = vmul.f32 %v4253_v31, %v7173_v32  ;;  %v3130_v41 = vadd.f32 %v6557_v51, %v3062_v55  ;;  %v7174_v7 = vld [vmem:[#allocation44_spill] sm:$0xff] }
 0x481   : > { %v4257_v59 = vpop.eup %4256  ;;  %4274 = vtanh.f32 %v3132_v9  ;;  %v2993_v60 = vmul.f32 %v4255_v21, %v6183_v54  ;;  %v3043_v10 = vmul.f32 %v6539_v28, %v2975_v42  ;;  %v3115_v25 = vadd.f32 %v6557_v51, %v3047_v37 }
 0x482   : > { %v3133_v24 = vadd.f32 %v6557_v51, %v3065_v16  ;;  %v4259_v19 = vpop.eup %4258  ;;  %v3046_v3 = vmul.f32 %v6539_v28, %v2978_v47  ;;  %v2992_v38 = vmul.f32 %v4257_v59, %v6173_v8  ;;  %v2700_v59 = vpop.xlane.xlu0 %2699 }
 0x483   : > { %v4261_v12 = vpop.eup %4260  ;;  %v2977_v15 = vmul.f32 %v4259_v19, %v6102_v53  ;;  %v3061_v54 = vmul.f32 %v6539_v28, %v2993_v60  ;;  %v3111_v11 = vadd.f32 %v6557_v51, %v3043_v10  ;;  %v2703_v19 = vpop.xlane.xlu1 %2702 }
 0x484   : > { %4276 = vtanh.f32 %v3133_v24  ;;  %v4263_v40 = vpop.eup %4262  ;;  %v2976_v33 = vmul.f32 %v4261_v12, %v6093_v29  ;;  %v3114_v8 = vadd.f32 %v6557_v51, %v3046_v3  ;;  %v3060_v34 = vmul.f32 %v6539_v28, %v2992_v38 }
 0x485   : > { %4278 = vtanh.f32 %v3116_v5  ;;  %v4265_v36 = vpop.eup %4264  ;;  %v3045_v53 = vmul.f32 %v6539_v28, %v2977_v15  ;;  %v2991_v13 = vmul.f32 %v4263_v40, %v6157_v62  ;;  %v3129_v26 = vadd.f32 %v6557_v51, %v3061_v54 }
 0x486   : > { %4280 = vtanh.f32 %v3117_v58  ;;  %v4267_v17 = vpop.eup %4266  ;;  %v3044_v29 = vmul.f32 %v6539_v28, %v2976_v33  ;;  %v3128_v31 = vadd.f32 %v6557_v51, %v3060_v34 }
 0x487   : > { %4282 = vtanh.f32 %v3131_v57  ;;  %v4269_v45 = vpop.eup %4268  ;;  %v2990_v2 = vmul.f32 %v4267_v17, %v7174_v7  ;;  %v3113_v9 = vadd.f32 %v6557_v51, %v3045_v53  ;;  %v3059_v30 = vmul.f32 %v6539_v28, %v2991_v13  ;;  %v2715_v15 = vpop.xlane.xlu1 %2714 }
 0x488   : > { %4284 = vtanh.f32 %v3130_v41  ;;  %v3243_v39 = vpack.c.bf16 %v4265_v36, %v4269_v45  ;;  %v3112_v16 = vadd.f32 %v6557_v51, %v3044_v29  ;;  %v2712_v41 = vpop.xlane.xlu0 %2711  ;;  %v3968_v36 = vld [vmem:[%s6891_s3] sm:$0xff]   ;;  %v3969_v45 = vld [vmem:[%s6891_s3 + $0x8] sm:$0xff]  }
 0x489   : > { %4286 = vtanh.f32 %v3110_v61  ;;  %v4271_v23 = vpop.eup %4270  ;;  %v3058_v21 = vmul.f32 %v6539_v28, %v2990_v2  ;;  %v3127_v47 = vadd.f32 %v6557_v51, %v3059_v30  ;;  %v2818_v13 = vmul.f32 0.03125, %v2712_v41 }
 0x48a   : > { %4288 = vtanh.f32 %v3115_v25  ;;  %v3327_v62 = vsel %vm348_vm0, %v3243_v39, 0 }
 0x48b   : > { %4290 = vtanh.f32 %v3111_v11  ;;  %v3126_v24 = vadd.f32 %v6557_v51, %v3058_v21  ;;  %v2815_v21 = vmul.f32 0.03125, %v2703_v19  ;;  %v3268_v19 = vld [vmem:[%s6892_s4] sm:$0x3] }
 0x48c   : > { %4292 = vtanh.f32 %v3114_v8  ;;  %v2706_v33 = vpop.xlane.xlu0 %2705  ;;  %v2709_v8 = vpop.xlane.xlu1 %2708 }
 0x48d   : > { %v4273_v27 = vpop.eup %4272  ;;  %4294 = vtanh.f32 %v3129_v26  ;;  %v2819_v26 = vmul.f32 0.03125, %v2715_v15  ;;  %v2816_v7 = vmul.f32 0.03125, %v2706_v33 }
 0x48e   : > { %v3251_v6 = vpack.c.bf16 %v4273_v27, %v4271_v23  ;;  %v4275_v35 = vpop.eup %4274  ;;  %4296 = vtanh.f32 %v3128_v31  ;;  %v2814_v31 = vmul.f32 0.03125, %v2700_v59 }
 0x48f   : > { %4298 = vtanh.f32 %v3113_v9  ;;  %v2817_v9 = vmul.f32 0.03125, %v2709_v8  ;;  %v2880_v30 = vadd.f32 1e-05, %v2816_v7 }
 0x490   : > { %3905 = vmatprep.subr.msk.bf16.mxu0 %vm348_vm0, %v3251_v6  ;;  %4300 = vtanh.f32 %v3112_v16  ;;  %v2724_v39 = vpop.xlane.xlu0 %2723  ;;  %v2727_v2 = vpop.xlane.xlu1 %2726  ;;  %v2882_v6 = vadd.f32 1e-05, %v2818_v13  ;;  %v2878_v16 = vadd.f32 1e-05, %v2814_v31 }
 0x491   : > { %v4277_v48 = vpop.eup %4276  ;;  %3734 = vmatpush3.bf16.xpose.msra.mxu0 %v3327_v62  ;;  %4302 = vtanh.f32 %v3127_v47  ;;  %v2822_v62 = vmul.f32 0.03125, %v2724_v39  ;;  %v2823_v47 = vmul.f32 0.03125, %v2727_v2  ;;  %v7175_v2 = vld [vmem:[#allocation46_spill] sm:$0xff] }
 0x492   : > { %v3250_v1 = vpack.c.bf16 %v4277_v48, %v4275_v35  ;;  %v4279_v42 = vpop.eup %4278  ;;  %4304 = vtanh.f32 %v3126_v24  ;;  %v2883_v35 = vadd.f32 1e-05, %v2819_v26  ;;  %v2879_v24 = vadd.f32 1e-05, %v2815_v21 }
 0x493   : > { %v4281_v32 = vpop.eup %4280  ;;  %4306 = vrsqrt.f32 %v2882_v6 }
 0x494   : > { %3906 = vmatprep.subr.msk.bf16.mxu0 %vm348_vm0, %v3250_v1  ;;  %v4283_v5 = vpop.eup %4282  ;;  %v3242_v55 = vpack.c.bf16 %v4281_v32, %v4279_v42  ;;  %v2718_v48 = vpop.xlane.xlu0 %2717  ;;  %4308 = vrsqrt.f32 %v2883_v35  ;;  %v2881_v1 = vadd.f32 1e-05, %v2817_v9  ;;  %v7176_v35 = vld [vmem:[#allocation45_spill] sm:$0xff] }
 0x495   : > { %v4285_v18 = vpop.eup %4284  ;;  %v2721_v42 = vpop.xlane.xlu1 %2720  ;;  %4310 = vrsqrt.f32 %v2880_v30 }
 0x496   : > { %v4287_v58 = vpop.eup %4286  ;;  %v3324_v37 = vsel %vm348_vm0, %v3242_v55, 0  ;;  %v3249_v57 = vpack.c.bf16 %v4283_v5, %v4285_v18  ;;  %v2886_v5 = vadd.f32 1e-05, %v2822_v62  ;;  %4312 = vrsqrt.f32 %v2878_v16 }
 0x497   : > { %v4289_v60 = vpop.eup %4288  ;;  %v2820_v55 = vmul.f32 0.03125, %v2718_v48  ;;  %4314 = vrsqrt.f32 %v2881_v1  ;;  %v2887_v18 = vadd.f32 1e-05, %v2823_v47  ;;  %v7177_v48 = vld [vmem:[#allocation47_spill] sm:$0xff]  ;;  %v7178_v47 = vld [vmem:[#allocation48_spill] sm:$0xff] }
 0x498   : > { %v4291_v10 = vpop.eup %4290  ;;  %v2760_v59 = vpop.xlane.xlu0 %2759  ;;  %4316 = vrsqrt.f32 %v2886_v5 }
 0x499   : > { %3736 = vmatpush3.bf16.xpose.msra.mxu0 %v3324_v37  ;;  %v4293_v12 = vpop.eup %4292  ;;  %v3239_v3 = vpack.c.bf16 %v4291_v10, %v4287_v58  ;;  %v2763_v58 = vpop.xlane.xlu1 %2762  ;;  %v2884_v37 = vadd.f32 1e-05, %v2820_v55  ;;  %4318 = vrsqrt.f32 %v2879_v24  ;;  %v2834_v10 = vmul.f32 0.03125, %v2760_v59 }
 0x49a   : > { %3907 = vmatprep.subr.msk.bf16.mxu0 %vm348_vm0, %v3249_v57  ;;  %v3241_v38 = vpack.c.bf16 %v4289_v60, %v4293_v12  ;;  %v4295_v61 = vpop.eup %4294  ;;  %v4547_v57 = vmov 0   ;;  %v2821_v60 = vmul.f32 0.03125, %v2721_v42  ;;  %4320 = vrsqrt.f32 %v2887_v18 }
 0x49b   : > { %v4297_v40 = vpop.eup %4296  ;;  %v3315_v32 = vsel %vm348_vm0, %v3239_v3, 0  ;;  %3962 = vset.pattern.permute.xlu1 %v4547_v57  ;;  %4322 = vrsqrt.f32 %v2884_v37 }
 0x49c   : > { %v3321_v25 = vsel %vm348_vm0, %v3241_v38, 0  ;;  %v3248_v54 = vpack.c.bf16 %v4295_v61, %v4297_v40  ;;  %v4299_v11 = vpop.eup %4298  ;;  %3271 = vperm.xlu1 %3962, %v3268_v19   ;;  %v2754_v12 = vpop.xlane.xlu0 %2753  ;;  %v2885_v41 = vadd.f32 1e-05, %v2821_v60  ;;  %v2835_v38 = vmul.f32 0.03125, %v2763_v58 }
 0x49d   : > { %v4301_v17 = vpop.eup %4300  ;;  %v2757_v61 = vpop.xlane.xlu1 %2756  ;;  %v2832_v40 = vmul.f32 0.03125, %v2754_v12 }
 0x49e   : > { %v3240_v34 = vpack.c.bf16 %v4299_v11, %v4301_v17  ;;  %v4303_v53 = vpop.eup %4302  ;;  %v2833_v11 = vmul.f32 0.03125, %v2757_v61  ;;  %4324 = vrsqrt.f32 %v2885_v41  ;;  %v2899_v8 = vadd.f32 1e-05, %v2835_v38 }
 0x49f   : > { %v4305_v23 = vpop.eup %4304 }
 0x4a0   : > { %v3318_v27 = vsel %vm348_vm0, %v3240_v34, 0  ;;  %v3247_v29 = vpack.c.bf16 %v4303_v53, %v4305_v23  ;;  %v4307_v3 = vpop.eup %4306  ;;  %v2897_v39 = vadd.f32 1e-05, %v2833_v11 }
 0x4a1   : > { %3738 = vmatpush3.bf16.xpose.msra.mxu0 %v3321_v25  ;;  %v4309_v15 = vpop.eup %4308  ;;  %v2898_v25 = vadd.f32 1e-05, %v2834_v10 }
 0x4a2   : > { %3908 = vmatprep.subr.msk.bf16.mxu0 %vm348_vm0, %v3248_v54  ;;  %v4311_v54 = vpop.eup %4310  ;;  %v3011_v17 = vmul.f32 %v4309_v15, %v6234_v4  ;;  %v7179_v15 = vld [vmem:[#allocation49_spill] sm:$0xff] }
 0x4a3   : > { %v4313_v33 = vpop.eup %4312  ;;  %v3008_v53 = vmul.f32 %v4311_v54, %v6237_v20  ;;  %4326 = vrsqrt.f32 %v2898_v25 }
 0x4a4   : > { %3286 = vxpose.xlu0.c.b16.start [1/2] (short) (narrow) %v3968_v36, 16  ;;  %v3010_v36 = vmul.f32 %v4307_v3, %v6226_v14  ;;  %v4315_v34 = vpop.eup %4314  ;;  %v3006_v13 = vmul.f32 %v4313_v33, %v6217_v56  ;;  %4328 = vrsqrt.f32 %v2899_v8 }
 0x4a5   : > { %v4317_v23 = vpop.eup %4316  ;;  %v3009_v14 = vmul.f32 %v4315_v34, %v6248_v63  ;;  %v3076_v7 = vmul.f32 %v6539_v28, %v3008_v53  ;;  %v7180_v34 = vld [vmem:[#allocation50_spill] sm:$0xff] }
 0x4a6   : > { %v3078_v26 = vmul.f32 %v6539_v28, %v3010_v36  ;;  %v3014_v31 = vmul.f32 %v4317_v23, %v7175_v2  ;;  %v3074_v20 = vmul.f32 %v6539_v28, %v3006_v13 }
 0x4a7   : > { %v3077_v63 = vmul.f32 %v6539_v28, %v3009_v14  ;;  %v3144_v1 = vadd.f32 %v6557_v51, %v3076_v7  ;;  %v7182_v7 = vld [vmem:[#allocation52_spill] sm:$0xff] }
 0x4a8   : > { %3287 = vxpose.xlu0.c.b16.end [2/2] (short) (narrow) %v3969_v45, 16  ;;  %v2896_v45 = vadd.f32 1e-05, %v2832_v40  ;;  %v3146_v6 = vadd.f32 %v6557_v51, %v3078_v26  ;;  %v3082_v42 = vmul.f32 %v6539_v28, %v3014_v31 }
 0x4a9   : > { %3740 = vmatpush3.bf16.xpose.msra.mxu0 %v3318_v27  ;;  %v3079_v27 = vmul.f32 %v6539_v28, %v3011_v17  ;;  %v3145_v59 = vadd.f32 %v6557_v51, %v3077_v63 }
 0x4aa   : > { %3909 = vmatprep.subr.msk.bf16.mxu0 %vm348_vm0, %v3247_v29  ;;  %v4319_v29 = vpop.eup %4318  ;;  %4330 = vrsqrt.f32 %v2896_v45  ;;  %v3150_v10 = vadd.f32 %v6557_v51, %v3082_v42 }
 0x4ab   : > { %v4321_v4 = vpop.eup %4320  ;;  %4332 = vrsqrt.f32 %v2897_v39  ;;  %v3007_v9 = vmul.f32 %v4319_v29, %v7176_v35  ;;  %v3147_v30 = vadd.f32 %v6557_v51, %v3079_v27  ;;  %v7181_v39 = vld [vmem:[#allocation51_spill] sm:$0xff] }
 0x4ac   : > { %v4323_v56 = vpop.eup %4322  ;;  %v3015_v16 = vmul.f32 %v4321_v4, %v7177_v48  ;;  %4334 = vtanh.f32 %v3146_v6 }
 0x4ad   : > { %v3012_v5 = vmul.f32 %v4323_v56, %v7178_v47  ;;  %v3075_v24 = vmul.f32 %v6539_v28, %v3007_v9  ;;  %4336 = vtanh.f32 %v3147_v30  ;;  %v4325_v19 = vpop.eup %4324  ;;  %v7183_v56 = vld [vmem:[#allocation53_spill] sm:$0xff] }
 0x4ae   : > { %v3083_v37 = vmul.f32 %v6539_v28, %v3015_v16  ;;  %v3013_v40 = vmul.f32 %v4325_v19, %v7179_v15 }
 0x4af   : > { %v3080_v3 = vmul.f32 %v6539_v28, %v3012_v5  ;;  %v3143_v61 = vadd.f32 %v6557_v51, %v3075_v24 }
 0x4b0   : > { %v4327_v12 = vpop.eup %4326  ;;  %v3151_v11 = vadd.f32 %v6557_v51, %v3083_v37  ;;  %v3081_v26 = vmul.f32 %v6539_v28, %v3013_v40 }
 0x4b1   : > { %3742 = vmatpush3.bf16.xpose.msra.mxu0 %v3315_v32  ;;  %3963 = vset.pattern.permute.xlu0 %v4547_v57  ;;  %v3142_v32 = vadd.f32 %v6557_v51, %v3074_v20  ;;  %v4329_v36 = vpop.eup %4328  ;;  %v3026_v45 = vmul.f32 %v4327_v12, %v7180_v34  ;;  %v3148_v53 = vadd.f32 %v6557_v51, %v3080_v3  ;;  %v7186_v34 = vld [vmem:[#allocation54_spill] sm:$0xff] }
 0x4b2   : > { %v3027_v27 = vmul.f32 %v4329_v36, %v7181_v39  ;;  %v7185_v36 = vld [vmem:[#allocation41_spill] sm:$0xff] }
 0x4b3   : > { %v3094_v6 = vmul.f32 %v6539_v28, %v3026_v45 }
 0x4b4   : > { %v3095_v48 = vmul.f32 %v6539_v28, %v3027_v27 }
 0x4b7   : > { %v4331_v8 = vpop.eup %4330 }
 0x4b8   : > { %v4333_v13 = vpop.eup %4332  ;;  %v3024_v2 = vmul.f32 %v4331_v8, %v7182_v7 }
 0x4b9   : > { %v3025_v35 = vmul.f32 %v4333_v13, %v7183_v56  ;;  %v6675_v63 = vpop.eup %4334 }
 0x4ba   : > { %v3092_v42 = vmul.f32 %v6539_v28, %v3024_v2 }
 0x4c8   : > { %v2772_v62 = vpop.xlane.xlu0 %2771 }
 0x4c9   : > { %v2838_v21 = vmul.f32 0.03125, %v2772_v62  ;;  %v3149_v62 = vadd.f32 %v6557_v51, %v3081_v26 }
 0x4cb   : > { %v2902_v55 = vadd.f32 1e-05, %v2838_v21 }
 0x4cc   : > { %v2775_v18 = vpop.xlane.xlu1 %2774  ;;  %v2748_v58 = vpop.xlane.xlu0 %2747 }
 0x4cd   : > { %4338 = vrsqrt.f32 %v2902_v55  ;;  %v2839_v57 = vmul.f32 0.03125, %v2775_v18  ;;  %v2830_v60 = vmul.f32 0.03125, %v2748_v58  ;;  %v3162_v55 = vadd.f32 %v6557_v51, %v3094_v6  ;;  %v7184_v18 = vld [vmem:[#allocation55_spill] sm:$0xff]  ;;  %v7187_v6 = vld [vmem:[#allocation33_spill] sm:$0xff] }
 0x4ce   : > { %4340 = vtanh.f32 %v3144_v1  ;;  %v6679_v1 = vpop.eup %4336 }
 0x4cf   : > { %v2903_v41 = vadd.f32 1e-05, %v2839_v57  ;;  %v2894_v38 = vadd.f32 1e-05, %v2830_v60  ;;  %4342 = vtanh.f32 %v3142_v32  ;;  %v3163_v60 = vadd.f32 %v6557_v51, %v3095_v48 }
 0x4d0   : > { %v2751_v25 = vpop.xlane.xlu1 %2750  ;;  %v2766_v54 = vpop.xlane.xlu0 %2765  ;;  %4344 = vtanh.f32 %v3145_v59  ;;  %v3093_v59 = vmul.f32 %v6539_v28, %v3025_v35 }
 0x4d1   : > { %4346 = vrsqrt.f32 %v2903_v41  ;;  %v2831_v33 = vmul.f32 0.03125, %v2751_v25  ;;  %v2836_v17 = vmul.f32 0.03125, %v2766_v54  ;;  %v3160_v41 = vadd.f32 %v6557_v51, %v3092_v42 }
 0x4d2   : > { %4348 = vrsqrt.f32 %v2894_v38  ;;  %v3161_v54 = vadd.f32 %v6557_v51, %v3093_v59 }
 0x4d3   : > { %v2900_v23 = vadd.f32 1e-05, %v2836_v17  ;;  %4350 = vtanh.f32 %v3150_v10  ;;  %v2895_v14 = vadd.f32 1e-05, %v2831_v33 }
 0x4d4   : > { %v2769_v29 = vpop.xlane.xlu1 %2768  ;;  %v2598_v4 = vpop.xlane.xlu0 %2597  ;;  %4352 = vtanh.f32 %v3143_v61 }
 0x4d5   : > { %v2837_v31 = vmul.f32 0.03125, %v2769_v29  ;;  %v2780_v20 = vmul.f32 0.03125, %v2598_v4  ;;  %4354 = vtanh.f32 %v3151_v11 }
 0x4d6   : > { %4356 = vrsqrt.f32 %v2900_v23 }
 0x4d7   : > { %v2901_v9 = vadd.f32 1e-05, %v2837_v31  ;;  %v2844_v30 = vadd.f32 1e-05, %v2780_v20  ;;  %4358 = vtanh.f32 %v3148_v53 }
 0x4d8   : > { %4360 = vrsqrt.f32 %v2895_v14  ;;  %v2601_v16 = vpop.xlane.xlu1 %2600  ;;  %v2646_v21 = vpop.xlane.xlu0 %2645 }
 0x4d9   : > { %4362 = vrsqrt.f32 %v2901_v9  ;;  %v2781_v32 = vmul.f32 0.03125, %v2601_v16  ;;  %v2796_v47 = vmul.f32 0.03125, %v2646_v21 }
 0x4da   : > { %v4339_v5 = vpop.eup %4338  ;;  %4364 = vrsqrt.f32 %v2844_v30 }
 0x4db   : > { %v6683_v24 = vpop.eup %4340  ;;  %v3030_v58 = vmul.f32 %v4339_v5, %v7184_v18  ;;  %v2845_v19 = vadd.f32 1e-05, %v2781_v32  ;;  %v2860_v37 = vadd.f32 1e-05, %v2796_v47  ;;  %4366 = vtanh.f32 %v3149_v62  ;;  %v7188_v5 = vld [vmem:[#allocation8_spill] sm:$0xff] }
 0x4dc   : > { %v6687_v57 = vpop.eup %4342  ;;  %v2649_v10 = vpop.xlane.xlu1 %2648 }
 0x4dd   : > { %v2694_v12 = vpop.xlane.xlu0 %2693  ;;  %v6690_v3 = vpop.eup %4344  ;;  %v3098_v38 = vmul.f32 %v6539_v28, %v3030_v58  ;;  %4368 = vrsqrt.f32 %v2845_v19  ;;  %v2797_v61 = vmul.f32 0.03125, %v2649_v10  ;;  %v7189_v58 = vld [vmem:[#allocation25_spill] sm:$0xff] }
 0x4de   : > { %v4347_v15 = vpop.eup %4346  ;;  %4370 = vrsqrt.f32 %v2860_v37  ;;  %v2812_v40 = vmul.f32 0.03125, %v2694_v12 }
 0x4df   : > { %v4349_v25 = vpop.eup %4348  ;;  %4372 = vtanh.f32 %v3162_v55  ;;  %v3031_v11 = vmul.f32 %v4347_v15, %v7185_v36  ;;  %v2861_v33 = vadd.f32 1e-05, %v2797_v61  ;;  %v3166_v8 = vadd.f32 %v6557_v51, %v3098_v38 }
 0x4e0   : > { %v6696_v17 = vpop.eup %4350  ;;  %4374 = vtanh.f32 %v3163_v60  ;;  %v3022_v45 = vmul.f32 %v4349_v25, %v7186_v34  ;;  %v2697_v53 = vpop.xlane.xlu1 %2696  ;;  %v2876_v4 = vadd.f32 1e-05, %v2812_v40  ;;  %v7190_v40 = vld [vmem:[#allocation27_spill] sm:$0xff] }
 0x4e1   : > { %v2742_v23 = vpop.xlane.xlu0 %2741  ;;  %v6700_v13 = vpop.eup %4352  ;;  %4376 = vtanh.f32 %v3160_v41  ;;  %v3099_v26 = vmul.f32 %v6539_v28, %v3031_v11  ;;  %v2813_v39 = vmul.f32 0.03125, %v2697_v53 }
 0x4e2   : > { %v2828_v27 = vmul.f32 0.03125, %v2742_v23  ;;  %v6703_v14 = vpop.eup %4354  ;;  %v3090_v29 = vmul.f32 %v6539_v28, %v3022_v45  ;;  %4378 = vrsqrt.f32 %v2861_v33  ;;  %v7191_v33 = vld [vmem:[#allocation38_spill] sm:$0xff] }
 0x4e3   : > { %v4357_v7 = vpop.eup %4356  ;;  %4380 = vtanh.f32 %v3161_v54  ;;  %v3167_v2 = vadd.f32 %v6557_v51, %v3099_v26  ;;  %v2877_v48 = vadd.f32 1e-05, %v2813_v39  ;;  %v7192_v23 = vld [vmem:[#allocation22_spill] sm:$0xff] }
 0x4e4   : > { %v6707_v31 = vpop.eup %4358  ;;  %4382 = vtanh.f32 %v3166_v8  ;;  %v3158_v20 = vadd.f32 %v6557_v51, %v3090_v29  ;;  %v3028_v56 = vmul.f32 %v4357_v7, %v7187_v6  ;;  %v2892_v35 = vadd.f32 1e-05, %v2828_v27  ;;  %v2745_v9 = vpop.xlane.xlu1 %2744 }
 0x4e5   : > { %v2592_v30 = vpop.xlane.xlu0 %2591  ;;  %v4361_v62 = vpop.eup %4360  ;;  %4384 = vtanh.f32 %v3167_v2  ;;  %v2829_v16 = vmul.f32 0.03125, %v2745_v9 }
 0x4e6   : > { %v2778_v21 = vmul.f32 0.03125, %v2592_v30  ;;  %v4363_v42 = vpop.eup %4362  ;;  %v3096_v32 = vmul.f32 %v6539_v28, %v3028_v56  ;;  %4386 = vrsqrt.f32 %v2876_v4  ;;  %v3023_v25 = vmul.f32 %v4361_v62, %v7190_v40 }
 0x4e7   : > { %v4365_v47 = vpop.eup %4364  ;;  %4388 = vtanh.f32 %v3158_v20  ;;  %v3029_v55 = vmul.f32 %v4363_v42, %v7188_v5  ;;  %v2893_v59 = vadd.f32 1e-05, %v2829_v16  ;;  %v7193_v42 = vld [vmem:[#allocation40_spill] sm:$0xff] }
 0x4e8   : > { %v3164_v18 = vadd.f32 %v6557_v51, %v3096_v32  ;;  %v2972_v19 = vmul.f32 %v4365_v47, %v7189_v58  ;;  %4390 = vrsqrt.f32 %v2892_v35  ;;  %v2842_v37 = vadd.f32 1e-05, %v2778_v21  ;;  %v2595_v60 = vpop.xlane.xlu1 %2594  ;;  %v6715_v12 = vpop.eup %4366 }
 0x4e9   : > { %v2640_v10 = vpop.xlane.xlu0 %2639  ;;  %v3097_v41 = vmul.f32 %v6539_v28, %v3029_v55  ;;  %4392 = vrsqrt.f32 %v2877_v48  ;;  %v2779_v38 = vmul.f32 0.03125, %v2595_v60  ;;  %v3091_v9 = vmul.f32 %v6539_v28, %v3023_v25 }
 0x4ea   : > { %v2794_v61 = vmul.f32 0.03125, %v2640_v10  ;;  %v4369_v15 = vpop.eup %4368  ;;  %4394 = vtanh.f32 %v3164_v18  ;;  %v3040_v54 = vmul.f32 %v6539_v28, %v2972_v19 }
 0x4eb   : > { %v4371_v36 = vpop.eup %4370  ;;  %v3165_v11 = vadd.f32 %v6557_v51, %v3097_v41  ;;  %v2973_v8 = vmul.f32 %v4369_v15, %v7191_v33  ;;  %4396 = vrsqrt.f32 %v2893_v59  ;;  %v2843_v34 = vadd.f32 1e-05, %v2779_v38  ;;  %v7194_v33 = vld [vmem:[#allocation29_spill] sm:$0xff] }
 0x4ec   : > { %v6722_v45 = vpop.eup %4372  ;;  %v3108_v53 = vadd.f32 %v6557_v51, %v3040_v54  ;;  %v2988_v26 = vmul.f32 %v4371_v36, %v7192_v23  ;;  %4398 = vrsqrt.f32 %v2842_v37  ;;  %v2858_v39 = vadd.f32 1e-05, %v2794_v61  ;;  %v2643_v27 = vpop.xlane.xlu1 %2642 }
 0x4ed   : > { %v2688_v29 = vpop.xlane.xlu0 %2687  ;;  %v6726_v4 = vpop.eup %4374  ;;  %4400 = vtanh.f32 %v3165_v11  ;;  %v3041_v7 = vmul.f32 %v6539_v28, %v2973_v8  ;;  %v2795_v2 = vmul.f32 0.03125, %v2643_v27  ;;  %v3259_v37 = vpack.c.bf16 %v6703_v14, %v6696_v17 }
 0x4ee   : > { %v2810_v20 = vmul.f32 0.03125, %v2688_v29  ;;  %v6729_v6 = vpop.eup %4376  ;;  %v3056_v56 = vmul.f32 %v6539_v28, %v2988_v26  ;;  %4402 = vrsqrt.f32 %v2843_v34  ;;  %v3258_v38 = vpack.c.bf16 %v6715_v12, %v6707_v31 }
 0x4ef   : > { %v4379_v35 = vpop.eup %4378  ;;  %4404 = vrsqrt.f32 %v2858_v39  ;;  %v2859_v30 = vadd.f32 1e-05, %v2795_v2  ;;  %v3109_v16 = vadd.f32 %v6557_v51, %v3041_v7  ;;  %v3159_v15 = vadd.f32 %v6557_v51, %v3091_v9  ;;  %v7196_v9 = vld [vmem:[#allocation26_spill] sm:$0xff] }
 0x4f0   : > { %v2874_v62 = vadd.f32 1e-05, %v2810_v20  ;;  %v6733_v48 = vpop.eup %4380  ;;  %v3124_v21 = vadd.f32 %v6557_v51, %v3056_v56  ;;  %v2989_v32 = vmul.f32 %v4379_v35, %v7193_v42  ;;  %v2691_v47 = vpop.xlane.xlu1 %2690  ;;  %4406 = vtanh.f32 %v3108_v53  ;;  %v7195_v56 = vld [vmem:[#allocation11_spill] sm:$0xff] }
 0x4f1   : > { %v2736_v5 = vpop.xlane.xlu0 %2735  ;;  %v4383_v55 = vpop.eup %4382  ;;  %4408 = vrsqrt.f32 %v2859_v30  ;;  %v2811_v59 = vmul.f32 0.03125, %v2691_v47  ;;  %v3375_v31 = vsel %vm348_vm0, %v3259_v37, 0  ;;  %v3257_v23 = vpack.c.bf16 %v6679_v1, %v6675_v63  ;;  %v7197_v63 = vld [vmem:[#allocation14_spill] sm:$0xff]  ;;  %v7198_v47 = vld [vmem:[#allocation17_spill] sm:$0xff]  ;;  %v7199_v37 = vld [vmem:[#allocation19_spill] sm:$0xff] }
 0x4f2   : > { %v2826_v18 = vmul.f32 0.03125, %v2736_v5  ;;  %v4385_v58 = vpop.eup %4384  ;;  %4410 = vtanh.f32 %v3124_v21  ;;  %v3057_v19 = vmul.f32 %v6539_v28, %v2989_v32  ;;  %v3372_v2 = vsel %vm348_vm0, %v3258_v38, 0 }
 0x4f3   : > { %v4387_v60 = vpop.eup %4386  ;;  %4412 = vrsqrt.f32 %v2874_v62  ;;  %v2875_v10 = vadd.f32 1e-05, %v2811_v59  ;;  %v3267_v36 = vpack.c.bf16 %v4385_v58, %v4383_v55 }
 0x4f4   : > { %v2890_v41 = vadd.f32 1e-05, %v2826_v18  ;;  %v6743_v61 = vpop.eup %4388  ;;  %v3125_v40 = vadd.f32 %v6557_v51, %v3057_v19  ;;  %v2739_v25 = vpop.xlane.xlu1 %2738  ;;  %4414 = vtanh.f32 %v3109_v16  ;;  %v3004_v35 = vmul.f32 %v4387_v60, %v7195_v56 }
 0x4f5   : > { %v2586_v54 = vpop.xlane.xlu0 %2585  ;;  %v4391_v11 = vpop.eup %4390  ;;  %4416 = vrsqrt.f32 %v2875_v10  ;;  %v2827_v17 = vmul.f32 0.03125, %v2739_v25  ;;  %3913 = vmatprep.subr.msk.bf16.mxu1 %vm348_vm0, %v3267_v36  ;;  %v7200_v25 = vld [vmem:[#allocation30_spill] sm:$0xff] }
 0x4f6   : > { %v4393_v14 = vpop.eup %4392  ;;  %4418 = vtanh.f32 %v3125_v40  ;;  %v3020_v8 = vmul.f32 %v4391_v11, %v7194_v33  ;;  %v2776_v34 = vmul.f32 0.03125, %v2586_v54  ;;  %3752 = vmatpush3.bf16.xpose.msra.mxu1 %v3375_v31  ;;  %v3265_v33 = vpack.c.bf16 %v6726_v4, %v6722_v45 }
 0x4f7   : > { %v4395_v12 = vpop.eup %4394  ;;  %4420 = vrsqrt.f32 %v2890_v41  ;;  %v2891_v53 = vadd.f32 1e-05, %v2827_v17  ;;  %v3005_v5 = vmul.f32 %v4393_v14, %v7198_v47  ;;  %v3369_v45 = vsel %vm348_vm0, %v3257_v23, 0 }
 0x4f8   : > { %v4397_v26 = vpop.eup %4396  ;;  %4422 = vtanh.f32 %v3159_v15  ;;  %v3088_v39 = vmul.f32 %v6539_v28, %v3020_v8  ;;  %v2840_v27 = vadd.f32 1e-05, %v2776_v34  ;;  %v2589_v29 = vpop.xlane.xlu1 %2588 }
 0x4f9   : > { %v2634_v7 = vpop.xlane.xlu0 %2633  ;;  %v4399_v20 = vpop.eup %4398  ;;  %v3021_v30 = vmul.f32 %v4397_v26, %v7196_v9  ;;  %4424 = vrsqrt.f32 %v2891_v53  ;;  %v2777_v62 = vmul.f32 0.03125, %v2589_v29 }
 0x4fa   : > { %v4401_v16 = vpop.eup %4400  ;;  %v3156_v21 = vadd.f32 %v6557_v51, %v3088_v39  ;;  %v2970_v1 = vmul.f32 %v4399_v20, %v7197_v63  ;;  %4426 = vrsqrt.f32 %v2840_v27  ;;  %v2792_v42 = vmul.f32 0.03125, %v2634_v7 }
 0x4fb   : > { %v4403_v32 = vpop.eup %4402  ;;  %v3089_v55 = vmul.f32 %v6539_v28, %v3021_v30  ;;  %v2841_v59 = vadd.f32 1e-05, %v2777_v62  ;;  %v3266_v18 = vpack.c.bf16 %v4401_v16, %v4395_v12  ;;  %v3072_v39 = vmul.f32 %v6539_v28, %v3004_v35 }
 0x4fc   : > { %v4405_v58 = vpop.eup %4404  ;;  %4428 = vtanh.f32 %v3156_v21  ;;  %v3038_v19 = vmul.f32 %v6539_v28, %v2970_v1  ;;  %v2971_v60 = vmul.f32 %v4403_v32, %v7199_v37  ;;  %v2856_v10 = vadd.f32 1e-05, %v2792_v42  ;;  %v2637_v41 = vpop.xlane.xlu1 %2636 }
 0x4fd   : > { %v2682_v38 = vpop.xlane.xlu0 %2681  ;;  %v4407_v15 = vpop.eup %4406  ;;  %v3157_v40 = vadd.f32 %v6557_v51, %v3089_v55  ;;  %v2986_v54 = vmul.f32 %v4405_v58, %v7200_v25  ;;  %4430 = vrsqrt.f32 %v2841_v59  ;;  %v2793_v36 = vmul.f32 0.03125, %v2637_v41  ;;  %3914 = vmatprep.subr.msk.bf16.mxu1 %vm348_vm0, %v3266_v18 }
 0x4fe   : > { %v4409_v11 = vpop.eup %4408  ;;  %v3106_v17 = vadd.f32 %v6557_v51, %v3038_v19  ;;  %4432 = vrsqrt.f32 %v2856_v10  ;;  %v2808_v14 = vmul.f32 0.03125, %v2682_v38  ;;  %v3039_v34 = vmul.f32 %v6539_v28, %v2971_v60  ;;  %3754 = vmatpush3.bf16.xpose.msra.mxu1 %v3372_v2  ;;  %v7201_v19 = vld [vmem:[#allocation35_spill] sm:$0xff] }
 0x4ff   : > { %v4411_v8 = vpop.eup %4410  ;;  %v3054_v31 = vmul.f32 %v6539_v28, %v2986_v54  ;;  %v2987_v12 = vmul.f32 %v4409_v11, %v6447_v44  ;;  %v2857_v53 = vadd.f32 1e-05, %v2793_v36  ;;  %4434 = vtanh.f32 %v3157_v40  ;;  %3915 = vmatprep.subr.msk.bf16.mxu1 %vm348_vm0, %v3265_v33 }
 0x500   : > { %v4413_v26 = vpop.eup %4412  ;;  %v2872_v27 = vadd.f32 1e-05, %v2808_v14  ;;  %v2685_v29 = vpop.xlane.xlu1 %2684  ;;  %v3073_v20 = vmul.f32 %v6539_v28, %v3005_v5  ;;  %v3107_v16 = vadd.f32 %v6557_v51, %v3039_v34  ;;  %v3264_v18 = vpack.c.bf16 %v6733_v48, %v6729_v6  ;;  %v7203_v48 = vld [vmem:[#allocation34_spill] sm:$0xff] }
 0x501   : > { %v2730_v7 = vpop.xlane.xlu0 %2729  ;;  %v4415_v4 = vpop.eup %4414  ;;  %v3122_v56 = vadd.f32 %v6557_v51, %v3054_v31  ;;  %v3055_v44 = vmul.f32 %v6539_v28, %v2987_v12  ;;  %4436 = vrsqrt.f32 %v2857_v53  ;;  %v2809_v9 = vmul.f32 0.03125, %v2685_v29  ;;  %v7204_v53 = vld [vmem:[#allocation28_spill] sm:$0xff] }
 0x502   : > { %v4417_v2 = vpop.eup %4416  ;;  %4438 = vrsqrt.f32 %v2872_v27  ;;  %v2824_v35 = vmul.f32 0.03125, %v2730_v7  ;;  %v3238_v30 = vpack.c.bf16 %v4415_v4, %v4407_v15  ;;  %v3002_v23 = vmul.f32 %v4413_v26, %v6454_v0 }
 0x503   : > { %v4419_v62 = vpop.eup %4418  ;;  %v3123_v21 = vadd.f32 %v6557_v51, %v3055_v44  ;;  %4440 = vtanh.f32 %v3106_v17  ;;  %v2873_v1 = vadd.f32 1e-05, %v2809_v9  ;;  %v3141_v55 = vadd.f32 %v6557_v51, %v3073_v20 }
 0x504   : > { %v4421_v63 = vpop.eup %4420  ;;  %4442 = vtanh.f32 %v3122_v56  ;;  %v2888_v42 = vadd.f32 1e-05, %v2824_v35  ;;  %v2733_v32 = vpop.xlane.xlu1 %2732  ;;  %v3246_v47 = vpack.c.bf16 %v4419_v62, %v4411_v8  ;;  %v3003_v37 = vmul.f32 %v4417_v2, %v7201_v19  ;;  %v7206_v35 = vld [vmem:[#allocation24_spill] sm:$0xff] }
 0x505   : > { %v4423_v5 = vpop.eup %4422  ;;  %4444 = vtanh.f32 %v3123_v21  ;;  %v3018_v59 = vmul.f32 %v4421_v63, %v6480_v46  ;;  %v2825_v0 = vmul.f32 0.03125, %v2733_v32  ;;  %v3312_v60 = vsel %vm348_vm0, %v3238_v30, 0  ;;  %v7202_v46 = vld [vmem:[#allocation31_spill] sm:$0xff] }
 0x506   : > { %v4425_v58 = vpop.eup %4424  ;;  %4446 = vrsqrt.f32 %v2873_v1  ;;  %3910 = vmatprep.subr.msk.bf16.mxu0 %vm348_vm0, %v3246_v47  ;;  %v6787_v10 = vpop.trf.xlu0  ;;  %v3140_v38 = vadd.f32 %v6557_v51, %v3072_v39  ;;  %v3070_v15 = vmul.f32 %v6539_v28, %v3002_v23  ;;  %3756 = vmatpush3.bf16.xpose.msra.mxu1 %v3369_v45  ;;  %v3256_v17 = vpack.c.bf16 %v6690_v3, %v6683_v24  ;;  %v7205_v24 = vld [vmem:[#allocation21_spill] sm:$0xff] }
 0x507   : > { %v4427_v41 = vpop.eup %4426  ;;  %v3019_v40 = vmul.f32 %v4425_v58, %v7202_v46  ;;  %4448 = vrsqrt.f32 %v2888_v42  ;;  %3744 = vmatpush3.bf16.xpose.msra.mxu0 %v3312_v60  ;;  %v3086_v6 = vmul.f32 %v6539_v28, %v3018_v59  ;;  %v2889_v54 = vadd.f32 1e-05, %v2825_v0  ;;  %3916 = vmatprep.subr.msk.bf16.mxu1 %vm348_vm0, %v3264_v18 }
 0x508   : > { %v2968_v25 = vmul.f32 %v4427_v41, %v7203_v48  ;;  %4450 = vtanh.f32 %v3107_v16  ;;  %3749 = vmatprep.mubr.msk.bf16.mxu0 %vm348_vm0, %v6787_v10  ;;  %3767 = vmatprep.mubr.msk.bf16.mxu1 %vm348_vm0, %v6787_v10  ;;  %v3071_v33 = vmul.f32 %v6539_v28, %v3003_v37  ;;  %v3138_v34 = vadd.f32 %v6557_v51, %v3070_v15 }
 0x509   : > { %v6797_v36 = vpop.eup %4428  ;;  %v3087_v11 = vmul.f32 %v6539_v28, %v3019_v40  ;;  %4452 = vtanh.f32 %v3141_v55  ;;  %v3154_v39 = vadd.f32 %v6557_v51, %v3086_v6  ;;  %v3366_v7 = vsel %vm348_vm0, %v3256_v17, 0 }
 0x50a   : > { %v4431_v14 = vpop.eup %4430  ;;  %4454 = vrsqrt.f32 %v2889_v54  ;;  %v3036_v12 = vmul.f32 %v6539_v28, %v2968_v25  ;;  %v3139_v4 = vadd.f32 %v6557_v51, %v3071_v33  ;;  %v3263_v56 = vpack.c.bf16 %v4423_v5, %v6743_v61 }
 0x50b   : > { %v4433_v8 = vpop.eup %4432  ;;  %v3155_v31 = vadd.f32 %v6557_v51, %v3087_v11  ;;  %v2969_v26 = vmul.f32 %v4431_v14, %v7204_v53  ;;  %4456 = vtanh.f32 %v3140_v38  ;;  %v3255_v1 = vpack.c.bf16 %v6700_v13, %v6687_v57 }
 0x50c   : > { %v2984_v3 = vmul.f32 %v4433_v8, %v7205_v24  ;;  %v4435_v27 = vpop.eup %4434  ;;  %v3104_v2 = vadd.f32 %v6557_v51, %v3036_v12 }
 0x50d   : > { %v3037_v29 = vmul.f32 %v6539_v28, %v2969_v26  ;;  %4458 = vtanh.f32 %v3155_v31  ;;  %v3363_v19 = vsel %vm348_vm0, %v3255_v1, 0  ;;  %v3262_v37 = vpack.c.bf16 %v4435_v27, %v6797_v36 }
 0x50e   : > { %v4437_v45 = vpop.eup %4436  ;;  %v3052_v20 = vmul.f32 %v6539_v28, %v2984_v3  ;;  %3758 = vmatpush3.bf16.xpose.msra.mxu1 %v3366_v7  ;;  %4460 = vtanh.f32 %v3138_v34 }
 0x50f   : > { %v4439_v44 = vpop.eup %4438  ;;  %v3105_v9 = vadd.f32 %v6557_v51, %v3037_v29  ;;  %v2985_v30 = vmul.f32 %v4437_v45, %v7206_v35  ;;  %4462 = vtanh.f32 %v3154_v39  ;;  %3917 = vmatprep.subr.msk.bf16.mxu1 %vm348_vm0, %v3263_v56  ;;  %v4548_v56 = vmov 1983009808  }
 0x510   : > { %v4441_v62 = vpop.eup %4440  ;;  %v3120_v16 = vadd.f32 %v6557_v51, %v3052_v20  ;;  %v3000_v21 = vmul.f32 %v4439_v44, %v6511_v50  ;;  %v3490_v44 = vunpack.c.l.s4 %v4548_v56 }
 0x511   : > { %v4443_v23 = vpop.eup %4442  ;;  %v3053_v61 = vmul.f32 %v6539_v28, %v2985_v30  ;;  %4464 = vtanh.f32 %v3105_v9 }
 0x512   : > { %v4445_v63 = vpop.eup %4444  ;;  %4466 = vtanh.f32 %v3139_v4  ;;  %v3068_v50 = vmul.f32 %v6539_v28, %v3000_v21 }
 0x513   : > { %v4447_v42 = vpop.eup %4446  ;;  %v3121_v32 = vadd.f32 %v6557_v51, %v3053_v61  ;;  %v3245_v47 = vpack.c.bf16 %v4445_v63, %v4443_v23  ;;  %4468 = vtanh.f32 %v3104_v2 }
 0x514   : > { %v4449_v5 = vpop.eup %4448  ;;  %4470 = vtanh.f32 %v3120_v16  ;;  %v3001_v55 = vmul.f32 %v4447_v42, %v6529_v43  ;;  %v3136_v43 = vadd.f32 %v6557_v51, %v3068_v50 }
 0x515   : > { %v4451_v59 = vpop.eup %4450  ;;  %4472 = vtanh.f32 %v3121_v32  ;;  %v3016_v18 = vmul.f32 %v4449_v5, %v6532_v49  ;;  %3911 = vmatprep.subr.msk.bf16.mxu0 %vm348_vm0, %v3245_v47 }
 0x516   : > { %v4453_v58 = vpop.eup %4452  ;;  %v3069_v57 = vmul.f32 %v6539_v28, %v3001_v55  ;;  %v3237_v13 = vpack.c.bf16 %v4451_v59, %v4441_v62  ;;  %3760 = vmatpush3.bf16.xpose.msra.mxu1 %v3363_v19  ;;  %v3491_v62 = vunpack.c.0.s8 %v3490_v44 }
 0x517   : > { %v4455_v0 = vpop.eup %4454  ;;  %v3084_v60 = vmul.f32 %v6539_v28, %v3016_v18  ;;  %3918 = vmatprep.subr.msk.bf16.mxu1 %vm348_vm0, %v3262_v37  ;;  %v3272_v2 = vpop.permute.xlu1 %3271 }
 0x518   : > { %v3137_v41 = vadd.f32 %v6557_v51, %v3069_v57  ;;  %v3017_v49 = vmul.f32 %v4455_v0, %v6551_v52  ;;  %v3309_v38 = vsel %vm348_vm0, %v3237_v13, 0  ;;  %v4457_v15 = vpop.eup %4456 }
 0x519   : > { %v3152_v46 = vadd.f32 %v6557_v51, %v3084_v60  ;;  %3746 = vmatpush3.bf16.xpose.msra.mxu0 %v3309_v38  ;;  %v3254_v6 = vpack.c.bf16 %v4453_v58, %v4457_v15 }
 0x51a   : > { %v3085_v40 = vmul.f32 %v6539_v28, %v3017_v49  ;;  %4474 = vtanh.f32 %v3137_v41  ;;  %v4459_v48 = vpop.eup %4458 }
 0x51b   : > { %v4461_v25 = vpop.eup %4460  ;;  %4476 = vtanh.f32 %v3136_v43  ;;  %v3360_v11 = vsel %vm348_vm0, %v3254_v6, 0 }
 0x51c   : > { %v3153_v54 = vadd.f32 %v6557_v51, %v3085_v40  ;;  %v4463_v36 = vpop.eup %4462  ;;  %4478 = vtanh.f32 %v3152_v46 }
 0x51d   : > { %v3261_v17 = vpack.c.bf16 %v4459_v48, %v4463_v36 }
 0x51e   : > { %v4465_v52 = vpop.eup %4464  ;;  %4480 = vtanh.f32 %v3153_v54  ;;  %3762 = vmatpush3.bf16.xpose.msra.mxu1 %v3360_v11 }
 0x51f   : > { %v4467_v14 = vpop.eup %4466  ;;  %3919 = vmatprep.subr.msk.bf16.mxu1 %vm348_vm0, %v3261_v17 }
 0x520   : > { %v4469_v33 = vpop.eup %4468  ;;  %v3253_v31 = vpack.c.bf16 %v4467_v14, %v4461_v25 }
 0x521   : > { %v4471_v28 = vpop.eup %4470  ;;  %v3236_v8 = vpack.c.bf16 %v4465_v52, %v4469_v33 }
 0x522   : > { %v4473_v34 = vpop.eup %4472  ;;  %v3357_v53 = vsel %vm348_vm0, %v3253_v31, 0 }
 0x523   : > { %v3244_v12 = vpack.c.bf16 %v4473_v34, %v4471_v28  ;;  %v3306_v51 = vsel %vm348_vm0, %v3236_v8, 0 }
 0x525   : > { %3912 = vmatprep.subr.msk.bf16.mxu0 %vm348_vm0, %v3244_v12 }
 0x526   : > { %3748 = vmatpush3.bf16.xpose.msra.mxu0 %v3306_v51  ;;  %3764 = vmatpush3.bf16.xpose.msra.mxu1 %v3357_v53 }
 0x527   : > { %v4475_v26 = vpop.eup %4474 }
 0x528   : > { %v4477_v39 = vpop.eup %4476 }
 0x529   : > { %v4479_v24 = vpop.eup %4478  ;;  %v3252_v3 = vpack.c.bf16 %v4475_v26, %v4477_v39 }
 0x52b   : > { %v4481_v27 = vpop.eup %4480  ;;  %v3354_v7 = vsel %vm348_vm0, %v3252_v3, 0 }
 0x52c   : > { %v3260_v29 = vpack.c.bf16 %v4481_v27, %v4479_v24 }
 0x52d   : > { %3750 = vmatmul.mubr.msk.bf16.vlgmr.msra.gmra.mxu0 %vm348_vm0, %v6787_v10 }
 0x52e   : > { %3920 = vmatprep.subr.msk.bf16.mxu1 %vm348_vm0, %v3260_v29 }
 0x52f   : > { %3766 = vmatpush3.bf16.xpose.msra.mxu1 %v3354_v7 }
 0x536   : > { %3768 = vmatmul.mubr.msk.bf16.vlgmr.msra.gmra.mxu1 %vm348_vm0, %v6787_v10  ;;  %v3494_v10 = vsub.s32 %v3491_v62, %v7169_v22 }
 0x5ed   : > { %v3435_v45 = vpop.f32.mrf.mxu0 }
 0x5ee   : > { %v3436_v35 = vadd.f32 %v3435_v45, %v3272_v2 }
 0x5ef   : > { %v3437_v4 = vpop.f32.mrf.mxu0 }
 0x5f0   : > { %v3438_v30 = vadd.f32 %v3437_v4, %v3272_v2 }
 0x5f1   : > { %v3439_v20 = vpop.f32.mrf.mxu0 }
 0x5f2   : > { %v3487_v63 = vcombine.low %v3436_v35, %v3438_v30 }
 0x5f3   : > { %v3440_v9 = vpop.f32.mrf.mxu0 }
 0x5f4   : > { %v3495_v47 = vrot.slane %v3487_v63, %v3494_v10 }
 0x5f6   : > { %v3476_v16 = vpop.f32.mrf.mxu1 }
 0x5f7   : > { %v3477_v23 = vadd.f32 %v3476_v16, %v3272_v2 }
 0x5f8   : > { %v3478_v21 = vpop.f32.mrf.mxu1 }
 0x5f9   : > { %v3479_v61 = vadd.f32 %v3478_v21, %v3272_v2 }
 0x5fa   : > { %v3480_v1 = vpop.f32.mrf.mxu1 }
 0x5fb   : > { %v3488_v42 = vcombine.low %v3477_v23, %v3479_v61 }
 0x5fc   : > { %v3481_v32 = vpop.f32.mrf.mxu1 }
 0x5fd   : > { %v3502_v5 = vrot.slane %v3488_v42, %v3494_v10 }
 0x5ff   : > { %v3503_v50 = vcombine.low %v3495_v47, %v3502_v5 }
 0x601   : > { %3505 = vst [vmem:[%s218_s25] sm:$0xff] %v3503_v50 }
 0x602   : > { %4498 = shalt.err (!%p4495_p3)
}
 0x603   : > { %s4499_s12 = scalar_lea.hbm %s3519_s7, 128  ;;  %s4503_s15 = scalar_lea.hbm %s6893_s5, 512 }
 0x604   : > { %p4500_p4 = scmp.ne.s32.totalorder %s3519_s7, %s4499_s12  ;;  %p4504_p9 = scmp.lt.s32.totalorder %s3519_s7, %s6893_s5 }
 0x605   : > { %p4505_p10 = scmp.lt.s32.totalorder %s4503_s15, %s4499_s12 }
 0x606   : > { %p4501_p7 = pnand %p4500_p4, %p4618_p5 }
 0x607   : > { %p4506_p11 = por %p4505_p10, %p4504_p9 }
 0x608   : > { %p4502_p8 = pneg %p4501_p7 }
 0x60a   : > { %p4507_p12 = pnand %p4506_p11, %p4502_p8 }
 0x60c   : > { %4510 = shalt.err (!%p4507_p12)
}
 0x60d   : > { %3921 = dma.vmem_to_hbm [thread:$0]  (%p4618_p5), %s3522_s26, 128, %s3519_s7, %s3507_s8  }
 0x60e PF: > { %p3927_p13 = scmp.ge.s32.totalorder %s4545_s21, 2  ;;  %s3533_s23 = sand.u32 1, %s4533_s18  }
 0x60f   : > { %s3534_s25 = scalar_lea.sflag [#allocation3], %s3533_s23 }
 0x610   : > { %p3924_p0 = pnand %p3927_p13, %p4622_p6 }
 0x612   : > { %p3925_p1 = pneg %p3924_p0 }
 0x614   : > { %4528 = dma.done.wait (%p3925_p1), %s3534_s25, 128  }
 0x615   : > { %4530 = vsyncadd (%p3925_p1), %s3534_s25, 4294967168  ;;  %p15_p2 = scmp.ge.s32.totalorder %s4605_s24, 6   ;;  %s7207_s18 = smov %s4537_s19 }
 0x616   : > { %s7208_s19 = smov %s4541_s20  ;;  %s7209_s20 = smov %s4616_s27 }
 0x617   : > { %s7210_s21 = smov %s4605_s24  ;;  %17 = sbr.rel (!%p15_p2) target bundleno = 3 (0x3), region = 75 }
 0x61c   :  { %3539 = vsyncpa [#allocation3], 1 }
 0x61d   :  { %3541 = vsyncpa [#allocation3 + $0x1], 1 }

</bundles_post_ra>
